<compile_context>
chip_gen: v6e
topology: v6e:2x2x1
jax: 0.10.0
libtpu: 0.0.40
codegen_flags: <defaults>
</compile_context>

<pallas_src>
import functools

import jax
import jax.numpy as jnp
from jax.experimental import pallas as pl
from jax.experimental.pallas import tpu as pltpu

_MASK_NEG = -1e30  # masked-fill value for the attention logits


def _ceil_to(n, m):
    return ((n + m - 1) // m) * m


def _choose_tm(n_a, k, n_f, n_k, budget_bytes=14 << 20):
    """Pick the atom-row tile size for the fused interaction kernel."""
    cands = []
    for tm in (128, 64, 32, 16, 8):
        na_p = _ceil_to(n_a, tm)
        grid = na_p // tm
        waste = na_p - n_a
        rows = tm * k
        # rough per-step VMEM estimate: double-buffered tiles + f32 intermediates
        tiles = 2 * rows * (4 * n_k + 2 * n_f) + 2 * 10 * tm * n_f * 4
        interm = rows * n_f * 4 * 9  # w1e, w2e, v1, v2, v12(2nf), vcat(3nf)
        cands.append((tm, na_p, grid, waste, tiles + interm))
    ok = [c for c in cands if c[4] <= budget_bytes]
    if not ok:
        ok = [min(cands, key=lambda c: c[4])]

    def key(c):
        tm, na_p, grid, waste, _ = c
        frac_bad = waste * 8 > na_p          # > 12.5 % padded rows
        return (frac_bad, grid < 2, waste if frac_bad else -tm, waste)

    best = min(ok, key=key)
    return best[0], best[1]


# ---------------------------------------------------------------------------
# Kernel 1: fused phi/Q/K/V projection + multi-head self-attention.
# Whole (n_a, n_f) arrays are resident (n_a is small in this model).
# ---------------------------------------------------------------------------
def _phi_attn_kernel(s_ref, mask_ref, w_ref, b_ref, phi_ref, nl_ref,
                     *, nh, d, nf, tp):
    f32 = jnp.float32
    mm = w_ref.dtype                        # bf16 MXU path
    s = s_ref[...]

    # One wide matmul: columns are [phi | q | k | v], each n_f wide.
    proj = jnp.dot(s.astype(mm), w_ref[...],
                   preferred_element_type=f32) + b_ref[...]
    h = proj[:, :nf]
    phi_ref[...] = (h * jax.nn.sigmoid(h)).astype(phi_ref.dtype)

    q = proj[:, nf:2 * nf]
    k = proj[:, 2 * nf:3 * nf]
    v = proj[:, 3 * nf:]

    masked = mask_ref[...] > 0.0            # (n_a, n_a), True == masked
    inv_tp = 1.0 / tp
    outs = []
    for hh in range(nh):                    # small static head loop (nh = 4)
        lo = hh * d
        qh, kh, vh = q[:, lo:lo + d], k[:, lo:lo + d], v[:, lo:lo + d]
        a = jnp.einsum("qd,kd->qk", qh, kh,
                       preferred_element_type=f32) * inv_tp
        a = jnp.where(masked, _MASK_NEG, a)
        a = a - jnp.max(a, axis=-1, keepdims=True)
        p = jnp.exp(a)
        alpha = p * pl.reciprocal(jnp.sum(p, axis=-1, keepdims=True),
                                  approx=True)
        outs.append(jnp.dot(alpha, vh, preferred_element_type=f32))
    nl_ref[...] = jnp.concatenate(outs, axis=-1).astype(nl_ref.dtype)


# ---------------------------------------------------------------------------
# Kernel 3: fused CFConv (incl. RBF filter MLPs) + Interaction.o / .u + ResML.
# Per atom-row tile; all k-neighbour reductions are done in-kernel so the
# (n_a, k, 3*n_f) tensor never touches HBM.
# ---------------------------------------------------------------------------
def _interaction_kernel(e_ref, phi_ref, xnb_ref, mask_ref,
                        vn0_ref, vn1_ref, vn2_ref,
                        s_ref, snl_ref, vin0_ref, vin1_ref, vin2_ref, oprev_ref,
                        w1_ref, b1_ref, w2_ref, b2_ref, wo_ref, bo_ref,
                        wo2_ref, bo2_ref, wu_ref,
                        wr1_ref, br1_ref, wr2_ref, br2_ref,
                        sm_ref, sout_ref, vm0_ref, vm1_ref, vm2_ref):
    f32 = jnp.float32
    tm, kk, nk = e_ref.shape
    nf = phi_ref.shape[-1]
    mm = w1_ref.dtype                       # bf16 MXU path

    # ---- CFConv RBF filters (fused here: e is read once, outputs stay VMEM) --
    e2 = e_ref[...].reshape(tm * kk, nk).astype(mm)
    h1 = jnp.dot(e2, w1_ref[...], preferred_element_type=f32) + b1_ref[...]
    w1e = (h1 * jax.nn.sigmoid(h1)).reshape(tm, kk, nf)
    h2 = jnp.dot(e2, w2_ref[...], preferred_element_type=f32) + b2_ref[...]
    w2e = (h2 * jax.nn.sigmoid(h2)).reshape(tm, kk, nf)

    m = mask_ref[...][:, :, None]                        # (tm, kk, 1)
    phi = phi_ref[...].astype(f32)                       # (tm, nf)
    v1 = (phi[:, None, :] * w1e * m).reshape(tm * kk, nf)
    v2 = (xnb_ref[...].astype(f32) * w2e * m).reshape(tm * kk, nf)

    # ---- o(cat([v1, v2])): single K = 2*nf matmul (fills 256-deep MXU) ------
    v12 = jnp.concatenate([v1.astype(mm), v2.astype(mm)], axis=-1)
    vcat = jnp.dot(v12, wo_ref[...], preferred_element_type=f32) + bo_ref[...]
    vcat = vcat.reshape(tm, kk, 3 * nf) * m              # mask after projection
    s1sum = jnp.sum(vcat[:, :, :nf], axis=1)             # (tm, nf)
    s2sum = jnp.sum(vcat[:, :, nf:2 * nf], axis=1)       # (tm, nf)
    s3 = vcat[:, :, 2 * nf:]                             # (tm, kk, nf)

    # ---- s_n1, s_n2, s_n3 = o(s + s_nonlocal + s1.sum(-2)) ------------------
    t = s_ref[...] + snl_ref[...] + s1sum
    sn = jnp.dot(t.astype(mm), wo2_ref[...],
                 preferred_element_type=f32) + bo2_ref[...]
    s_n1, s_n2, s_n3 = sn[:, :nf], sn[:, nf:2 * nf], sn[:, 2 * nf:]

    # ---- u(v): one stacked (3*tm, nf) matmul over the 3 spatial components --
    vin0, vin1, vin2 = vin0_ref[...], vin1_ref[...], vin2_ref[...]
    vstack = jnp.concatenate([vin0, vin1, vin2], axis=0).astype(mm)
    uv = jnp.dot(vstack, wu_ref[...], preferred_element_type=f32)  # (3*tm,3nf)
    u1, u2, u3 = uv[:, :nf], uv[:, nf:2 * nf], uv[:, 2 * nf:]
    prod = u1 * u2
    dotv = prod[:tm] + prod[tm:2 * tm] + prod[2 * tm:]   # sum over components

    # ---- s_m and s_out = ResML(s_m) + o_prev --------------------------------
    s_m = s_n1 + s_n2 * dotv
    sm_ref[...] = s_m.astype(sm_ref.dtype)

    h = jnp.dot(s_m.astype(mm), wr1_ref[...],
                preferred_element_type=f32) + br1_ref[...]
    h = h * jax.nn.sigmoid(h)
    r = jnp.dot(h.astype(mm), wr2_ref[...],
                preferred_element_type=f32) + br2_ref[...]
    sout_ref[...] = (r + s_m + oprev_ref[...]).astype(sout_ref.dtype)

    # ---- v_m per spatial component ------------------------------------------
    vins = (vin0, vin1, vin2)
    vns = (vn0_ref, vn1_ref, vn2_ref)
    vm_outs = (vm0_ref, vm1_ref, vm2_ref)
    for c in range(3):
        w_c = jnp.sum(s3 * vns[c][...][:, :, None], axis=1)       # (tm, nf)
        vm = s_n3 * u3[c * tm:(c + 1) * tm] + s2sum * vins[c] + w_c
        vm_outs[c][...] = vm.astype(vm_outs[c].dtype)


# ---------------------------------------------------------------------------
# Wrapper
# ---------------------------------------------------------------------------
@functools.partial(jax.jit, static_argnames=("num_head", "temperature_coeff"))
def interaction_forward(params, s, o_prev, v, e, vec_norm, idxs, mask, batch_mask,
                        *, num_head=4, temperature_coeff=2.0):
    f32, bf16 = jnp.float32, jnp.bfloat16
    _, n_a, n_f = s.shape
    k = e.shape[2]
    n_k = e.shape[3]
    nh = num_head
    d = n_f // nh
    tp = float((temperature_coeff * d) ** 0.5)

    s2 = s[0].astype(f32)                          # (n_a, n_f)
    o2 = o_prev[0].astype(f32)                     # (n_a, n_f)
    v2 = v[0].astype(f32)                          # (n_a, 3, n_f)
    e2 = e[0].astype(f32)                          # (n_a, k, n_k)
    vecn = vec_norm[0, :, :, :, 0].astype(f32)     # (n_a, k, 3)
    maskf = mask[0, :, :, 0].astype(f32)           # (n_a, k)
    idx = idxs[0].astype(jnp.int32)                # (n_a, k)
    bmask = batch_mask.astype(f32)                 # (n_a, n_a)

    wt = lambda name: params[name].astype(bf16)    # weights -> bf16 MXU path
    bs = lambda name: params[name].astype(f32)     # biases stay f32

    # ---------------- K1: fused phi/Q/K/V projection + self-attention --------
    wproj = jnp.concatenate(
        [wt("cf_phi_w"), wt("att_q_w"), wt("att_k_w"), wt("att_v_w")], axis=1)
    bproj = jnp.concatenate(
        [bs("cf_phi_b"), bs("att_q_b"), bs("att_k_b"), bs("att_v_b")], axis=1)

    full2d = lambda a, b: pl.BlockSpec((a, b), lambda i: (0, 0))
    phi_x, s_nl = pl.pallas_call(
        functools.partial(_phi_attn_kernel, nh=nh, d=d, nf=n_f, tp=tp),
        out_shape=(jax.ShapeDtypeStruct((n_a, n_f), bf16),
                   jax.ShapeDtypeStruct((n_a, n_f), f32)),
        grid_spec=pltpu.PrefetchScalarGridSpec(
            num_scalar_prefetch=0, grid=(1,),
            in_specs=[full2d(n_a, n_f), full2d(n_a, n_a),
                      full2d(n_f, 4 * n_f), full2d(1, 4 * n_f)],
            out_specs=(full2d(n_a, n_f), full2d(n_a, n_f)),
        ),
        compiler_params=pltpu.CompilerParams(dimension_semantics=("arbitrary",)),
    )(s2, bmask, wproj, bproj)

    # TODO(synk): data-dependent neighbour gather done with an XLA gather
    # (bf16 to halve the HBM round trip) rather than inside the kernel.
    x_nbs = jnp.take(phi_x, idx.reshape(-1), axis=0).reshape(n_a, k, n_f)

    # ---------------- row-tile choice + padding ------------------------------
    tm, na_p = _choose_tm(n_a, k, n_f, n_k)
    pad = na_p - n_a

    def pad_rows(a):
        if pad == 0:
            return a
        return jnp.pad(a, ((0, pad),) + ((0, 0),) * (a.ndim - 1))

    e_p = pad_rows(e2)
    phi_p = pad_rows(phi_x)
    xnb_p = pad_rows(x_nbs)
    mask_p = pad_rows(maskf)
    vecn_p = pad_rows(vecn)
    s_p, snl_p, o_p = pad_rows(s2), pad_rows(s_nl), pad_rows(o2)
    vin_p = pad_rows(v2)
    vin0, vin1, vin2 = vin_p[:, 0, :], vin_p[:, 1, :], vin_p[:, 2, :]
    vn0, vn1, vn2 = vecn_p[:, :, 0], vecn_p[:, :, 1], vecn_p[:, :, 2]

    # ---------------- K3: fused CFConv + Interaction.o/u + ResML -------------
    row = pl.BlockSpec((tm, n_f), lambda i: (i, 0))
    nbr = pl.BlockSpec((tm, k, n_f), lambda i: (i, 0, 0))
    ek = pl.BlockSpec((tm, k, n_k), lambda i: (i, 0, 0))
    kvec = pl.BlockSpec((tm, k), lambda i: (i, 0))
    w_nk = pl.BlockSpec((n_k, n_f), lambda i: (0, 0))
    w_2f3f = pl.BlockSpec((2 * n_f, 3 * n_f), lambda i: (0, 0))
    w_f3f = pl.BlockSpec((n_f, 3 * n_f), lambda i: (0, 0))
    w_ff = pl.BlockSpec((n_f, n_f), lambda i: (0, 0))
    b_f = pl.BlockSpec((1, n_f), lambda i: (0, 0))
    b_3f = pl.BlockSpec((1, 3 * n_f), lambda i: (0, 0))

    outs = pl.pallas_call(
        _interaction_kernel,
        out_shape=tuple(jax.ShapeDtypeStruct((na_p, n_f), f32) for _ in range(5)),
        grid_spec=pltpu.PrefetchScalarGridSpec(
            num_scalar_prefetch=0, grid=(na_p // tm,),
            in_specs=[ek, row, nbr, kvec, kvec, kvec, kvec,
                      row, row, row, row, row, row,
                      w_nk, b_f, w_nk, b_f, w_2f3f, b_3f,
                      w_f3f, b_3f, w_f3f, w_ff, b_f, w_ff, b_f],
            out_specs=tuple(row for _ in range(5)),
        ),
        compiler_params=pltpu.CompilerParams(
            dimension_semantics=("parallel",),
            vmem_limit_bytes=32 * 1024 * 1024),
    )(e_p, phi_p, xnb_p, mask_p, vn0, vn1, vn2,
      s_p, snl_p, vin0, vin1, vin2, o_p,
      wt("cf_w1_w"), bs("cf_w1_b"), wt("cf_w2_w"), bs("cf_w2_b"),
      wt("cf_o_w"), bs("cf_o_b"), wt("o_w"), bs("o_b"), wt("u_w"),
      wt("res_w1"), bs("res_b1"), wt("res_w2"), bs("res_b2"))

    s_m, s_out, vm0, vm1, vm2 = outs
    s_m = s_m[:n_a][None]
    s_out = s_out[:n_a][None]
    v_m = jnp.stack([vm0[:n_a], vm1[:n_a], vm2[:n_a]], axis=1)[None]
    return s_m, s_out, v_m, None


# ---------------------------------------------------------------------------
# Deterministic synthetic parameters (matching the module's init semantics).
# Weights are stored as (in, out) so kernels compute x @ W; biases as (1, out).
# ---------------------------------------------------------------------------
def init_interaction_params(key, n_feature=128, n_kernel=16):
    nf, nk = n_feature, n_kernel
    keys = iter(jax.random.split(key, 32))

    def uniform(shape, bound):
        return jax.random.uniform(next(keys), shape, jnp.float32, -bound, bound)

    lim_k = (6.0 / nk) ** 0.5
    bnd_k = 1.0 / nk ** 0.5
    bnd_f = 1.0 / nf ** 0.5
    bnd_2f = 1.0 / (2 * nf) ** 0.5
    p = {}
    p["cf_w1_w"] = uniform((nk, nf), lim_k)
    p["cf_w1_b"] = uniform((1, nf), bnd_k)
    p["cf_w2_w"] = uniform((nk, nf), lim_k)
    p["cf_w2_b"] = uniform((1, nf), bnd_k)
    p["cf_phi_w"] = jax.random.normal(next(keys), (nf, nf), jnp.float32) * (
        0.5 * (6.0 / nf) ** 0.5)
    p["cf_phi_b"] = uniform((1, nf), bnd_f)
    p["cf_o_w"] = uniform((2 * nf, 3 * nf), bnd_2f)
    p["cf_o_b"] = uniform((1, 3 * nf), bnd_2f)
    for name in ("q", "k", "v"):
        p[f"att_{name}_w"] = uniform((nf, nf), bnd_f)
        p[f"att_{name}_b"] = uniform((1, nf), bnd_f)
    p["u_w"] = uniform((nf, 3 * nf), bnd_f)
    p["o_w"] = uniform((nf, 3 * nf), bnd_f)
    p["o_b"] = uniform((1, 3 * nf), bnd_f)
    p["res_w1"] = jax.random.normal(next(keys), (nf, nf), jnp.float32) * (
        0.5 * (6.0 / nf) ** 0.5)
    p["res_b1"] = uniform((1, nf), bnd_f)
    p["res_w2"] = uniform((nf, nf), bnd_f)
    p["res_b2"] = uniform((1, nf), bnd_f)
    return p


# ---------------------------------------------------------------------------
# Pure-JAX reference (mirrors the PyTorch forward, f32 throughout).
# ---------------------------------------------------------------------------
def interaction_reference(params, s, o_prev, v, e, vec_norm, idxs, mask,
                          batch_mask, num_head=4, temperature_coeff=2.0):
    p = params
    silu = lambda x: x * jax.nn.sigmoid(x)
    w1 = silu(e @ p["cf_w1_w"] + p["cf_w1_b"][0])
    w2 = silu(e @ p["cf_w2_w"] + p["cf_w2_b"][0])
    x = silu(s @ p["cf_phi_w"] + p["cf_phi_b"][0])
    x_nbs = x[0][idxs[0]][None]
    v1 = x[:, :, None, :] * w1 * mask
    v2 = x_nbs * w2 * mask
    vc = (jnp.concatenate([v1, v2], axis=-1) @ p["cf_o_w"] + p["cf_o_b"][0]) * mask
    s1, s2_, s3_ = jnp.split(vc, 3, axis=-1)
    n_a, n_f = s.shape[1], s.shape[2]
    nh = num_head
    d = n_f // nh
    tp = (temperature_coeff * d) ** 0.5
    q = (s @ p["att_q_w"] + p["att_q_b"][0]).reshape(1, n_a, nh, d).transpose(2, 0, 1, 3)
    kt = (s @ p["att_k_w"] + p["att_k_b"][0]).reshape(1, n_a, nh, d).transpose(2, 0, 3, 1)
    vv = (s @ p["att_v_w"] + p["att_v_b"][0]).reshape(1, n_a, nh, d).transpose(2, 0, 1, 3)
    a = q @ kt / tp
    a = jnp.where(batch_mask[None, None], _MASK_NEG, a)
    alpha = jax.nn.softmax(a, axis=-1)
    s_nl = (alpha @ vv).transpose(1, 2, 0, 3).reshape(1, n_a, n_f)
    v1u, v2u, v3u = jnp.split(v @ p["u_w"], 3, axis=-1)
    sn = (s + s_nl + s1.sum(-2)) @ p["o_w"] + p["o_b"][0]
    s_n1, s_n2, s_n3 = jnp.split(sn, 3, axis=-1)
    s_m = s_n1 + s_n2 * (v1u * v2u).sum(axis=-2)
    h = silu(s_m @ p["res_w1"] + p["res_b1"][0])
    s_out = h @ p["res_w2"] + p["res_b2"][0] + s_m + o_prev
    vexp = v[:, :, None, :, :]
    v_m = (s_n3[:, :, None, :] * v3u
           + (s2_[:, :, :, None, :] * vexp + s3_[:, :, :, None, :] * vec_norm).sum(axis=-3))
    return s_m, s_out, v_m


if __name__ == "__main__":
    n_feature, n_kernel, num_head = 128, 16, 4
    n_a, k = 32, 8

    key = jax.random.PRNGKey(0)
    kp, ks, ko, kv, ke, kn, ki, km = jax.random.split(key, 8)

    params = init_interaction_params(kp, n_feature, n_kernel)
    # Kernel runs its matmuls on the bf16 MXU path; round weight matrices to
    # bf16-representable values so kernel and f32 reference share identical
    # weights (the check then isolates kernel implementation error).
    params = {name: (w.astype(jnp.bfloat16).astype(jnp.float32)
                     if w.shape[0] > 1 else w)
              for name, w in params.items()}

    s = jax.random.normal(ks, (1, n_a, n_feature), jnp.float32)
    o_prev = jax.random.normal(ko, (1, n_a, n_feature), jnp.float32)
    v = jax.random.normal(kv, (1, n_a, 3, n_feature), jnp.float32)
    e = jax.random.normal(ke, (1, n_a, k, n_kernel), jnp.float32)
    vec_norm = jax.random.normal(kn, (1, n_a, k, 3, 1), jnp.float32)
    idxs = jax.random.randint(ki, (1, n_a, k), 0, n_a)
    mask = (jax.random.uniform(km, (1, n_a, k, 1)) > 0.2).astype(jnp.float32)
    mol = jnp.arange(n_a) // 16                       # two "molecules" of 16 atoms
    batch_mask = mol[:, None] != mol[None, :]         # True == masked

    s_m, s_out, v_m, _ = interaction_forward(
        params, s, o_prev, v, e, vec_norm, idxs, mask, batch_mask,
        num_head=num_head, temperature_coeff=2.0)
    jax.block_until_ready((s_m, s_out, v_m))

    r_m, r_out, r_vm = interaction_reference(
        params, s, o_prev, v, e, vec_norm, idxs, mask, batch_mask,
        num_head=num_head, temperature_coeff=2.0)

    assert s_m.shape == (1, n_a, n_feature)
    assert s_out.shape == (1, n_a, n_feature)
    assert v_m.shape == (1, n_a, 3, n_feature)

    def rel_err(a, b):
        return float(jnp.max(jnp.abs(a - b)) / (jnp.max(jnp.abs(b)) + 1e-8))

    # Tolerance accounts for bf16 operand rounding on the MXU path.
    tol = 2e-2
    assert rel_err(s_m, r_m) < tol, f"s_m mismatch: {rel_err(s_m, r_m)}"
    assert rel_err(s_out, r_out) < tol, f"s_out mismatch: {rel_err(s_out, r_out)}"
    assert rel_err(v_m, r_vm) < tol, f"v_m mismatch: {rel_err(v_m, r_vm)}"

    print("KERNEL_OK")
</pallas_src>

<mosaic_0001>
module attributes {stable_mosaic.version = 11 : i64} {
  func.func @_phi_attn_kernel(%arg0: i32, %arg1: memref<32x128xf32, #tpu.memory_space<vmem>>, %arg2: memref<32x32xf32, #tpu.memory_space<vmem>>, %arg3: memref<128x512xbf16, #tpu.memory_space<vmem>>, %arg4: memref<1x512xf32, #tpu.memory_space<vmem>>, %arg5: memref<32x128xbf16, #tpu.memory_space<vmem>>, %arg6: memref<32x128xf32, #tpu.memory_space<vmem>>) attributes {dimension_semantics = [#tpu.dimension_semantics<arbitrary>], iteration_bounds = array<i64: 1>, scalar_prefetch = 0 : i64, scratch_operands = 0 : i64, tpu.core_type = #tpu.core_type<tc>, window_params = [{pipeline_mode = #tpu.pipeline_mode<synchronous>, transform_indices = @transform_0, window_bounds = array<i64: 32, 128>}, {pipeline_mode = #tpu.pipeline_mode<synchronous>, transform_indices = @transform_1, window_bounds = array<i64: 32, 32>}, {pipeline_mode = #tpu.pipeline_mode<synchronous>, transform_indices = @transform_2, window_bounds = array<i64: 128, 512>}, {pipeline_mode = #tpu.pipeline_mode<synchronous>, transform_indices = @transform_3, window_bounds = array<i64: 1, 512>}, {pipeline_mode = #tpu.pipeline_mode<synchronous>, transform_indices = @transform_4, window_bounds = array<i64: 32, 128>}, {pipeline_mode = #tpu.pipeline_mode<synchronous>, transform_indices = @transform_5, window_bounds = array<i64: 32, 128>}]} {
    %c0 = arith.constant 0 : index
    %c0_0 = arith.constant 0 : index
    %0 = vector.load %arg1[%c0, %c0_0] : memref<32x128xf32, #tpu.memory_space<vmem>>, vector<32x128xf32>
    %1 = arith.truncf %0 : vector<32x128xf32> to vector<32x128xbf16>
    %c0_1 = arith.constant 0 : index
    %c0_2 = arith.constant 0 : index
    %2 = vector.load %arg3[%c0_1, %c0_2] : memref<128x512xbf16, #tpu.memory_space<vmem>>, vector<128x512xbf16>
    %cst = arith.constant dense<0.000000e+00> : vector<32x512xf32>
    %3 = tpu.matmul %1, %2, %cst {dimension_numbers = #tpu.dot_dimension_numbers<[1], [0], [0], [1], [0, 0, 1, 1], [], []>} : vector<32x128xbf16>, vector<128x512xbf16>, vector<32x512xf32> -> vector<32x512xf32>
    %c0_3 = arith.constant 0 : index
    %c0_4 = arith.constant 0 : index
    %4 = vector.load %arg4[%c0_3, %c0_4] : memref<1x512xf32, #tpu.memory_space<vmem>>, vector<1x512xf32>
    %5 = vector.broadcast %4 : vector<1x512xf32> to vector<32x512xf32>
    %6 = arith.addf %3, %5 : vector<32x512xf32>
    %7 = vector.extract_strided_slice %6 {offsets = [0, 0], sizes = [32, 128], strides = [1, 1]} : vector<32x512xf32> to vector<32x128xf32>
    %8 = arith.negf %7 : vector<32x128xf32>
    %9 = math.exp %8 : vector<32x128xf32>
    %cst_5 = arith.constant 1.000000e+00 : f32
    %10 = vector.broadcast %cst_5 : f32 to vector<32x128xf32>
    %11 = arith.addf %10, %9 : vector<32x128xf32>
    %12 = arith.divf %10, %11 : vector<32x128xf32>
    %13 = arith.mulf %7, %12 : vector<32x128xf32>
    %14 = arith.truncf %13 : vector<32x128xf32> to vector<32x128xbf16>
    %c0_6 = arith.constant 0 : index
    %c0_7 = arith.constant 0 : index
    %15 = vector.load %arg5[%c0_6, %c0_7] : memref<32x128xbf16, #tpu.memory_space<vmem>>, vector<32x128xbf16>
    tpu.vector_store %arg5[%c0_6, %c0_7], %14 {strides = array<i32>} : memref<32x128xbf16, #tpu.memory_space<vmem>>, vector<32x128xbf16>,
    %16 = vector.extract_strided_slice %6 {offsets = [0, 128], sizes = [32, 128], strides = [1, 1]} : vector<32x512xf32> to vector<32x128xf32>
    %17 = vector.extract_strided_slice %6 {offsets = [0, 256], sizes = [32, 128], strides = [1, 1]} : vector<32x512xf32> to vector<32x128xf32>
    %18 = vector.extract_strided_slice %6 {offsets = [0, 384], sizes = [32, 128], strides = [1, 1]} : vector<32x512xf32> to vector<32x128xf32>
    %c0_8 = arith.constant 0 : index
    %c0_9 = arith.constant 0 : index
    %19 = vector.load %arg2[%c0_8, %c0_9] : memref<32x32xf32, #tpu.memory_space<vmem>>, vector<32x32xf32>
    %cst_10 = arith.constant 0.000000e+00 : f32
    %20 = vector.broadcast %cst_10 : f32 to vector<32x32xf32>
    %21 = arith.cmpf ogt, %19, %20 : vector<32x32xf32>
    %22 = vector.extract_strided_slice %16 {offsets = [0, 0], sizes = [32, 32], strides = [1, 1]} : vector<32x128xf32> to vector<32x32xf32>
    %23 = vector.extract_strided_slice %17 {offsets = [0, 0], sizes = [32, 32], strides = [1, 1]} : vector<32x128xf32> to vector<32x32xf32>
    %24 = vector.extract_strided_slice %18 {offsets = [0, 0], sizes = [32, 32], strides = [1, 1]} : vector<32x128xf32> to vector<32x32xf32>
    "tpu.trace_start"() <{level = 10 : i32, message = "qd,kd->qk"}> : () -> ()
    %cst_11 = arith.constant dense<0.000000e+00> : vector<32x32xf32>
    %25 = tpu.matmul %22, %23, %cst_11 {dimension_numbers = #tpu.dot_dimension_numbers<[1], [1], [0], [0], [0, 0, 1, 0], [], []>} : vector<32x32xf32>, vector<32x32xf32>, vector<32x32xf32> -> vector<32x32xf32>
    "tpu.trace_stop"() : () -> ()
    %cst_12 = arith.constant 1.250000e-01 : f32
    %26 = vector.broadcast %cst_12 : f32 to vector<32x32xf32>
    %27 = arith.mulf %25, %26 : vector<32x32xf32>
    %cst_13 = arith.constant -1.000000e+30 : f32
    %28 = vector.broadcast %cst_13 : f32 to vector<32x32xf32>
    %29 = arith.select %21, %28, %27 : vector<32x32xi1>, vector<32x32xf32>
    %cst_14 = arith.constant dense<0xFF800000> : vector<32xf32>
    %30 = vector.multi_reduction <maximumf>, %29, %cst_14 [1] : vector<32x32xf32> to vector<32xf32>
    %31 = vector.shape_cast %30 : vector<32xf32> to vector<32x1xf32>
    %32 = vector.broadcast %31 : vector<32x1xf32> to vector<32x32xf32>
    %33 = arith.subf %29, %32 : vector<32x32xf32>
    %34 = math.exp %33 : vector<32x32xf32>
    %cst_15 = arith.constant dense<0.000000e+00> : vector<32xf32>
    %35 = vector.multi_reduction <add>, %34, %cst_15 [1] : vector<32x32xf32> to vector<32xf32>
    %36 = vector.shape_cast %35 : vector<32xf32> to vector<32x1xf32>
    %37 = tpu.reciprocal %36 {approx = true} : vector<32x1xf32> -> vector<32x1xf32>
    %38 = vector.broadcast %37 : vector<32x1xf32> to vector<32x32xf32>
    %39 = arith.mulf %34, %38 : vector<32x32xf32>
    %cst_16 = arith.constant dense<0.000000e+00> : vector<32x32xf32>
    %40 = tpu.matmul %39, %24, %cst_16 {dimension_numbers = #tpu.dot_dimension_numbers<[1], [0], [0], [1], [0, 0, 1, 1], [], []>} : vector<32x32xf32>, vector<32x32xf32>, vector<32x32xf32> -> vector<32x32xf32>
    %41 = vector.extract_strided_slice %16 {offsets = [0, 32], sizes = [32, 32], strides = [1, 1]} : vector<32x128xf32> to vector<32x32xf32>
    %42 = vector.extract_strided_slice %17 {offsets = [0, 32], sizes = [32, 32], strides = [1, 1]} : vector<32x128xf32> to vector<32x32xf32>
    %43 = vector.extract_strided_slice %18 {offsets = [0, 32], sizes = [32, 32], strides = [1, 1]} : vector<32x128xf32> to vector<32x32xf32>
    "tpu.trace_start"() <{level = 10 : i32, message = "qd,kd->qk"}> : () -> ()
    %cst_17 = arith.constant dense<0.000000e+00> : vector<32x32xf32>
    %44 = tpu.matmul %41, %42, %cst_17 {dimension_numbers = #tpu.dot_dimension_numbers<[1], [1], [0], [0], [0, 0, 1, 0], [], []>} : vector<32x32xf32>, vector<32x32xf32>, vector<32x32xf32> -> vector<32x32xf32>
    "tpu.trace_stop"() : () -> ()
    %cst_18 = arith.constant 1.250000e-01 : f32
    %45 = vector.broadcast %cst_18 : f32 to vector<32x32xf32>
    %46 = arith.mulf %44, %45 : vector<32x32xf32>
    %cst_19 = arith.constant -1.000000e+30 : f32
    %47 = vector.broadcast %cst_19 : f32 to vector<32x32xf32>
    %48 = arith.select %21, %47, %46 : vector<32x32xi1>, vector<32x32xf32>
    %cst_20 = arith.constant dense<0xFF800000> : vector<32xf32>
    %49 = vector.multi_reduction <maximumf>, %48, %cst_20 [1] : vector<32x32xf32> to vector<32xf32>
    %50 = vector.shape_cast %49 : vector<32xf32> to vector<32x1xf32>
    %51 = vector.broadcast %50 : vector<32x1xf32> to vector<32x32xf32>
    %52 = arith.subf %48, %51 : vector<32x32xf32>
    %53 = math.exp %52 : vector<32x32xf32>
    %cst_21 = arith.constant dense<0.000000e+00> : vector<32xf32>
    %54 = vector.multi_reduction <add>, %53, %cst_21 [1] : vector<32x32xf32> to vector<32xf32>
    %55 = vector.shape_cast %54 : vector<32xf32> to vector<32x1xf32>
    %56 = tpu.reciprocal %55 {approx = true} : vector<32x1xf32> -> vector<32x1xf32>
    %57 = vector.broadcast %56 : vector<32x1xf32> to vector<32x32xf32>
    %58 = arith.mulf %53, %57 : vector<32x32xf32>
    %cst_22 = arith.constant dense<0.000000e+00> : vector<32x32xf32>
    %59 = tpu.matmul %58, %43, %cst_22 {dimension_numbers = #tpu.dot_dimension_numbers<[1], [0], [0], [1], [0, 0, 1, 1], [], []>} : vector<32x32xf32>, vector<32x32xf32>, vector<32x32xf32> -> vector<32x32xf32>
    %60 = vector.extract_strided_slice %16 {offsets = [0, 64], sizes = [32, 32], strides = [1, 1]} : vector<32x128xf32> to vector<32x32xf32>
    %61 = vector.extract_strided_slice %17 {offsets = [0, 64], sizes = [32, 32], strides = [1, 1]} : vector<32x128xf32> to vector<32x32xf32>
    %62 = vector.extract_strided_slice %18 {offsets = [0, 64], sizes = [32, 32], strides = [1, 1]} : vector<32x128xf32> to vector<32x32xf32>
    "tpu.trace_start"() <{level = 10 : i32, message = "qd,kd->qk"}> : () -> ()
    %cst_23 = arith.constant dense<0.000000e+00> : vector<32x32xf32>
    %63 = tpu.matmul %60, %61, %cst_23 {dimension_numbers = #tpu.dot_dimension_numbers<[1], [1], [0], [0], [0, 0, 1, 0], [], []>} : vector<32x32xf32>, vector<32x32xf32>, vector<32x32xf32> -> vector<32x32xf32>
    "tpu.trace_stop"() : () -> ()
    %cst_24 = arith.constant 1.250000e-01 : f32
    %64 = vector.broadcast %cst_24 : f32 to vector<32x32xf32>
    %65 = arith.mulf %63, %64 : vector<32x32xf32>
    %cst_25 = arith.constant -1.000000e+30 : f32
    %66 = vector.broadcast %cst_25 : f32 to vector<32x32xf32>
    %67 = arith.select %21, %66, %65 : vector<32x32xi1>, vector<32x32xf32>
    %cst_26 = arith.constant dense<0xFF800000> : vector<32xf32>
    %68 = vector.multi_reduction <maximumf>, %67, %cst_26 [1] : vector<32x32xf32> to vector<32xf32>
    %69 = vector.shape_cast %68 : vector<32xf32> to vector<32x1xf32>
    %70 = vector.broadcast %69 : vector<32x1xf32> to vector<32x32xf32>
    %71 = arith.subf %67, %70 : vector<32x32xf32>
    %72 = math.exp %71 : vector<32x32xf32>
    %cst_27 = arith.constant dense<0.000000e+00> : vector<32xf32>
    %73 = vector.multi_reduction <add>, %72, %cst_27 [1] : vector<32x32xf32> to vector<32xf32>
    %74 = vector.shape_cast %73 : vector<32xf32> to vector<32x1xf32>
    %75 = tpu.reciprocal %74 {approx = true} : vector<32x1xf32> -> vector<32x1xf32>
    %76 = vector.broadcast %75 : vector<32x1xf32> to vector<32x32xf32>
    %77 = arith.mulf %72, %76 : vector<32x32xf32>
    %cst_28 = arith.constant dense<0.000000e+00> : vector<32x32xf32>
    %78 = tpu.matmul %77, %62, %cst_28 {dimension_numbers = #tpu.dot_dimension_numbers<[1], [0], [0], [1], [0, 0, 1, 1], [], []>} : vector<32x32xf32>, vector<32x32xf32>, vector<32x32xf32> -> vector<32x32xf32>
    %79 = vector.extract_strided_slice %16 {offsets = [0, 96], sizes = [32, 32], strides = [1, 1]} : vector<32x128xf32> to vector<32x32xf32>
    %80 = vector.extract_strided_slice %17 {offsets = [0, 96], sizes = [32, 32], strides = [1, 1]} : vector<32x128xf32> to vector<32x32xf32>
    %81 = vector.extract_strided_slice %18 {offsets = [0, 96], sizes = [32, 32], strides = [1, 1]} : vector<32x128xf32> to vector<32x32xf32>
    "tpu.trace_start"() <{level = 10 : i32, message = "qd,kd->qk"}> : () -> ()
    %cst_29 = arith.constant dense<0.000000e+00> : vector<32x32xf32>
    %82 = tpu.matmul %79, %80, %cst_29 {dimension_numbers = #tpu.dot_dimension_numbers<[1], [1], [0], [0], [0, 0, 1, 0], [], []>} : vector<32x32xf32>, vector<32x32xf32>, vector<32x32xf32> -> vector<32x32xf32>
    "tpu.trace_stop"() : () -> ()
    %cst_30 = arith.constant 1.250000e-01 : f32
    %83 = vector.broadcast %cst_30 : f32 to vector<32x32xf32>
    %84 = arith.mulf %82, %83 : vector<32x32xf32>
    %cst_31 = arith.constant -1.000000e+30 : f32
    %85 = vector.broadcast %cst_31 : f32 to vector<32x32xf32>
    %86 = arith.select %21, %85, %84 : vector<32x32xi1>, vector<32x32xf32>
    %cst_32 = arith.constant dense<0xFF800000> : vector<32xf32>
    %87 = vector.multi_reduction <maximumf>, %86, %cst_32 [1] : vector<32x32xf32> to vector<32xf32>
    %88 = vector.shape_cast %87 : vector<32xf32> to vector<32x1xf32>
    %89 = vector.broadcast %88 : vector<32x1xf32> to vector<32x32xf32>
    %90 = arith.subf %86, %89 : vector<32x32xf32>
    %91 = math.exp %90 : vector<32x32xf32>
    %cst_33 = arith.constant dense<0.000000e+00> : vector<32xf32>
    %92 = vector.multi_reduction <add>, %91, %cst_33 [1] : vector<32x32xf32> to vector<32xf32>
    %93 = vector.shape_cast %92 : vector<32xf32> to vector<32x1xf32>
    %94 = tpu.reciprocal %93 {approx = true} : vector<32x1xf32> -> vector<32x1xf32>
    %95 = vector.broadcast %94 : vector<32x1xf32> to vector<32x32xf32>
    %96 = arith.mulf %91, %95 : vector<32x32xf32>
    %cst_34 = arith.constant dense<0.000000e+00> : vector<32x32xf32>
    %97 = tpu.matmul %96, %81, %cst_34 {dimension_numbers = #tpu.dot_dimension_numbers<[1], [0], [0], [1], [0, 0, 1, 1], [], []>} : vector<32x32xf32>, vector<32x32xf32>, vector<32x32xf32> -> vector<32x32xf32>
    %98 = tpu.concatenate %40, %59, %78, %97 in 1 : vector<32x32xf32>, vector<32x32xf32>, vector<32x32xf32>, vector<32x32xf32> -> vector<32x128xf32>
    %c0_35 = arith.constant 0 : index
    %c0_36 = arith.constant 0 : index
    %99 = vector.load %arg6[%c0_35, %c0_36] : memref<32x128xf32, #tpu.memory_space<vmem>>, vector<32x128xf32>
    tpu.vector_store %arg6[%c0_35, %c0_36], %98 {strides = array<i32>} : memref<32x128xf32, #tpu.memory_space<vmem>>, vector<32x128xf32>,
    return
  }
  func.func @transform_0(%arg0: i32) -> (i32, i32) {
    %c0_i32 = arith.constant 0 : i32
    %c0_i32_0 = arith.constant 0 : i32
    %c0_i32_1 = arith.constant 0 : i32
    return %c0_i32, %c0_i32_0 : i32, i32
  }
  func.func @transform_1(%arg0: i32) -> (i32, i32) {
    %c0_i32 = arith.constant 0 : i32
    %c0_i32_0 = arith.constant 0 : i32
    %c0_i32_1 = arith.constant 0 : i32
    return %c0_i32, %c0_i32_0 : i32, i32
  }
  func.func @transform_2(%arg0: i32) -> (i32, i32) {
    %c0_i32 = arith.constant 0 : i32
    %c0_i32_0 = arith.constant 0 : i32
    %c0_i32_1 = arith.constant 0 : i32
    return %c0_i32, %c0_i32_0 : i32, i32
  }
  func.func @transform_3(%arg0: i32) -> (i32, i32) {
    %c0_i32 = arith.constant 0 : i32
    %c0_i32_0 = arith.constant 0 : i32
    %c0_i32_1 = arith.constant 0 : i32
    return %c0_i32, %c0_i32_0 : i32, i32
  }
  func.func @transform_4(%arg0: i32) -> (i32, i32) {
    %c0_i32 = arith.constant 0 : i32
    %c0_i32_0 = arith.constant 0 : i32
    %c0_i32_1 = arith.constant 0 : i32
    return %c0_i32, %c0_i32_0 : i32, i32
  }
  func.func @transform_5(%arg0: i32) -> (i32, i32) {
    %c0_i32 = arith.constant 0 : i32
    %c0_i32_0 = arith.constant 0 : i32
    %c0_i32_1 = arith.constant 0 : i32
    return %c0_i32, %c0_i32_0 : i32, i32
  }
}

module attributes {stable_mosaic.version = 11 : i64} {
  func.func @_interaction_kernel(%arg0: i32, %arg1: memref<16x8x16xf32, #tpu.memory_space<vmem>>, %arg2: memref<16x128xbf16, #tpu.memory_space<vmem>>, %arg3: memref<16x8x128xbf16, #tpu.memory_space<vmem>>, %arg4: memref<16x8xf32, #tpu.memory_space<vmem>>, %arg5: memref<16x8xf32, #tpu.memory_space<vmem>>, %arg6: memref<16x8xf32, #tpu.memory_space<vmem>>, %arg7: memref<16x8xf32, #tpu.memory_space<vmem>>, %arg8: memref<16x128xf32, #tpu.memory_space<vmem>>, %arg9: memref<16x128xf32, #tpu.memory_space<vmem>>, %arg10: memref<16x128xf32, #tpu.memory_space<vmem>>, %arg11: memref<16x128xf32, #tpu.memory_space<vmem>>, %arg12: memref<16x128xf32, #tpu.memory_space<vmem>>, %arg13: memref<16x128xf32, #tpu.memory_space<vmem>>, %arg14: memref<16x128xbf16, #tpu.memory_space<vmem>>, %arg15: memref<1x128xf32, #tpu.memory_space<vmem>>, %arg16: memref<16x128xbf16, #tpu.memory_space<vmem>>, %arg17: memref<1x128xf32, #tpu.memory_space<vmem>>, %arg18: memref<256x384xbf16, #tpu.memory_space<vmem>>, %arg19: memref<1x384xf32, #tpu.memory_space<vmem>>, %arg20: memref<128x384xbf16, #tpu.memory_space<vmem>>, %arg21: memref<1x384xf32, #tpu.memory_space<vmem>>, %arg22: memref<128x384xbf16, #tpu.memory_space<vmem>>, %arg23: memref<128x128xbf16, #tpu.memory_space<vmem>>, %arg24: memref<1x128xf32, #tpu.memory_space<vmem>>, %arg25: memref<128x128xbf16, #tpu.memory_space<vmem>>, %arg26: memref<1x128xf32, #tpu.memory_space<vmem>>, %arg27: memref<16x128xf32, #tpu.memory_space<vmem>>, %arg28: memref<16x128xf32, #tpu.memory_space<vmem>>, %arg29: memref<16x128xf32, #tpu.memory_space<vmem>>, %arg30: memref<16x128xf32, #tpu.memory_space<vmem>>, %arg31: memref<16x128xf32, #tpu.memory_space<vmem>>) attributes {dimension_semantics = [#tpu.dimension_semantics<parallel>], iteration_bounds = array<i64: 2>, scalar_prefetch = 0 : i64, scratch_operands = 0 : i64, tpu.core_type = #tpu.core_type<tc>, window_params = [{transform_indices = @transform_0, window_bounds = array<i64: 16, 8, 16>}, {transform_indices = @transform_1, window_bounds = array<i64: 16, 128>}, {transform_indices = @transform_2, window_bounds = array<i64: 16, 8, 128>}, {transform_indices = @transform_3, window_bounds = array<i64: 16, 8>}, {transform_indices = @transform_4, window_bounds = array<i64: 16, 8>}, {transform_indices = @transform_5, window_bounds = array<i64: 16, 8>}, {transform_indices = @transform_6, window_bounds = array<i64: 16, 8>}, {transform_indices = @transform_7, window_bounds = array<i64: 16, 128>}, {transform_indices = @transform_8, window_bounds = array<i64: 16, 128>}, {transform_indices = @transform_9, window_bounds = array<i64: 16, 128>}, {transform_indices = @transform_10, window_bounds = array<i64: 16, 128>}, {transform_indices = @transform_11, window_bounds = array<i64: 16, 128>}, {transform_indices = @transform_12, window_bounds = array<i64: 16, 128>}, {pipeline_mode = #tpu.pipeline_mode<synchronous>, transform_indices = @transform_13, window_bounds = array<i64: 16, 128>}, {pipeline_mode = #tpu.pipeline_mode<synchronous>, transform_indices = @transform_14, window_bounds = array<i64: 1, 128>}, {pipeline_mode = #tpu.pipeline_mode<synchronous>, transform_indices = @transform_15, window_bounds = array<i64: 16, 128>}, {pipeline_mode = #tpu.pipeline_mode<synchronous>, transform_indices = @transform_16, window_bounds = array<i64: 1, 128>}, {pipeline_mode = #tpu.pipeline_mode<synchronous>, transform_indices = @transform_17, window_bounds = array<i64: 256, 384>}, {pipeline_mode = #tpu.pipeline_mode<synchronous>, transform_indices = @transform_18, window_bounds = array<i64: 1, 384>}, {pipeline_mode = #tpu.pipeline_mode<synchronous>, transform_indices = @transform_19, window_bounds = array<i64: 128, 384>}, {pipeline_mode = #tpu.pipeline_mode<synchronous>, transform_indices = @transform_20, window_bounds = array<i64: 1, 384>}, {pipeline_mode = #tpu.pipeline_mode<synchronous>, transform_indices = @transform_21, window_bounds = array<i64: 128, 384>}, {pipeline_mode = #tpu.pipeline_mode<synchronous>, transform_indices = @transform_22, window_bounds = array<i64: 128, 128>}, {pipeline_mode = #tpu.pipeline_mode<synchronous>, transform_indices = @transform_23, window_bounds = array<i64: 1, 128>}, {pipeline_mode = #tpu.pipeline_mode<synchronous>, transform_indices = @transform_24, window_bounds = array<i64: 128, 128>}, {pipeline_mode = #tpu.pipeline_mode<synchronous>, transform_indices = @transform_25, window_bounds = array<i64: 1, 128>}, {transform_indices = @transform_26, window_bounds = array<i64: 16, 128>}, {transform_indices = @transform_27, window_bounds = array<i64: 16, 128>}, {transform_indices = @transform_28, window_bounds = array<i64: 16, 128>}, {transform_indices = @transform_29, window_bounds = array<i64: 16, 128>}, {transform_indices = @transform_30, window_bounds = array<i64: 16, 128>}]} {
    %c0 = arith.constant 0 : index
    %c0_0 = arith.constant 0 : index
    %c0_1 = arith.constant 0 : index
    %0 = vector.load %arg1[%c0, %c0_0, %c0_1] : memref<16x8x16xf32, #tpu.memory_space<vmem>>, vector<16x8x16xf32>
    %1 = vector.shape_cast %0 : vector<16x8x16xf32> to vector<128x16xf32>
    %2 = arith.truncf %1 : vector<128x16xf32> to vector<128x16xbf16>
    %c0_2 = arith.constant 0 : index
    %c0_3 = arith.constant 0 : index
    %3 = vector.load %arg14[%c0_2, %c0_3] : memref<16x128xbf16, #tpu.memory_space<vmem>>, vector<16x128xbf16>
    %cst = arith.constant dense<0.000000e+00> : vector<128x128xf32>
    %4 = tpu.matmul %2, %3, %cst {dimension_numbers = #tpu.dot_dimension_numbers<[1], [0], [0], [1], [0, 0, 1, 1], [], []>} : vector<128x16xbf16>, vector<16x128xbf16>, vector<128x128xf32> -> vector<128x128xf32>
    %c0_4 = arith.constant 0 : index
    %c0_5 = arith.constant 0 : index
    %5 = vector.load %arg15[%c0_4, %c0_5] : memref<1x128xf32, #tpu.memory_space<vmem>>, vector<1x128xf32>
    %6 = vector.broadcast %5 : vector<1x128xf32> to vector<128x128xf32>
    %7 = arith.addf %4, %6 : vector<128x128xf32>
    %8 = arith.negf %7 : vector<128x128xf32>
    %9 = math.exp %8 : vector<128x128xf32>
    %cst_6 = arith.constant 1.000000e+00 : f32
    %10 = vector.broadcast %cst_6 : f32 to vector<128x128xf32>
    %11 = arith.addf %10, %9 : vector<128x128xf32>
    %12 = arith.divf %10, %11 : vector<128x128xf32>
    %13 = arith.mulf %7, %12 : vector<128x128xf32>
    %14 = vector.shape_cast %13 : vector<128x128xf32> to vector<16x8x128xf32>
    %c0_7 = arith.constant 0 : index
    %c0_8 = arith.constant 0 : index
    %15 = vector.load %arg16[%c0_7, %c0_8] : memref<16x128xbf16, #tpu.memory_space<vmem>>, vector<16x128xbf16>
    %cst_9 = arith.constant dense<0.000000e+00> : vector<128x128xf32>
    %16 = tpu.matmul %2, %15, %cst_9 {dimension_numbers = #tpu.dot_dimension_numbers<[1], [0], [0], [1], [0, 0, 1, 1], [], []>} : vector<128x16xbf16>, vector<16x128xbf16>, vector<128x128xf32> -> vector<128x128xf32>
    %c0_10 = arith.constant 0 : index
    %c0_11 = arith.constant 0 : index
    %17 = vector.load %arg17[%c0_10, %c0_11] : memref<1x128xf32, #tpu.memory_space<vmem>>, vector<1x128xf32>
    %18 = vector.broadcast %17 : vector<1x128xf32> to vector<128x128xf32>
    %19 = arith.addf %16, %18 : vector<128x128xf32>
    %20 = arith.negf %19 : vector<128x128xf32>
    %21 = math.exp %20 : vector<128x128xf32>
    %cst_12 = arith.constant 1.000000e+00 : f32
    %22 = vector.broadcast %cst_12 : f32 to vector<128x128xf32>
    %23 = arith.addf %22, %21 : vector<128x128xf32>
    %24 = arith.divf %22, %23 : vector<128x128xf32>
    %25 = arith.mulf %19, %24 : vector<128x128xf32>
    %26 = vector.shape_cast %25 : vector<128x128xf32> to vector<16x8x128xf32>
    %c0_13 = arith.constant 0 : index
    %c0_14 = arith.constant 0 : index
    %27 = vector.load %arg4[%c0_13, %c0_14] : memref<16x8xf32, #tpu.memory_space<vmem>>, vector<16x8xf32>
    %28 = vector.shape_cast %27 : vector<16x8xf32> to vector<16x8x1xf32>
    %c0_15 = arith.constant 0 : index
    %c0_16 = arith.constant 0 : index
    %29 = vector.load %arg2[%c0_15, %c0_16] : memref<16x128xbf16, #tpu.memory_space<vmem>>, vector<16x128xbf16>
    %30 = arith.extf %29 : vector<16x128xbf16> to vector<16x128xf32>
    %31 = vector.shape_cast %30 : vector<16x128xf32> to vector<16x1x128xf32>
    %32 = vector.broadcast %31 : vector<16x1x128xf32> to vector<16x8x128xf32>
    %33 = arith.mulf %32, %14 : vector<16x8x128xf32>
    %34 = vector.broadcast %28 : vector<16x8x1xf32> to vector<16x8x128xf32>
    %35 = arith.mulf %33, %34 : vector<16x8x128xf32>
    %36 = vector.shape_cast %35 : vector<16x8x128xf32> to vector<128x128xf32>
    %c0_17 = arith.constant 0 : index
    %c0_18 = arith.constant 0 : index
    %c0_19 = arith.constant 0 : index
    %37 = vector.load %arg3[%c0_17, %c0_18, %c0_19] : memref<16x8x128xbf16, #tpu.memory_space<vmem>>, vector<16x8x128xbf16>
    %38 = arith.extf %37 : vector<16x8x128xbf16> to vector<16x8x128xf32>
    %39 = arith.mulf %38, %26 : vector<16x8x128xf32>
    %40 = vector.broadcast %28 : vector<16x8x1xf32> to vector<16x8x128xf32>
    %41 = arith.mulf %39, %40 : vector<16x8x128xf32>
    %42 = vector.shape_cast %41 : vector<16x8x128xf32> to vector<128x128xf32>
    %43 = arith.truncf %36 : vector<128x128xf32> to vector<128x128xbf16>
    %44 = arith.truncf %42 : vector<128x128xf32> to vector<128x128xbf16>
    %45 = tpu.concatenate %43, %44 in 1 : vector<128x128xbf16>, vector<128x128xbf16> -> vector<128x256xbf16>
    %c0_20 = arith.constant 0 : index
    %c0_21 = arith.constant 0 : index
    %46 = vector.load %arg18[%c0_20, %c0_21] : memref<256x384xbf16, #tpu.memory_space<vmem>>, vector<256x384xbf16>
    %cst_22 = arith.constant dense<0.000000e+00> : vector<128x384xf32>
    %47 = tpu.matmul %45, %46, %cst_22 {dimension_numbers = #tpu.dot_dimension_numbers<[1], [0], [0], [1], [0, 0, 1, 1], [], []>} : vector<128x256xbf16>, vector<256x384xbf16>, vector<128x384xf32> -> vector<128x384xf32>
    %c0_23 = arith.constant 0 : index
    %c0_24 = arith.constant 0 : index
    %48 = vector.load %arg19[%c0_23, %c0_24] : memref<1x384xf32, #tpu.memory_space<vmem>>, vector<1x384xf32>
    %49 = vector.broadcast %48 : vector<1x384xf32> to vector<128x384xf32>
    %50 = arith.addf %47, %49 : vector<128x384xf32>
    %51 = vector.shape_cast %50 : vector<128x384xf32> to vector<16x8x384xf32>
    %52 = vector.broadcast %28 : vector<16x8x1xf32> to vector<16x8x384xf32>
    %53 = arith.mulf %51, %52 : vector<16x8x384xf32>
    %54 = vector.extract_strided_slice %53 {offsets = [0, 0, 0], sizes = [16, 8, 128], strides = [1, 1, 1]} : vector<16x8x384xf32> to vector<16x8x128xf32>
    %cst_25 = arith.constant dense<0.000000e+00> : vector<16x128xf32>
    %55 = vector.multi_reduction <add>, %54, %cst_25 [1] : vector<16x8x128xf32> to vector<16x128xf32>
    %56 = vector.extract_strided_slice %53 {offsets = [0, 0, 128], sizes = [16, 8, 128], strides = [1, 1, 1]} : vector<16x8x384xf32> to vector<16x8x128xf32>
    %cst_26 = arith.constant dense<0.000000e+00> : vector<16x128xf32>
    %57 = vector.multi_reduction <add>, %56, %cst_26 [1] : vector<16x8x128xf32> to vector<16x128xf32>
    %58 = vector.extract_strided_slice %53 {offsets = [0, 0, 256], sizes = [16, 8, 128], strides = [1, 1, 1]} : vector<16x8x384xf32> to vector<16x8x128xf32>
    %c0_27 = arith.constant 0 : index
    %c0_28 = arith.constant 0 : index
    %59 = vector.load %arg8[%c0_27, %c0_28] : memref<16x128xf32, #tpu.memory_space<vmem>>, vector<16x128xf32>
    %c0_29 = arith.constant 0 : index
    %c0_30 = arith.constant 0 : index
    %60 = vector.load %arg9[%c0_29, %c0_30] : memref<16x128xf32, #tpu.memory_space<vmem>>, vector<16x128xf32>
    %61 = arith.addf %59, %60 : vector<16x128xf32>
    %62 = arith.addf %61, %55 : vector<16x128xf32>
    %63 = arith.truncf %62 : vector<16x128xf32> to vector<16x128xbf16>
    %c0_31 = arith.constant 0 : index
    %c0_32 = arith.constant 0 : index
    %64 = vector.load %arg20[%c0_31, %c0_32] : memref<128x384xbf16, #tpu.memory_space<vmem>>, vector<128x384xbf16>
    %cst_33 = arith.constant dense<0.000000e+00> : vector<16x384xf32>
    %65 = tpu.matmul %63, %64, %cst_33 {dimension_numbers = #tpu.dot_dimension_numbers<[1], [0], [0], [1], [0, 0, 1, 1], [], []>} : vector<16x128xbf16>, vector<128x384xbf16>, vector<16x384xf32> -> vector<16x384xf32>
    %c0_34 = arith.constant 0 : index
    %c0_35 = arith.constant 0 : index
    %66 = vector.load %arg21[%c0_34, %c0_35] : memref<1x384xf32, #tpu.memory_space<vmem>>, vector<1x384xf32>
    %67 = vector.broadcast %66 : vector<1x384xf32> to vector<16x384xf32>
    %68 = arith.addf %65, %67 : vector<16x384xf32>
    %69 = vector.extract_strided_slice %68 {offsets = [0, 0], sizes = [16, 128], strides = [1, 1]} : vector<16x384xf32> to vector<16x128xf32>
    %70 = vector.extract_strided_slice %68 {offsets = [0, 128], sizes = [16, 128], strides = [1, 1]} : vector<16x384xf32> to vector<16x128xf32>
    %71 = vector.extract_strided_slice %68 {offsets = [0, 256], sizes = [16, 128], strides = [1, 1]} : vector<16x384xf32> to vector<16x128xf32>
    %c0_36 = arith.constant 0 : index
    %c0_37 = arith.constant 0 : index
    %72 = vector.load %arg10[%c0_36, %c0_37] : memref<16x128xf32, #tpu.memory_space<vmem>>, vector<16x128xf32>
    %c0_38 = arith.constant 0 : index
    %c0_39 = arith.constant 0 : index
    %73 = vector.load %arg11[%c0_38, %c0_39] : memref<16x128xf32, #tpu.memory_space<vmem>>, vector<16x128xf32>
    %c0_40 = arith.constant 0 : index
    %c0_41 = arith.constant 0 : index
    %74 = vector.load %arg12[%c0_40, %c0_41] : memref<16x128xf32, #tpu.memory_space<vmem>>, vector<16x128xf32>
    %75 = tpu.concatenate %72, %73, %74 in 0 : vector<16x128xf32>, vector<16x128xf32>, vector<16x128xf32> -> vector<48x128xf32>
    %76 = arith.truncf %75 : vector<48x128xf32> to vector<48x128xbf16>
    %c0_42 = arith.constant 0 : index
    %c0_43 = arith.constant 0 : index
    %77 = vector.load %arg22[%c0_42, %c0_43] : memref<128x384xbf16, #tpu.memory_space<vmem>>, vector<128x384xbf16>
    %cst_44 = arith.constant dense<0.000000e+00> : vector<48x384xf32>
    %78 = tpu.matmul %76, %77, %cst_44 {dimension_numbers = #tpu.dot_dimension_numbers<[1], [0], [0], [1], [0, 0, 1, 1], [], []>} : vector<48x128xbf16>, vector<128x384xbf16>, vector<48x384xf32> -> vector<48x384xf32>
    %79 = vector.extract_strided_slice %78 {offsets = [0, 0], sizes = [48, 128], strides = [1, 1]} : vector<48x384xf32> to vector<48x128xf32>
    %80 = vector.extract_strided_slice %78 {offsets = [0, 128], sizes = [48, 128], strides = [1, 1]} : vector<48x384xf32> to vector<48x128xf32>
    %81 = vector.extract_strided_slice %78 {offsets = [0, 256], sizes = [48, 128], strides = [1, 1]} : vector<48x384xf32> to vector<48x128xf32>
    %82 = arith.mulf %79, %80 : vector<48x128xf32>
    %83 = vector.extract_strided_slice %82 {offsets = [0, 0], sizes = [16, 128], strides = [1, 1]} : vector<48x128xf32> to vector<16x128xf32>
    %84 = vector.extract_strided_slice %82 {offsets = [16, 0], sizes = [16, 128], strides = [1, 1]} : vector<48x128xf32> to vector<16x128xf32>
    %85 = arith.addf %83, %84 : vector<16x128xf32>
    %86 = vector.extract_strided_slice %82 {offsets = [32, 0], sizes = [16, 128], strides = [1, 1]} : vector<48x128xf32> to vector<16x128xf32>
    %87 = arith.addf %85, %86 : vector<16x128xf32>
    %88 = arith.mulf %70, %87 : vector<16x128xf32>
    %89 = arith.addf %69, %88 : vector<16x128xf32>
    %c0_45 = arith.constant 0 : index
    %c0_46 = arith.constant 0 : index
    %90 = vector.load %arg27[%c0_45, %c0_46] : memref<16x128xf32, #tpu.memory_space<vmem>>, vector<16x128xf32>
    tpu.vector_store %arg27[%c0_45, %c0_46], %89 {strides = array<i32>} : memref<16x128xf32, #tpu.memory_space<vmem>>, vector<16x128xf32>,
    %91 = arith.truncf %89 : vector<16x128xf32> to vector<16x128xbf16>
    %c0_47 = arith.constant 0 : index
    %c0_48 = arith.constant 0 : index
    %92 = vector.load %arg23[%c0_47, %c0_48] : memref<128x128xbf16, #tpu.memory_space<vmem>>, vector<128x128xbf16>
    %cst_49 = arith.constant dense<0.000000e+00> : vector<16x128xf32>
    %93 = tpu.matmul %91, %92, %cst_49 {dimension_numbers = #tpu.dot_dimension_numbers<[1], [0], [0], [1], [0, 0, 1, 1], [], []>} : vector<16x128xbf16>, vector<128x128xbf16>, vector<16x128xf32> -> vector<16x128xf32>
    %c0_50 = arith.constant 0 : index
    %c0_51 = arith.constant 0 : index
    %94 = vector.load %arg24[%c0_50, %c0_51] : memref<1x128xf32, #tpu.memory_space<vmem>>, vector<1x128xf32>
    %95 = vector.broadcast %94 : vector<1x128xf32> to vector<16x128xf32>
    %96 = arith.addf %93, %95 : vector<16x128xf32>
    %97 = arith.negf %96 : vector<16x128xf32>
    %98 = math.exp %97 : vector<16x128xf32>
    %cst_52 = arith.constant 1.000000e+00 : f32
    %99 = vector.broadcast %cst_52 : f32 to vector<16x128xf32>
    %100 = arith.addf %99, %98 : vector<16x128xf32>
    %101 = arith.divf %99, %100 : vector<16x128xf32>
    %102 = arith.mulf %96, %101 : vector<16x128xf32>
    %103 = arith.truncf %102 : vector<16x128xf32> to vector<16x128xbf16>
    %c0_53 = arith.constant 0 : index
    %c0_54 = arith.constant 0 : index
    %104 = vector.load %arg25[%c0_53, %c0_54] : memref<128x128xbf16, #tpu.memory_space<vmem>>, vector<128x128xbf16>
    %cst_55 = arith.constant dense<0.000000e+00> : vector<16x128xf32>
    %105 = tpu.matmul %103, %104, %cst_55 {dimension_numbers = #tpu.dot_dimension_numbers<[1], [0], [0], [1], [0, 0, 1, 1], [], []>} : vector<16x128xbf16>, vector<128x128xbf16>, vector<16x128xf32> -> vector<16x128xf32>
    %c0_56 = arith.constant 0 : index
    %c0_57 = arith.constant 0 : index
    %106 = vector.load %arg26[%c0_56, %c0_57] : memref<1x128xf32, #tpu.memory_space<vmem>>, vector<1x128xf32>
    %107 = vector.broadcast %106 : vector<1x128xf32> to vector<16x128xf32>
    %108 = arith.addf %105, %107 : vector<16x128xf32>
    %109 = arith.addf %108, %89 : vector<16x128xf32>
    %c0_58 = arith.constant 0 : index
    %c0_59 = arith.constant 0 : index
    %110 = vector.load %arg13[%c0_58, %c0_59] : memref<16x128xf32, #tpu.memory_space<vmem>>, vector<16x128xf32>
    %111 = arith.addf %109, %110 : vector<16x128xf32>
    %c0_60 = arith.constant 0 : index
    %c0_61 = arith.constant 0 : index
    %112 = vector.load %arg28[%c0_60, %c0_61] : memref<16x128xf32, #tpu.memory_space<vmem>>, vector<16x128xf32>
    tpu.vector_store %arg28[%c0_60, %c0_61], %111 {strides = array<i32>} : memref<16x128xf32, #tpu.memory_space<vmem>>, vector<16x128xf32>,
    %c0_62 = arith.constant 0 : index
    %c0_63 = arith.constant 0 : index
    %113 = vector.load %arg5[%c0_62, %c0_63] : memref<16x8xf32, #tpu.memory_space<vmem>>, vector<16x8xf32>
    %114 = vector.shape_cast %113 : vector<16x8xf32> to vector<16x8x1xf32>
    %115 = vector.broadcast %114 : vector<16x8x1xf32> to vector<16x8x128xf32>
    %116 = arith.mulf %58, %115 : vector<16x8x128xf32>
    %cst_64 = arith.constant dense<0.000000e+00> : vector<16x128xf32>
    %117 = vector.multi_reduction <add>, %116, %cst_64 [1] : vector<16x8x128xf32> to vector<16x128xf32>
    %118 = vector.extract_strided_slice %81 {offsets = [0, 0], sizes = [16, 128], strides = [1, 1]} : vector<48x128xf32> to vector<16x128xf32>
    %119 = arith.mulf %71, %118 : vector<16x128xf32>
    %120 = arith.mulf %57, %72 : vector<16x128xf32>
    %121 = arith.addf %119, %120 : vector<16x128xf32>
    %122 = arith.addf %121, %117 : vector<16x128xf32>
    %c0_65 = arith.constant 0 : index
    %c0_66 = arith.constant 0 : index
    %123 = vector.load %arg29[%c0_65, %c0_66] : memref<16x128xf32, #tpu.memory_space<vmem>>, vector<16x128xf32>
    tpu.vector_store %arg29[%c0_65, %c0_66], %122 {strides = array<i32>} : memref<16x128xf32, #tpu.memory_space<vmem>>, vector<16x128xf32>,
    %c0_67 = arith.constant 0 : index
    %c0_68 = arith.constant 0 : index
    %124 = vector.load %arg6[%c0_67, %c0_68] : memref<16x8xf32, #tpu.memory_space<vmem>>, vector<16x8xf32>
    %125 = vector.shape_cast %124 : vector<16x8xf32> to vector<16x8x1xf32>
    %126 = vector.broadcast %125 : vector<16x8x1xf32> to vector<16x8x128xf32>
    %127 = arith.mulf %58, %126 : vector<16x8x128xf32>
    %cst_69 = arith.constant dense<0.000000e+00> : vector<16x128xf32>
    %128 = vector.multi_reduction <add>, %127, %cst_69 [1] : vector<16x8x128xf32> to vector<16x128xf32>
    %129 = vector.extract_strided_slice %81 {offsets = [16, 0], sizes = [16, 128], strides = [1, 1]} : vector<48x128xf32> to vector<16x128xf32>
    %130 = arith.mulf %71, %129 : vector<16x128xf32>
    %131 = arith.mulf %57, %73 : vector<16x128xf32>
    %132 = arith.addf %130, %131 : vector<16x128xf32>
    %133 = arith.addf %132, %128 : vector<16x128xf32>
    %c0_70 = arith.constant 0 : index
    %c0_71 = arith.constant 0 : index
    %134 = vector.load %arg30[%c0_70, %c0_71] : memref<16x128xf32, #tpu.memory_space<vmem>>, vector<16x128xf32>
    tpu.vector_store %arg30[%c0_70, %c0_71], %133 {strides = array<i32>} : memref<16x128xf32, #tpu.memory_space<vmem>>, vector<16x128xf32>,
    %c0_72 = arith.constant 0 : index
    %c0_73 = arith.constant 0 : index
    %135 = vector.load %arg7[%c0_72, %c0_73] : memref<16x8xf32, #tpu.memory_space<vmem>>, vector<16x8xf32>
    %136 = vector.shape_cast %135 : vector<16x8xf32> to vector<16x8x1xf32>
    %137 = vector.broadcast %136 : vector<16x8x1xf32> to vector<16x8x128xf32>
    %138 = arith.mulf %58, %137 : vector<16x8x128xf32>
    %cst_74 = arith.constant dense<0.000000e+00> : vector<16x128xf32>
    %139 = vector.multi_reduction <add>, %138, %cst_74 [1] : vector<16x8x128xf32> to vector<16x128xf32>
    %140 = vector.extract_strided_slice %81 {offsets = [32, 0], sizes = [16, 128], strides = [1, 1]} : vector<48x128xf32> to vector<16x128xf32>
    %141 = arith.mulf %71, %140 : vector<16x128xf32>
    %142 = arith.mulf %57, %74 : vector<16x128xf32>
    %143 = arith.addf %141, %142 : vector<16x128xf32>
    %144 = arith.addf %143, %139 : vector<16x128xf32>
    %c0_75 = arith.constant 0 : index
    %c0_76 = arith.constant 0 : index
    %145 = vector.load %arg31[%c0_75, %c0_76] : memref<16x128xf32, #tpu.memory_space<vmem>>, vector<16x128xf32>
    tpu.vector_store %arg31[%c0_75, %c0_76], %144 {strides = array<i32>} : memref<16x128xf32, #tpu.memory_space<vmem>>, vector<16x128xf32>,
    return
  }
  func.func @transform_0(%arg0: i32) -> (i32, i32, i32) {
    %c0_i32 = arith.constant 0 : i32
    %c0_i32_0 = arith.constant 0 : i32
    %c0_i32_1 = arith.constant 0 : i32
    return %arg0, %c0_i32, %c0_i32_0 : i32, i32, i32
  }
  func.func @transform_1(%arg0: i32) -> (i32, i32) {
    %c0_i32 = arith.constant 0 : i32
    %c0_i32_0 = arith.constant 0 : i32
    return %arg0, %c0_i32 : i32, i32
  }
  func.func @transform_2(%arg0: i32) -> (i32, i32, i32) {
    %c0_i32 = arith.constant 0 : i32
    %c0_i32_0 = arith.constant 0 : i32
    %c0_i32_1 = arith.constant 0 : i32
    return %arg0, %c0_i32, %c0_i32_0 : i32, i32, i32
  }
  func.func @transform_3(%arg0: i32) -> (i32, i32) {
    %c0_i32 = arith.constant 0 : i32
    %c0_i32_0 = arith.constant 0 : i32
    return %arg0, %c0_i32 : i32, i32
  }
  func.func @transform_4(%arg0: i32) -> (i32, i32) {
    %c0_i32 = arith.constant 0 : i32
    %c0_i32_0 = arith.constant 0 : i32
    return %arg0, %c0_i32 : i32, i32
  }
  func.func @transform_5(%arg0: i32) -> (i32, i32) {
    %c0_i32 = arith.constant 0 : i32
    %c0_i32_0 = arith.constant 0 : i32
    return %arg0, %c0_i32 : i32, i32
  }
  func.func @transform_6(%arg0: i32) -> (i32, i32) {
    %c0_i32 = arith.constant 0 : i32
    %c0_i32_0 = arith.constant 0 : i32
    return %arg0, %c0_i32 : i32, i32
  }
  func.func @transform_7(%arg0: i32) -> (i32, i32) {
    %c0_i32 = arith.constant 0 : i32
    %c0_i32_0 = arith.constant 0 : i32
    return %arg0, %c0_i32 : i32, i32
  }
  func.func @transform_8(%arg0: i32) -> (i32, i32) {
    %c0_i32 = arith.constant 0 : i32
    %c0_i32_0 = arith.constant 0 : i32
    return %arg0, %c0_i32 : i32, i32
  }
  func.func @transform_9(%arg0: i32) -> (i32, i32) {
    %c0_i32 = arith.constant 0 : i32
    %c0_i32_0 = arith.constant 0 : i32
    return %arg0, %c0_i32 : i32, i32
  }
  func.func @transform_10(%arg0: i32) -> (i32, i32) {
    %c0_i32 = arith.constant 0 : i32
    %c0_i32_0 = arith.constant 0 : i32
    return %arg0, %c0_i32 : i32, i32
  }
  func.func @transform_11(%arg0: i32) -> (i32, i32) {
    %c0_i32 = arith.constant 0 : i32
    %c0_i32_0 = arith.constant 0 : i32
    return %arg0, %c0_i32 : i32, i32
  }
  func.func @transform_12(%arg0: i32) -> (i32, i32) {
    %c0_i32 = arith.constant 0 : i32
    %c0_i32_0 = arith.constant 0 : i32
    return %arg0, %c0_i32 : i32, i32
  }
  func.func @transform_13(%arg0: i32) -> (i32, i32) {
    %c0_i32 = arith.constant 0 : i32
    %c0_i32_0 = arith.constant 0 : i32
    %c0_i32_1 = arith.constant 0 : i32
    return %c0_i32, %c0_i32_0 : i32, i32
  }
  func.func @transform_14(%arg0: i32) -> (i32, i32) {
    %c0_i32 = arith.constant 0 : i32
    %c0_i32_0 = arith.constant 0 : i32
    %c0_i32_1 = arith.constant 0 : i32
    return %c0_i32, %c0_i32_0 : i32, i32
  }
  func.func @transform_15(%arg0: i32) -> (i32, i32) {
    %c0_i32 = arith.constant 0 : i32
    %c0_i32_0 = arith.constant 0 : i32
    %c0_i32_1 = arith.constant 0 : i32
    return %c0_i32, %c0_i32_0 : i32, i32
  }
  func.func @transform_16(%arg0: i32) -> (i32, i32) {
    %c0_i32 = arith.constant 0 : i32
    %c0_i32_0 = arith.constant 0 : i32
    %c0_i32_1 = arith.constant 0 : i32
    return %c0_i32, %c0_i32_0 : i32, i32
  }
  func.func @transform_17(%arg0: i32) -> (i32, i32) {
    %c0_i32 = arith.constant 0 : i32
    %c0_i32_0 = arith.constant 0 : i32
    %c0_i32_1 = arith.constant 0 : i32
    return %c0_i32, %c0_i32_0 : i32, i32
  }
  func.func @transform_18(%arg0: i32) -> (i32, i32) {
    %c0_i32 = arith.constant 0 : i32
    %c0_i32_0 = arith.constant 0 : i32
    %c0_i32_1 = arith.constant 0 : i32
    return %c0_i32, %c0_i32_0 : i32, i32
  }
  func.func @transform_19(%arg0: i32) -> (i32, i32) {
    %c0_i32 = arith.constant 0 : i32
    %c0_i32_0 = arith.constant 0 : i32
    %c0_i32_1 = arith.constant 0 : i32
    return %c0_i32, %c0_i32_0 : i32, i32
  }
  func.func @transform_20(%arg0: i32) -> (i32, i32) {
    %c0_i32 = arith.constant 0 : i32
    %c0_i32_0 = arith.constant 0 : i32
    %c0_i32_1 = arith.constant 0 : i32
    return %c0_i32, %c0_i32_0 : i32, i32
  }
  func.func @transform_21(%arg0: i32) -> (i32, i32) {
    %c0_i32 = arith.constant 0 : i32
    %c0_i32_0 = arith.constant 0 : i32
    %c0_i32_1 = arith.constant 0 : i32
    return %c0_i32, %c0_i32_0 : i32, i32
  }
  func.func @transform_22(%arg0: i32) -> (i32, i32) {
    %c0_i32 = arith.constant 0 : i32
    %c0_i32_0 = arith.constant 0 : i32
    %c0_i32_1 = arith.constant 0 : i32
    return %c0_i32, %c0_i32_0 : i32, i32
  }
  func.func @transform_23(%arg0: i32) -> (i32, i32) {
    %c0_i32 = arith.constant 0 : i32
    %c0_i32_0 = arith.constant 0 : i32
    %c0_i32_1 = arith.constant 0 : i32
    return %c0_i32, %c0_i32_0 : i32, i32
  }
  func.func @transform_24(%arg0: i32) -> (i32, i32) {
    %c0_i32 = arith.constant 0 : i32
    %c0_i32_0 = arith.constant 0 : i32
    %c0_i32_1 = arith.constant 0 : i32
    return %c0_i32, %c0_i32_0 : i32, i32
  }
  func.func @transform_25(%arg0: i32) -> (i32, i32) {
    %c0_i32 = arith.constant 0 : i32
    %c0_i32_0 = arith.constant 0 : i32
    %c0_i32_1 = arith.constant 0 : i32
    return %c0_i32, %c0_i32_0 : i32, i32
  }
  func.func @transform_26(%arg0: i32) -> (i32, i32) {
    %c0_i32 = arith.constant 0 : i32
    %c0_i32_0 = arith.constant 0 : i32
    return %arg0, %c0_i32 : i32, i32
  }
  func.func @transform_27(%arg0: i32) -> (i32, i32) {
    %c0_i32 = arith.constant 0 : i32
    %c0_i32_0 = arith.constant 0 : i32
    return %arg0, %c0_i32 : i32, i32
  }
  func.func @transform_28(%arg0: i32) -> (i32, i32) {
    %c0_i32 = arith.constant 0 : i32
    %c0_i32_0 = arith.constant 0 : i32
    return %arg0, %c0_i32 : i32, i32
  }
  func.func @transform_29(%arg0: i32) -> (i32, i32) {
    %c0_i32 = arith.constant 0 : i32
    %c0_i32_0 = arith.constant 0 : i32
    return %arg0, %c0_i32 : i32, i32
  }
  func.func @transform_30(%arg0: i32) -> (i32, i32) {
    %c0_i32 = arith.constant 0 : i32
    %c0_i32_0 = arith.constant 0 : i32
    return %arg0, %c0_i32 : i32, i32
  }
}

</mosaic_0001>

<bundles_post_ra>
// kernel: interaction_forward.2
= control target key start
LH: loop header
LB: loop body
LE: loop exit
PB: predicated region body
PF: predicated region fallthrough
CT: control target
= control target key end

     0   :  { %v1984_v1 = vmov 0   ;;  %v60_v39 = vlaneseq  ;;  %vm402_vm0 = vcmask 261120   ;;  %s1987_s26 = smov 32   ;;  %vm1556_vm5 = vcmask 785408   ;;  %s2527_s2 = inlined_call_operand.vmem [shape: bf16[128,512], index: 2, kind: input, shape index: {}]   ;;  %s2528_s0 = inlined_call_operand.vmem [shape: f32[32,128], index: 0, kind: input, shape index: {}]   ;;  %s2529_s3 = inlined_call_operand.vmem [shape: f32[1,512], index: 3, kind: input, shape index: {}]   ;;  %s2530_s4 = inlined_call_operand.vmem [shape: bf16[32,128], index: 4, kind: output, shape index: {0}]   ;;  %s2531_s1 = inlined_call_operand.vmem [shape: f32[32,32], index: 1, kind: input, shape index: {}]   ;;  %s2532_s5 = inlined_call_operand.vmem [shape: f32[32,128], index: 5, kind: output, shape index: {1}]  }
   0x1   :  { %v1856_v0 = vld [vmem:[%s2527_s2 + $0xe4] ss:$16 sps:$4 sm:$0xff]   ;;  %272 = vmatprep.mubr.bf16.mxu0 %v1984_v1  ;;  %325 = vmatprep.mubr.bf16.mxu1 %v1984_v1  ;;  %v1858_v2 = vld [vmem:[%s2527_s2 + $0xec] ss:$16 sps:$4 sm:$0xff]   ;;  %v1860_v3 = vld [vmem:[%s2527_s2 + $0xe0] ss:$16 sps:$4 sm:$0xff]  }
   0x2   :  { %240 = vmatprep.subr.bf16.mxu0 %v1856_v0  ;;  %v1861_v4 = vld [vmem:[%s2527_s2 + $0xe8] ss:$16 sps:$4 sm:$0xff]   ;;  %293 = vmatprep.subr.bf16.mxu1 %v1858_v2  ;;  %v1862_v5 = vld [vmem:[%s2527_s2 + $0xc4] ss:$16 sps:$4 sm:$0xff]   ;;  %v1864_v6 = vld [vmem:[%s2527_s2 + $0xcc] ss:$16 sps:$4 sm:$0xff]  }
   0x3   :  { %241 = vmatpush1.bf16.msra.mxu0 %v1860_v3  ;;  %294 = vmatpush1.bf16.msra.mxu1 %v1861_v4  ;;  %v1866_v7 = vld [vmem:[%s2527_s2 + $0xc0] ss:$16 sps:$4 sm:$0xff]   ;;  %v1867_v8 = vld [vmem:[%s2527_s2 + $0xc8] ss:$16 sps:$4 sm:$0xff]   ;;  %v1868_v9 = vld [vmem:[%s2527_s2 + $0xa4] ss:$16 sps:$4 sm:$0xff]  }
   0x4   :  { %242 = vmatprep.subr.bf16.mxu0 %v1862_v5  ;;  %295 = vmatprep.subr.bf16.mxu1 %v1864_v6  ;;  %v1870_v10 = vld [vmem:[%s2527_s2 + $0xac] ss:$16 sps:$4 sm:$0xff]   ;;  %v1872_v11 = vld [vmem:[%s2527_s2 + $0xa0] ss:$16 sps:$4 sm:$0xff]   ;;  %v1873_v12 = vld [vmem:[%s2527_s2 + $0xa8] ss:$16 sps:$4 sm:$0xff]  }
   0x5   :  { %v1874_v13 = vld [vmem:[%s2527_s2 + $0x84] ss:$16 sps:$4 sm:$0xff]   ;;  %v1876_v14 = vld [vmem:[%s2527_s2 + $0x8c] ss:$16 sps:$4 sm:$0xff]   ;;  %v1878_v15 = vld [vmem:[%s2527_s2 + $0x80] ss:$16 sps:$4 sm:$0xff]  }
   0x6   :  { %v1879_v16 = vld [vmem:[%s2527_s2 + $0x88] ss:$16 sps:$4 sm:$0xff]   ;;  %v1880_v17 = vld [vmem:[%s2527_s2 + $0x64] ss:$16 sps:$4 sm:$0xff]   ;;  %v1882_v18 = vld [vmem:[%s2527_s2 + $0x6c] ss:$16 sps:$4 sm:$0xff]  }
   0x7   :  { %243 = vmatpush1.bf16.msra.mxu0 %v1866_v7  ;;  %296 = vmatpush1.bf16.msra.mxu1 %v1867_v8  ;;  %v1884_v19 = vld [vmem:[%s2527_s2 + $0x60] ss:$16 sps:$4 sm:$0xff]   ;;  %v1885_v20 = vld [vmem:[%s2527_s2 + $0x68] ss:$16 sps:$4 sm:$0xff]   ;;  %v1886_v21 = vld [vmem:[%s2527_s2 + $0x44] ss:$16 sps:$4 sm:$0xff]  }
   0x8   :  { %244 = vmatprep.subr.bf16.mxu0 %v1868_v9  ;;  %297 = vmatprep.subr.bf16.mxu1 %v1870_v10  ;;  %v1888_v22 = vld [vmem:[%s2527_s2 + $0x4c] ss:$16 sps:$4 sm:$0xff]   ;;  %v1890_v23 = vld [vmem:[%s2527_s2 + $0x40] ss:$16 sps:$4 sm:$0xff]   ;;  %v1891_v24 = vld [vmem:[%s2527_s2 + $0x48] ss:$16 sps:$4 sm:$0xff]  }
   0x9   :  { %v1892_v25 = vld [vmem:[%s2527_s2 + $0x24] ss:$16 sps:$4 sm:$0xff]   ;;  %v1894_v26 = vld [vmem:[%s2527_s2 + $0x2c] ss:$16 sps:$4 sm:$0xff]   ;;  %v1896_v27 = vld [vmem:[%s2527_s2 + $0x20] ss:$16 sps:$4 sm:$0xff]  }
   0xa   :  { %v1897_v28 = vld [vmem:[%s2527_s2 + $0x28] ss:$16 sps:$4 sm:$0xff]   ;;  %v1898_v29 = vld [vmem:[%s2527_s2 + $0x4] ss:$16 sps:$4 sm:$0xff]   ;;  %v1900_v30 = vld [vmem:[%s2527_s2 + $0xc] ss:$16 sps:$4 sm:$0xff]  }
   0xb   :  { %245 = vmatpush1.bf16.msra.mxu0 %v1872_v11  ;;  %298 = vmatpush1.bf16.msra.mxu1 %v1873_v12  ;;  %v1902_v31 = vld [vmem:[%s2527_s2] ss:$16 sps:$4 sm:$0xff]   ;;  %v1903_v32 = vld [vmem:[%s2527_s2 + $0x8] ss:$16 sps:$4 sm:$0xff]   ;;  %v61_v40 = vshrl.u32 %v60_v39, 7  ;;  %vm1551_vm6 = vcmask 523264  }
   0xc   :  { %246 = vmatprep.subr.bf16.mxu0 %v1874_v13  ;;  %299 = vmatprep.subr.bf16.mxu1 %v1876_v14  ;;  %v20_v33 = vld [vmem:[%s2528_s0] sm:$0xff]  ;;  %v21_v34 = vld [vmem:[%s2528_s0 + $0x8] sm:$0xff]  ;;  %v22_v36 = vld [vmem:[%s2528_s0 + $0x10] sm:$0xff] }
   0xd   :  { %v24_v35 = vpack.c.bf16 %v21_v34, %v20_v33  ;;  %v23_v37 = vld [vmem:[%s2528_s0 + $0x18] sm:$0xff]  ;;  %v62_v41 = vsub.s32 0, %v61_v40  ;;  %v58_v42 = vld [vmem:[%s2529_s3] sm:$0xf]  ;;  %v66_v44 = vsub.s32 1, %v61_v40  ;;  %v70_v45 = vsub.s32 2, %v61_v40 }
   0xe   :  { %v25_v38 = vpack.c.bf16 %v23_v37, %v22_v36  ;;  %s1985_s0 = smov 96  }
   0xf   :  { %247 = vmatpush1.bf16.msra.mxu0 %v1878_v15  ;;  %300 = vmatpush1.bf16.msra.mxu1 %v1879_v16  ;;  %v63_v43 = vrot.slane %v58_v42, %v62_v41  ;;  %v2135_v49 = vrot.slane %v58_v42, %v66_v44  ;;  %v71_v53 = vrot.slane %v58_v42, %v70_v45 }
  0x10   :  { %248 = vmatprep.subr.bf16.mxu0 %v1880_v17  ;;  %301 = vmatprep.subr.bf16.mxu1 %v1882_v18 }
  0x13   :  { %249 = vmatpush1.bf16.msra.mxu0 %v1884_v19  ;;  %302 = vmatpush1.bf16.msra.mxu1 %v1885_v20 }
  0x14   :  { %250 = vmatprep.subr.bf16.mxu0 %v1886_v21  ;;  %303 = vmatprep.subr.bf16.mxu1 %v1888_v22 }
  0x17   :  { %251 = vmatpush1.bf16.msra.mxu0 %v1890_v23  ;;  %304 = vmatpush1.bf16.msra.mxu1 %v1891_v24 }
  0x18   :  { %252 = vmatprep.subr.bf16.mxu0 %v1892_v25  ;;  %305 = vmatprep.subr.bf16.mxu1 %v1894_v26 }
  0x1b   :  { %253 = vmatpush1.bf16.msra.mxu0 %v1896_v27  ;;  %306 = vmatpush1.bf16.msra.mxu1 %v1897_v28 }
  0x1c   :  { %254 = vmatprep.subr.bf16.mxu0 %v1898_v29  ;;  %307 = vmatprep.subr.bf16.mxu1 %v1900_v30 }
  0x1f   :  { %255 = vmatpush1.bf16.msra.mxu0 %v1902_v31  ;;  %308 = vmatpush1.bf16.msra.mxu1 %v1903_v32 }
  0x22   :  { %273 = vmatmul.mubr.bf16.vlgmr.msra.gmra.mxu0 %v24_v35  ;;  %326 = vmatmul.mubr.bf16.vlgmr.msra.gmra.mxu1 %v24_v35 }
  0x23   :  { %335 = vmatprep.mubr.bf16.mxu1 %v1984_v1  ;;  %282 = vmatprep.mubr.bf16.mxu0 %v1984_v1  ;;  %v74_v1 = vsub.s32 3, %v61_v40 }
  0x25   :  { %v75_v9 = vrot.slane %v58_v42, %v74_v1 }
  0x2a   :  { %336 = vmatmul.mubr.bf16.gmra.mxu1 %v25_v38  ;;  %283 = vmatmul.mubr.bf16.gmra.mxu0 %v25_v38 }
  0xe2   :  { %v274_v46 = vpop.f32.mrf.mxu0  ;;  %v327_v47 = vpop.f32.mrf.mxu1 }
  0xe3   :  { %v2133_v48 = vadd.f32 %v274_v46, %v63_v43  ;;  %v2150_v0 = vadd.f32 %v327_v47, %v71_v53 }
  0xe4   :  { %v276_v50 = vpop.f32.mrf.mxu0  ;;  %v329_v51 = vpop.f32.mrf.mxu1 }
  0xe5   :  { %v1605_v52 = vmul.f32 -1.442695, %v2133_v48  ;;  %v2139_v54 = vadd.f32 %v276_v50, %v2135_v49  ;;  %v2198_v23 = vadd.f32 %v329_v51, %v75_v9  ;;  %v2263_v51 = vld [vmem:[%s2531_s1 + $0x8] sm:$0xff] }
  0xe6   :  { %v278_v55 = vpop.f32.mrf.mxu0  ;;  %v331_v56 = vpop.f32.mrf.mxu1  ;;  %vm399_vm1 = vcmp.gt.f32.partialorder %v2263_v51, 0.0 }
  0xe7   :  { %1904 = vpow2.f32 %v1605_v52  ;;  %v2141_v57 = vadd.f32 %v278_v55, %v63_v43  ;;  %v2143_v58 = vadd.f32 %v331_v56, %v71_v53  ;;  %1748 = vmatprep.mubr.msk.f32.mxu0 %vm402_vm0, %v2139_v54  ;;  %v2268_v52 = vld [vmem:[%s2531_s1] sm:$0xff]  ;;  %v2274_v56 = vld [vmem:[%s2531_s1 + $0x18] sm:$0xff] }
  0xe8   :  { %v333_v59 = vpop.f32.mrf.mxu1  ;;  %v280_v60 = vpop.f32.mrf.mxu0  ;;  %vm398_vm2 = vcmp.gt.f32.partialorder %v2268_v52, 0.0  ;;  %vm401_vm3 = vcmp.gt.f32.partialorder %v2274_v56, 0.0 }
  0xe9   :  { %v1606_v61 = vmul.f32 -1.442695, %v2141_v57  ;;  %671 = vrot.lane.b32.xlu1 %v2143_v58, %s1985_s0  ;;  %v2158_v6 = vadd.f32 %v280_v60, %v2135_v49  ;;  %v2189_v21 = vadd.f32 %v333_v59, %v75_v9 }
  0xea   :  { %v337_v62 = vpop.f32.mrf.mxu1  ;;  %v284_v63 = vpop.f32.mrf.mxu0 }
  0xeb   :  { %1906 = vpow2.f32 %v1606_v61  ;;  %v2152_v2 = vadd.f32 %v284_v63, %v63_v43  ;;  %v2164_v14 = vadd.f32 %v337_v62, %v71_v53  ;;  %v2282_v61 = vld [vmem:[%s2531_s1 + $0x10] sm:$0xff]  ;;  %s1986_s1 = smov 64  }
  0xec   :  { %v339_v3 = vpop.f32.mrf.mxu1  ;;  %v286_v4 = vpop.f32.mrf.mxu0  ;;  %vm400_vm4 = vcmp.gt.f32.partialorder %v2282_v61, 0.0 }
  0xed   :  { %v1607_v5 = vmul.f32 -1.442695, %v2152_v2  ;;  %669 = vrot.lane.b32.xlu1 %v2150_v0, %s1985_s0  ;;  %v2180_v18 = vadd.f32 %v339_v3, %v75_v9  ;;  %v2202_v25 = vadd.f32 %v286_v4, %v2135_v49 }
  0xee   :  { %v341_v7 = vpop.f32.mrf.mxu1  ;;  %v288_v8 = vpop.f32.mrf.mxu0 }
  0xef   :  { %1908 = vpow2.f32 %v1607_v5  ;;  %v2160_v10 = vadd.f32 %v341_v7, %v71_v53  ;;  %v2162_v11 = vadd.f32 %v288_v8, %v63_v43 }
  0xf0   :  { %v343_v12 = vpop.f32.mrf.mxu1  ;;  %v290_v13 = vpop.f32.mrf.mxu0 }
  0xf1   :  { %v1608_v15 = vmul.f32 -1.442695, %v2162_v11  ;;  %v2167_v16 = vadd.f32 %v343_v12, %v75_v9  ;;  %675 = vrot.lane.b32.xlu0 %v2160_v10, %s1985_s0  ;;  %1740 = vmatprep.subr.msk.mxu0 %vm402_vm0, %v2160_v10  ;;  %v2176_v17 = vadd.f32 %v290_v13, %v2135_v49 }
  0xf2   :  { %663 = vrot.lane.b32.xlu1 %v2158_v6, %s1985_s0  ;;  %1741 = vmatpush3.xpose.msk.msra.mxu0 %vm402_vm0, %v2160_v10 }
  0xf3   :  { %1910 = vpow2.f32 %v1608_v15  ;;  %1742 = vmatprep.subr.msk.mxu0 %vm402_vm0, %v2164_v14  ;;  %1754 = vmatprep.subr.mxu1 %v2167_v16 }
  0xf4   :  { %v1905_v19 = vpop.eup %1904  ;;  %1755 = vmatpush3.msra.mxu1 %v2167_v16 }
  0xf5   :  { %v358_v20 = vadd.f32 1.0, %v1905_v19  ;;  %1756 = vmatprep.subr.mxu1 %v2180_v18  ;;  %673 = vrot.lane.b32.xlu0 %v2164_v14, %s1985_s0 }
  0xf6   :  { %667 = vrot.lane.b32.xlu1 %v2176_v17, %s1985_s0  ;;  %1743 = vmatpush3.xpose.msk.msra.mxu0 %vm402_vm0, %v2164_v14 }
  0xf7   :  { %1757 = vmatpush3.msra.mxu1 %v2180_v18  ;;  %1744 = vmatprep.subr.msk.mxu0 %vm402_vm0, %v2143_v58  ;;  %1912 = vrcp.f32 %v358_v20 }
  0xf8   :  { %v1907_v22 = vpop.eup %1906  ;;  %1758 = vmatprep.subr.mxu1 %v2189_v21 }
  0xf9   :  { %v359_v24 = vadd.f32 1.0, %v1907_v22  ;;  %1759 = vmatpush3.msra.mxu1 %v2189_v21  ;;  %661 = vrot.lane.b32.xlu0 %v2139_v54, %s1985_s0 }
  0xfa   :  { %1760 = vmatprep.subr.mxu1 %v2198_v23  ;;  %836 = vrot.lane.b32.xlu1 %v2189_v21, %s1985_s0 }
  0xfb   :  { %1914 = vrcp.f32 %v359_v24  ;;  %1745 = vmatpush3.xpose.msk.msra.mxu0 %vm402_vm0, %v2143_v58  ;;  %1761 = vmatpush3.msra.mxu1 %v2198_v23 }
  0xfc   :  { %v1909_v26 = vpop.eup %1908  ;;  %1746 = vmatprep.subr.msk.mxu0 %vm402_vm0, %v2150_v0 }
  0xfd   :  { %v360_v27 = vadd.f32 1.0, %v1909_v26  ;;  %665 = vrot.lane.b32.xlu0 %v2202_v25, %s1985_s0 }
  0xfe   :  { %834 = vrot.lane.b32.xlu1 %v2198_v23, %s1985_s0 }
  0xff   :  { %1916 = vrcp.f32 %v360_v27  ;;  %1747 = vmatpush3.xpose.msk.msra.mxu0 %vm402_vm0, %v2150_v0 }
 0x100   :  { %v1911_v28 = vpop.eup %1910 }
 0x101   :  { %v361_v29 = vadd.f32 1.0, %v1911_v28  ;;  %838 = vrot.lane.b32.xlu0 %v2180_v18, %s1985_s0 }
 0x102   :  { %840 = vrot.lane.b32.xlu1 %v2167_v16, %s1985_s0  ;;  %1749 = vmatmul.mubr.msk.f32.vlgmr.msra.gmra.mxu0 %vm402_vm0, %v2158_v6 }
 0x103   :  { %1918 = vrcp.f32 %v361_v29  ;;  %1751 = vmatprep.mubr.msk.f32.mxu0 %vm402_vm0, %v2202_v25 }
 0x104   :  { %v1913_v30 = vpop.eup %1912 }
 0x105   :  { %v370_v32 = vmul.f32 %v1913_v30, %v2133_v48 }
 0x106   :  { %1752 = vmatmul.mubr.msk.f32.gmra.mxu0 %vm402_vm0, %v2176_v17 }
 0x108   :  { %v1915_v31 = vpop.eup %1914 }
 0x109   :  { %v371_v33 = vmul.f32 %v1915_v31, %v2141_v57 }
 0x10b   :  { %v1668_v34 = vpack.c.bf16 %v371_v33, %v370_v32 }
 0x10c   :  { %v1917_v35 = vpop.eup %1916 }
 0x10d   :  { %1669 = vst [vmem:[%s2530_s4] sm:$0xff] %v1668_v34   ;;  %v372_v36 = vmul.f32 %v1917_v35, %v2152_v2 }
 0x110   :  { %v1919_v37 = vpop.eup %1918 }
 0x111   :  { %v373_v38 = vmul.f32 %v1919_v37, %v2162_v11 }
 0x113   :  { %v1673_v39 = vpack.c.bf16 %v373_v38, %v372_v36 }
 0x115   :  { %1675 = vst [vmem:[%s2530_s4 + $0x8] sm:$0xff] %v1673_v39  }
 0x15b   :  { %v672_v40 = vpop.permute.xlu1 %671 }
 0x15f   :  { %v670_v41 = vpop.permute.xlu1 %669 }
 0x163   :  { %v676_v42 = vpop.permute.xlu0 %675 }
 0x164   :  { %v664_v43 = vpop.permute.xlu1 %663  ;;  %1768 = vmatprep.subr.msk.mxu0 %vm402_vm0, %v676_v42 }
 0x165   :  { %1769 = vmatpush3.xpose.msk.msra.mxu0 %vm402_vm0, %v676_v42 }
 0x167   :  { %v674_v44 = vpop.permute.xlu0 %673 }
 0x168   :  { %v668_v45 = vpop.permute.xlu1 %667  ;;  %1770 = vmatprep.subr.msk.mxu0 %vm402_vm0, %v674_v44 }
 0x169   :  { %1771 = vmatpush3.xpose.msk.msra.mxu0 %vm402_vm0, %v674_v44 }
 0x16a   :  { %1772 = vmatprep.subr.msk.mxu0 %vm402_vm0, %v672_v40 }
 0x16b   :  { %v662_v46 = vpop.permute.xlu0 %661 }
 0x16c   :  { %v2246_v47 = vpop.permute.xlu1 %836  ;;  %1776 = vmatprep.mubr.msk.f32.mxu0 %vm402_vm0, %v662_v46 }
 0x16d   :  { %1773 = vmatpush3.xpose.msk.msra.mxu0 %vm402_vm0, %v672_v40 }
 0x16e   :  { %1774 = vmatprep.subr.msk.mxu0 %vm402_vm0, %v670_v41 }
 0x16f   :  { %v666_v49 = vpop.permute.xlu0 %665 }
 0x170   :  { %v2251_v48 = vpop.permute.xlu1 %834 }
 0x171   :  { %1775 = vmatpush3.xpose.msk.msra.mxu0 %vm402_vm0, %v670_v41 }
 0x173   :  { %v2308_v35 = vpop.permute.xlu0 %838 }
 0x174   :  { %v2254_v50 = vpop.permute.xlu1 %840  ;;  %1777 = vmatmul.mubr.msk.f32.vlgmr.msra.gmra.mxu0 %vm402_vm0, %v664_v43 }
 0x175   :  { %1782 = vmatprep.subr.mxu1 %v2254_v50  ;;  %1779 = vmatprep.mubr.msk.f32.mxu0 %vm402_vm0, %v666_v49 }
 0x178   :  { %1780 = vmatmul.mubr.msk.f32.gmra.mxu0 %vm402_vm0, %v668_v45 }
 0x1c2   :  { %v1750_v53 = vpop.f32.mrf.mxu0 }
 0x1c3   :  { %v513_v55 = vmul.f32 0.125, %v1750_v53 }
 0x1c4   :  { %v493_v57 = vpop.f32.mrf.mxu0 }
 0x1c5   :  { %v512_v59 = vmul.f32 0.125, %v493_v57  ;;  %v517_v60 = vsel %vm399_vm1, -1e+30, %v513_v55 }
 0x1c6   :  { %v523_v62 = vsel %vm402_vm0, %v517_v60, -inf  ;;  %v1753_v63 = vpop.f32.mrf.mxu0 }
 0x1c7   :  { %524 = vmax.xlane.f32.xlu1 %v523_v62  ;;  %v515_v1 = vmul.f32 0.125, %v1753_v63  ;;  %v516_v2 = vsel %vm398_vm2, -1e+30, %v512_v59 }
 0x1c8   :  { %v520_v3 = vsel %vm402_vm0, %v516_v2, -inf  ;;  %v503_v4 = vpop.f32.mrf.mxu0 }
 0x1c9   :  { %521 = vmax.xlane.f32.xlu0 %v520_v3  ;;  %v514_v5 = vmul.f32 0.125, %v503_v4  ;;  %v519_v7 = vsel %vm401_vm3, -1e+30, %v515_v1 }
 0x1ca   :  { %v529_v8 = vsel %vm402_vm0, %v519_v7, -inf }
 0x1cb   :  { %v518_v9 = vsel %vm400_vm4, -1e+30, %v514_v5 }
 0x1cc   :  { %v526_v11 = vsel %vm402_vm0, %v518_v9, -inf }
 0x1cd   :  { %530 = vmax.xlane.f32.xlu0 %v529_v8 }
 0x1d1   :  { %527 = vmax.xlane.f32.xlu0 %v526_v11 }
 0x234   :  { %v1778_v12 = vpop.f32.mrf.mxu0 }
 0x235   :  { %v779_v13 = vmul.f32 0.125, %v1778_v12 }
 0x236   :  { %v759_v15 = vpop.f32.mrf.mxu0 }
 0x237   :  { %v778_v19 = vmul.f32 0.125, %v759_v15  ;;  %v783_v20 = vsel %vm399_vm1, -1e+30, %v779_v13 }
 0x238   :  { %v1781_v22 = vpop.f32.mrf.mxu0  ;;  %v789_v24 = vsel %vm402_vm0, %v783_v20, -inf }
 0x239   :  { %v781_v26 = vmul.f32 0.125, %v1781_v22  ;;  %790 = vmax.xlane.f32.xlu0 %v789_v24  ;;  %v782_v27 = vsel %vm398_vm2, -1e+30, %v778_v19 }
 0x23a   :  { %v769_v28 = vpop.f32.mrf.mxu0  ;;  %v786_v29 = vsel %vm402_vm0, %v782_v27, -inf }
 0x23b   :  { %v780_v30 = vmul.f32 0.125, %v769_v28  ;;  %787 = vmax.xlane.f32.xlu1 %v786_v29  ;;  %v785_v31 = vsel %vm401_vm3, -1e+30, %v781_v26 }
 0x23c   :  { %v795_v32 = vsel %vm402_vm0, %v785_v31, -inf }
 0x23d   :  { %796 = vmax.xlane.f32.xlu0 %v795_v32  ;;  %v784_v33 = vsel %vm400_vm4, -1e+30, %v780_v30 }
 0x23e   :  { %v792_v34 = vsel %vm402_vm0, %v784_v33, -inf }
 0x23f   :  { %793 = vmax.xlane.f32.xlu1 %v792_v34 }
 0x250   :  { %955 = vrot.lane.b32.xlu1 %v2164_v14, %s1986_s1  ;;  %v525_v37 = vpop.xlane.xlu1 %524 }
 0x251   :  { %v533_v39 = vsub.f32 %v517_v60, %v525_v37 }
 0x252   :  { %v522_v36 = vpop.xlane.xlu0 %521 }
 0x253   :  { %957 = vrot.lane.b32.xlu0 %v2160_v10, %s1986_s1  ;;  %v532_v40 = vsub.f32 %v516_v2, %v522_v36  ;;  %v538_v42 = vmul.f32 1.442695, %v533_v39 }
 0x255   :  { %v536_v44 = vmul.f32 1.442695, %v532_v40  ;;  %1920 = vpow2.f32 %v538_v42 }
 0x256   :  { %v531_v38 = vpop.xlane.xlu0 %530 }
 0x257   :  { %v535_v43 = vsub.f32 %v519_v7, %v531_v38  ;;  %1922 = vpow2.f32 %v536_v44 }
 0x259   :  { %v542_v46 = vmul.f32 1.442695, %v535_v43 }
 0x25a   :  { %v528_v41 = vpop.xlane.xlu0 %527 }
 0x25b   :  { %v534_v45 = vsub.f32 %v518_v9, %v528_v41  ;;  %1924 = vpow2.f32 %v542_v46 }
 0x25d   :  { %v540_v49 = vmul.f32 1.442695, %v534_v45 }
 0x25f   :  { %1926 = vpow2.f32 %v540_v49 }
 0x262   :  { %v1921_v53 = vpop.eup %1920 }
 0x263   :  { %v547_v57 = vsel %vm402_vm0, %v1921_v53, 0.0 }
 0x264   :  { %v1923_v55 = vpop.eup %1922 }
 0x265   :  { %v544_v60 = vsel %vm402_vm0, %v1923_v55, 0.0 }
 0x268   :  { %v1925_v59 = vpop.eup %1924 }
 0x269   :  { %v553_v63 = vsel %vm402_vm0, %v1925_v59, 0.0 }
 0x26c   :  { %v1927_v62 = vpop.eup %1926 }
 0x26d   :  { %v550_v1 = vsel %vm402_vm0, %v1927_v62, 0.0 }
 0x272   :  { %548 = vadd.xlane.f32.xlu0 %v547_v57 }
 0x274   :  { %545 = vadd.xlane.f32.xlu1 %v544_v60 }
 0x276   :  { %554 = vadd.xlane.f32.xlu0 %v553_v63 }
 0x278   :  { %551 = vadd.xlane.f32.xlu1 %v550_v1 }
 0x2c2   :  { %v791_v2 = vpop.xlane.xlu0 %790 }
 0x2c3   :  { %v799_v3 = vsub.f32 %v783_v20, %v791_v2 }
 0x2c4   :  { %v788_v4 = vpop.xlane.xlu1 %787 }
 0x2c5   :  { %v804_v5 = vmul.f32 1.442695, %v799_v3  ;;  %v798_v7 = vsub.f32 %v782_v27, %v788_v4 }
 0x2c6   :  { %v797_v15 = vpop.xlane.xlu0 %796 }
 0x2c7   :  { %1928 = vpow2.f32 %v804_v5  ;;  %v802_v8 = vmul.f32 1.442695, %v798_v7  ;;  %v801_v20 = vsub.f32 %v785_v31, %v797_v15 }
 0x2c8   :  { %v794_v19 = vpop.xlane.xlu1 %793 }
 0x2c9   :  { %1930 = vpow2.f32 %v802_v8  ;;  %v800_v22 = vsub.f32 %v784_v33, %v794_v19  ;;  %v808_v24 = vmul.f32 1.442695, %v801_v20 }
 0x2ca   :  { %v958_v26 = vpop.permute.xlu0 %957 }
 0x2cb   :  { %v806_v27 = vmul.f32 1.442695, %v800_v22  ;;  %1932 = vpow2.f32 %v808_v24 }
 0x2cc   :  { %v956_v28 = vpop.permute.xlu1 %955 }
 0x2cd   :  { %1934 = vpow2.f32 %v806_v27 }
 0x2d4   :  { %v2318_v9 = vpop.eup %1928 }
 0x2d5   :  { %v813_v11 = vsel %vm402_vm0, %v2318_v9, 0.0 }
 0x2d6   :  { %v2322_v12 = vpop.eup %1930  ;;  %814 = vadd.xlane.f32.xlu0 %v813_v11 }
 0x2d7   :  { %v810_v13 = vsel %vm402_vm0, %v2322_v12, 0.0 }
 0x2d8   :  { %811 = vadd.xlane.f32.xlu1 %v810_v13  ;;  %v2330_v36 = vpop.eup %1932 }
 0x2d9   :  { %v819_v33 = vsel %vm402_vm0, %v2330_v36, 0.0 }
 0x2da   :  { %v2332_v37 = vpop.eup %1934 }
 0x2db   :  { %v816_v39 = vsel %vm402_vm0, %v2332_v37, 0.0 }
 0x2e9   :  { %951 = vrot.lane.b32.xlu1 %v2150_v0, %s1986_s1 }
 0x2ec   :  { %953 = vrot.lane.b32.xlu0 %v2143_v58, %s1986_s1 }
 0x2fb   :  { %v549_v29 = vpop.xlane.xlu0 %548 }
 0x2fc   :  { %1936 = vrcp.f32 %v549_v29 }
 0x2fd   :  { %v546_v30 = vpop.xlane.xlu1 %545 }
 0x2fe   :  { %1938 = vrcp.f32 %v546_v30 }
 0x2ff   :  { %v555_v32 = vpop.xlane.xlu0 %554 }
 0x300   :  { %1940 = vrcp.f32 %v555_v32 }
 0x301   :  { %v552_v34 = vpop.xlane.xlu1 %551 }
 0x302   :  { %1942 = vrcp.f32 %v552_v34 }
 0x309   :  { %v1937_v31 = vpop.eup %1936 }
 0x30a   :  { %v561_v41 = vmul.f32 %v1937_v31, %v1921_v53 }
 0x30b   :  { %v1939_v38 = vpop.eup %1938  ;;  %820 = vadd.xlane.f32.xlu0 %v819_v33 }
 0x30c   :  { %v560_v40 = vmul.f32 %v1939_v38, %v1923_v55 }
 0x30d   :  { %817 = vadd.xlane.f32.xlu1 %v816_v39  ;;  %v1941_v42 = vpop.eup %1940 }
 0x30e   :  { %1762 = vmatprep.mubr.msk.f32.mxu1 %vm402_vm0, %v560_v40  ;;  %v563_v45 = vmul.f32 %v1941_v42, %v1925_v59 }
 0x30f   :  { %v1943_v43 = vpop.eup %1942  ;;  %1763 = vmatmul.mubr.msk.f32.vlgmr.msra.gmra.mxu1 %vm402_vm0, %v561_v41 }
 0x310   :  { %1783 = vmatpush3.msra.mxu1 %v2254_v50  ;;  %v562_v44 = vmul.f32 %v1943_v43, %v1927_v62 }
 0x311   :  { %1784 = vmatprep.subr.mxu1 %v2308_v35 }
 0x312   :  { %1785 = vmatpush3.msra.mxu1 %v2308_v35  ;;  %1765 = vmatprep.mubr.msk.f32.mxu1 %vm402_vm0, %v562_v44 }
 0x313   :  { %1786 = vmatprep.subr.mxu1 %v2246_v47  ;;  %1766 = vmatmul.mubr.msk.f32.gmra.mxu1 %vm402_vm0, %v563_v45 }
 0x314   :  { %1787 = vmatpush3.msra.mxu1 %v2246_v47 }
 0x315   :  { %1788 = vmatprep.subr.mxu1 %v2251_v48 }
 0x316   :  { %1789 = vmatpush3.msra.mxu1 %v2251_v48 }
 0x317   :  { %1796 = vmatprep.subr.msk.mxu1 %vm402_vm0, %v958_v26 }
 0x31e   :  { %945 = vrot.lane.b32.xlu1 %v2158_v6, %s1986_s1 }
 0x321   :  { %943 = vrot.lane.b32.xlu0 %v2139_v54, %s1986_s1 }
 0x322   :  { %949 = vrot.lane.b32.xlu1 %v2176_v17, %s1986_s1 }
 0x325   :  { %947 = vrot.lane.b32.xlu0 %v2202_v25, %s1986_s1 }
 0x326   :  { %1118 = vrot.lane.b32.xlu1 %v2167_v16, %s1986_s1 }
 0x329   :  { %1116 = vrot.lane.b32.xlu0 %v2180_v18, %s1986_s1 }
 0x32a   :  { %1114 = vrot.lane.b32.xlu1 %v2189_v21, %s1986_s1 }
 0x32e   :  { %1112 = vrot.lane.b32.xlu1 %v2198_v23, %s1986_s1 }
 0x35f   :  { %v815_v47 = vpop.xlane.xlu0 %814 }
 0x360   :  { %1944 = vrcp.f32 %v815_v47 }
 0x361   :  { %v812_v48 = vpop.xlane.xlu1 %811 }
 0x362   :  { %1946 = vrcp.f32 %v812_v48 }
 0x363   :  { %v954_v53 = vpop.permute.xlu0 %953 }
 0x365   :  { %v952_v55 = vpop.permute.xlu1 %951 }
 0x36d   :  { %v1945_v50 = vpop.eup %1944 }
 0x36e   :  { %v827_v49 = vmul.f32 %v1945_v50, %v2318_v9 }
 0x36f   :  { %v1947_v35 = vpop.eup %1946 }
 0x370   :  { %v826_v46 = vmul.f32 %v1947_v35, %v2322_v12 }
 0x372   :  { %1790 = vmatprep.mubr.msk.f32.mxu1 %vm402_vm0, %v826_v46 }
 0x373   :  { %1791 = vmatmul.mubr.msk.f32.vlgmr.msra.gmra.mxu1 %vm402_vm0, %v827_v49 }
 0x374   :  { %1797 = vmatpush3.xpose.msk.msra.mxu1 %vm402_vm0, %v958_v26 }
 0x375   :  { %1798 = vmatprep.subr.msk.mxu1 %vm402_vm0, %v956_v28 }
 0x378   :  { %1799 = vmatpush3.xpose.msk.msra.mxu1 %vm402_vm0, %v956_v28 }
 0x379   :  { %1800 = vmatprep.subr.msk.mxu1 %vm402_vm0, %v954_v53 }
 0x37c   :  { %1801 = vmatpush3.xpose.msk.msra.mxu1 %vm402_vm0, %v954_v53 }
 0x37d   :  { %1802 = vmatprep.subr.msk.mxu1 %vm402_vm0, %v952_v55 }
 0x380   :  { %1803 = vmatpush3.xpose.msk.msra.mxu1 %vm402_vm0, %v952_v55 }
 0x394   :  { %v821_v57 = vpop.xlane.xlu0 %820 }
 0x395   :  { %1948 = vrcp.f32 %v821_v57 }
 0x396   :  { %v818_v59 = vpop.xlane.xlu1 %817 }
 0x397   :  { %1950 = vrcp.f32 %v818_v59 }
 0x398   :  { %v944_v60 = vpop.permute.xlu0 %943 }
 0x39a   :  { %v946_v62 = vpop.permute.xlu1 %945 }
 0x39c   :  { %v948_v63 = vpop.permute.xlu0 %947 }
 0x39e   :  { %v950_v1 = vpop.permute.xlu1 %949 }
 0x3a0   :  { %v1117_v5 = vpop.permute.xlu0 %1116 }
 0x3a2   :  { %v1119_v2 = vpop.permute.xlu1 %1118  ;;  %v1949_v3 = vpop.eup %1948 }
 0x3a3   :  { %1810 = vmatprep.subr.mxu0 %v1119_v2  ;;  %v829_v9 = vmul.f32 %v1949_v3, %v2330_v36 }
 0x3a4   :  { %v1951_v4 = vpop.eup %1950  ;;  %1811 = vmatpush3.msra.mxu0 %v1119_v2 }
 0x3a5   :  { %1812 = vmatprep.subr.mxu0 %v1117_v5  ;;  %v828_v7 = vmul.f32 %v1951_v4, %v2332_v37 }
 0x3a6   :  { %v1115_v8 = vpop.permute.xlu1 %1114  ;;  %1813 = vmatpush3.msra.mxu0 %v1117_v5 }
 0x3a7   :  { %1793 = vmatprep.mubr.msk.f32.mxu1 %vm402_vm0, %v828_v7  ;;  %1814 = vmatprep.subr.mxu0 %v1115_v8 }
 0x3a8   :  { %1794 = vmatmul.mubr.msk.f32.gmra.mxu1 %vm402_vm0, %v829_v9  ;;  %1815 = vmatpush3.msra.mxu0 %v1115_v8 }
 0x3a9   :  { %1804 = vmatprep.mubr.msk.f32.mxu1 %vm402_vm0, %v944_v60 }
 0x3aa   :  { %v1113_v11 = vpop.permute.xlu1 %1112 }
 0x3ab   :  { %1816 = vmatprep.subr.mxu0 %v1113_v11 }
 0x3ac   :  { %1805 = vmatmul.mubr.msk.f32.vlgmr.msra.gmra.mxu1 %vm402_vm0, %v946_v62  ;;  %1817 = vmatpush3.msra.mxu0 %v1113_v11 }
 0x3ad   :  { %1807 = vmatprep.mubr.msk.f32.mxu1 %vm402_vm0, %v948_v63 }
 0x3b0   :  { %1808 = vmatmul.mubr.msk.f32.gmra.mxu1 %vm402_vm0, %v950_v1 }
 0x3cf   :  { %v2385_v12 = vpop.f32.mrf.mxu1 }
 0x3d1   :  { %v2387_v13 = vpop.f32.mrf.mxu1 }
 0x3d3   :  { %v2389_v15 = vpop.f32.mrf.mxu1 }
 0x3d5   :  { %v2391_v19 = vpop.f32.mrf.mxu1 }
 0x433   :  { %v2393_v20 = vpop.f32.mrf.mxu1 }
 0x435   :  { %v2395_v22 = vpop.f32.mrf.mxu1 }
 0x468   :  { %v2397_v24 = vpop.f32.mrf.mxu1 }
 0x46a   :  { %v2399_v26 = vpop.f32.mrf.mxu1 }
 0x46c   :  { %v1806_v27 = vpop.f32.mrf.mxu1 }
 0x46d   :  { %v1061_v28 = vmul.f32 0.125, %v1806_v27 }
 0x46e   :  { %v1041_v29 = vpop.f32.mrf.mxu1 }
 0x46f   :  { %v1060_v30 = vmul.f32 0.125, %v1041_v29  ;;  %v1065_v32 = vsel %vm399_vm1, -1e+30, %v1061_v28 }
 0x470   :  { %v1809_v34 = vpop.f32.mrf.mxu1  ;;  %v1071_v36 = vsel %vm402_vm0, %v1065_v32, -inf }
 0x471   :  { %v1063_v37 = vmul.f32 0.125, %v1809_v34  ;;  %1072 = vmax.xlane.f32.xlu1 %v1071_v36  ;;  %v1064_v31 = vsel %vm398_vm2, -1e+30, %v1060_v30 }
 0x472   :  { %v1051_v33 = vpop.f32.mrf.mxu1  ;;  %v1068_v38 = vsel %vm402_vm0, %v1064_v31, -inf }
 0x473   :  { %v1062_v39 = vmul.f32 0.125, %v1051_v33  ;;  %1069 = vmax.xlane.f32.xlu0 %v1068_v38  ;;  %v1067_v40 = vsel %vm401_vm3, -1e+30, %v1063_v37 }
 0x474   :  { %v1077_v41 = vsel %vm402_vm0, %v1067_v40, -inf }
 0x475   :  { %v1066_v42 = vsel %vm400_vm4, -1e+30, %v1062_v39 }
 0x476   :  { %v1074_v43 = vsel %vm402_vm0, %v1066_v42, -inf }
 0x477   :  { %1078 = vmax.xlane.f32.xlu0 %v1077_v41 }
 0x47b   :  { %1075 = vmax.xlane.f32.xlu0 %v1074_v43 }
 0x482   :  { %1233 = vrot.lane.b32.xlu1 %v2164_v14, %s1987_s26 }
 0x491   :  { %1235 = vrot.lane.b32.xlu0 %v2160_v10, %s1987_s26 }
 0x4fa   :  { %v1073_v44 = vpop.xlane.xlu1 %1072 }
 0x4fb   :  { %v1081_v45 = vsub.f32 %v1065_v32, %v1073_v44 }
 0x4fc   :  { %v1070_v47 = vpop.xlane.xlu0 %1069 }
 0x4fd   :  { %v1086_v48 = vmul.f32 1.442695, %v1081_v45  ;;  %v1080_v50 = vsub.f32 %v1064_v31, %v1070_v47 }
 0x4ff   :  { %1952 = vpow2.f32 %v1086_v48  ;;  %v1084_v35 = vmul.f32 1.442695, %v1080_v50 }
 0x500   :  { %v1079_v46 = vpop.xlane.xlu0 %1078 }
 0x501   :  { %1954 = vpow2.f32 %v1084_v35  ;;  %v1083_v59 = vsub.f32 %v1067_v40, %v1079_v46 }
 0x503   :  { %v1090_v62 = vmul.f32 1.442695, %v1083_v59 }
 0x504   :  { %v1076_v49 = vpop.xlane.xlu0 %1075 }
 0x505   :  { %v1082_v60 = vsub.f32 %v1066_v42, %v1076_v49  ;;  %1956 = vpow2.f32 %v1090_v62 }
 0x507   :  { %v1088_v63 = vmul.f32 1.442695, %v1082_v60 }
 0x508   :  { %v1236_v53 = vpop.permute.xlu0 %1235 }
 0x509   :  { %1824 = vmatprep.subr.msk.mxu0 %vm402_vm0, %v1236_v53  ;;  %1958 = vpow2.f32 %v1088_v63 }
 0x50c   :  { %v1953_v55 = vpop.eup %1952 }
 0x50d   :  { %v1095_v57 = vsel %vm402_vm0, %v1953_v55, 0.0 }
 0x50e   :  { %v1955_v14 = vpop.eup %1954  ;;  %1096 = vadd.xlane.f32.xlu0 %v1095_v57 }
 0x50f   :  { %v1092_v10 = vsel %vm402_vm0, %v1955_v14, 0.0 }
 0x510   :  { %1093 = vadd.xlane.f32.xlu1 %v1092_v10 }
 0x512   :  { %v1957_v1 = vpop.eup %1956 }
 0x513   :  { %v1101_v3 = vsel %vm402_vm0, %v1957_v1, 0.0 }
 0x516   :  { %v1959_v2 = vpop.eup %1958 }
 0x517   :  { %v1098_v4 = vsel %vm402_vm0, %v1959_v2, 0.0 }
 0x521   :  { %1229 = vrot.lane.b32.xlu1 %v2150_v0, %s1987_s26 }
 0x524   :  { %1231 = vrot.lane.b32.xlu0 %v2143_v58, %s1987_s26  ;;  %v1234_v58 = vpop.permute.xlu1 %1233 }
 0x543   :  { %1102 = vadd.xlane.f32.xlu0 %v1101_v3 }
 0x545   :  { %1099 = vadd.xlane.f32.xlu1 %v1098_v4 }
 0x556   :  { %1223 = vrot.lane.b32.xlu1 %v2158_v6, %s1987_s26 }
 0x559   :  { %1221 = vrot.lane.b32.xlu0 %v2139_v54, %s1987_s26 }
 0x55a   :  { %1227 = vrot.lane.b32.xlu1 %v2176_v17, %s1987_s26 }
 0x55d   :  { %1225 = vrot.lane.b32.xlu0 %v2202_v25, %s1987_s26 }
 0x597   :  { %v1097_v0 = vpop.xlane.xlu0 %1096 }
 0x598   :  { %1960 = vrcp.f32 %v1097_v0 }
 0x599   :  { %v1094_v5 = vpop.xlane.xlu1 %1093 }
 0x59a   :  { %1962 = vrcp.f32 %v1094_v5 }
 0x59b   :  { %v1232_v54 = vpop.permute.xlu0 %1231 }
 0x59d   :  { %v1230_v6 = vpop.permute.xlu1 %1229 }
 0x5a5   :  { %v1961_v7 = vpop.eup %1960 }
 0x5a6   :  { %v1109_v11 = vmul.f32 %v1961_v7, %v1953_v55 }
 0x5a7   :  { %v1963_v8 = vpop.eup %1962 }
 0x5a8   :  { %v1108_v9 = vmul.f32 %v1963_v8, %v1955_v14 }
 0x5aa   :  { %1818 = vmatprep.mubr.msk.f32.mxu0 %vm402_vm0, %v1108_v9 }
 0x5ab   :  { %1819 = vmatmul.mubr.msk.f32.vlgmr.msra.gmra.mxu0 %vm402_vm0, %v1109_v11 }
 0x5ac   :  { %1825 = vmatpush3.xpose.msk.msra.mxu0 %vm402_vm0, %v1236_v53 }
 0x5ad   :  { %1826 = vmatprep.subr.msk.mxu0 %vm402_vm0, %v1234_v58 }
 0x5b0   :  { %1827 = vmatpush3.xpose.msk.msra.mxu0 %vm402_vm0, %v1234_v58 }
 0x5b1   :  { %1828 = vmatprep.subr.msk.mxu0 %vm402_vm0, %v1232_v54 }
 0x5b4   :  { %1829 = vmatpush3.xpose.msk.msra.mxu0 %vm402_vm0, %v1232_v54 }
 0x5b5   :  { %1830 = vmatprep.subr.msk.mxu0 %vm402_vm0, %v1230_v6 }
 0x5b8   :  { %1831 = vmatpush3.xpose.msk.msra.mxu0 %vm402_vm0, %v1230_v6 }
 0x5cc   :  { %v1103_v17 = vpop.xlane.xlu0 %1102 }
 0x5cd   :  { %1964 = vrcp.f32 %v1103_v17 }
 0x5ce   :  { %v1100_v25 = vpop.xlane.xlu1 %1099 }
 0x5cf   :  { %1966 = vrcp.f32 %v1100_v25 }
 0x5d0   :  { %v1222_v30 = vpop.permute.xlu0 %1221 }
 0x5d2   :  { %v1224_v34 = vpop.permute.xlu1 %1223 }
 0x5d4   :  { %v1226_v36 = vpop.permute.xlu0 %1225 }
 0x5d6   :  { %v1228_v37 = vpop.permute.xlu1 %1227 }
 0x5da   :  { %v1965_v27 = vpop.eup %1964 }
 0x5db   :  { %v1111_v32 = vmul.f32 %v1965_v27, %v1957_v1 }
 0x5dc   :  { %v1967_v28 = vpop.eup %1966 }
 0x5dd   :  { %v1110_v29 = vmul.f32 %v1967_v28, %v1959_v2 }
 0x5df   :  { %1821 = vmatprep.mubr.msk.f32.mxu0 %vm402_vm0, %v1110_v29 }
 0x5e0   :  { %1822 = vmatmul.mubr.msk.f32.gmra.mxu0 %vm402_vm0, %v1111_v32 }
 0x5e1   :  { %1832 = vmatprep.mubr.msk.f32.mxu0 %vm402_vm0, %v1222_v30 }
 0x5e4   :  { %1833 = vmatmul.mubr.msk.f32.vlgmr.msra.gmra.mxu0 %vm402_vm0, %v1224_v34 }
 0x5e5   :  { %1835 = vmatprep.mubr.msk.f32.mxu0 %vm402_vm0, %v1226_v36 }
 0x5e8   :  { %1836 = vmatmul.mubr.msk.f32.gmra.mxu0 %vm402_vm0, %v1228_v37 }
 0x66b   :  { %v2449_v31 = vpop.f32.mrf.mxu0 }
 0x66d   :  { %v1202_v33 = vpop.f32.mrf.mxu0 }
 0x6a0   :  { %v2451_v38 = vpop.f32.mrf.mxu0 }
 0x6a2   :  { %v1212_v39 = vpop.f32.mrf.mxu0 }
 0x6a4   :  { %v1834_v40 = vpop.f32.mrf.mxu0 }
 0x6a5   :  { %v1339_v41 = vmul.f32 0.125, %v1834_v40 }
 0x6a6   :  { %v1319_v42 = vpop.f32.mrf.mxu0 }
 0x6a7   :  { %v1338_v43 = vmul.f32 0.125, %v1319_v42  ;;  %v1343_v44 = vsel %vm399_vm1, -1e+30, %v1339_v41 }
 0x6a8   :  { %v1837_v45 = vpop.f32.mrf.mxu0  ;;  %v1349_v47 = vsel %vm402_vm0, %v1343_v44, -inf }
 0x6a9   :  { %1350 = vmax.xlane.f32.xlu1 %v1349_v47  ;;  %v1342_v48 = vsel %vm398_vm2, -1e+30, %v1338_v43  ;;  %v1341_v46 = vmul.f32 0.125, %v1837_v45 }
 0x6aa   :  { %v1329_v50 = vpop.f32.mrf.mxu0  ;;  %v1346_v35 = vsel %vm402_vm0, %v1342_v48, -inf }
 0x6ab   :  { %v1340_v49 = vmul.f32 0.125, %v1329_v50  ;;  %1347 = vmax.xlane.f32.xlu0 %v1346_v35  ;;  %v1345_v51 = vsel %vm401_vm3, -1e+30, %v1341_v46 }
 0x6ac   :  { %v1355_v57 = vsel %vm402_vm0, %v1345_v51, -inf }
 0x6ad   :  { %v1344_v53 = vsel %vm400_vm4, -1e+30, %v1340_v49 }
 0x6ae   :  { %v1352_v55 = vsel %vm402_vm0, %v1344_v53, -inf }
 0x6af   :  { %1353 = vmax.xlane.f32.xlu0 %v1352_v55 }
 0x6b3   :  { %1356 = vmax.xlane.f32.xlu0 %v1355_v57 }
 0x6ba   :  { %1396 = vrot.lane.b32.xlu1 %v2167_v16, %s1987_s26 }
 0x732   :  { %v1351_v52 = vpop.xlane.xlu1 %1350 }
 0x733   :  { %v1359_v14 = vsub.f32 %v1343_v44, %v1351_v52 }
 0x734   :  { %v1348_v10 = vpop.xlane.xlu0 %1347 }
 0x735   :  { %v1364_v59 = vmul.f32 1.442695, %v1359_v14  ;;  %v1358_v60 = vsub.f32 %v1342_v48, %v1348_v10 }
 0x736   :  { %v1397_v62 = vpop.permute.xlu1 %1396 }
 0x737   :  { %1968 = vpow2.f32 %v1364_v59  ;;  %v1362_v61 = vmul.f32 1.442695, %v1358_v60  ;;  %1838 = vmatprep.subr.mxu1 %v1397_v62 }
 0x738   :  { %1839 = vmatpush3.msra.mxu1 %v1397_v62  ;;  %v1354_v63 = vpop.xlane.xlu0 %1353 }
 0x739   :  { %1970 = vpow2.f32 %v1362_v61  ;;  %v1360_v7 = vsub.f32 %v1344_v53, %v1354_v63 }
 0x73b   :  { %v1366_v8 = vmul.f32 1.442695, %v1360_v7 }
 0x73c   :  { %v1357_v56 = vpop.xlane.xlu0 %1356 }
 0x73d   :  { %v1361_v1 = vsub.f32 %v1345_v51, %v1357_v56 }
 0x73f   :  { %v1368_v2 = vmul.f32 1.442695, %v1361_v1 }
 0x741   :  { %1972 = vpow2.f32 %v1368_v2 }
 0x742   :  { %1974 = vpow2.f32 %v1366_v8 }
 0x744   :  { %v1969_v3 = vpop.eup %1968 }
 0x745   :  { %v1373_v4 = vsel %vm402_vm0, %v1969_v3, 0.0 }
 0x746   :  { %v1971_v16 = vpop.eup %1970  ;;  %1374 = vadd.xlane.f32.xlu0 %v1373_v4 }
 0x747   :  { %v1370_v58 = vsel %vm402_vm0, %v1971_v16, 0.0 }
 0x748   :  { %1371 = vadd.xlane.f32.xlu1 %v1370_v58 }
 0x74e   :  { %v1973_v0 = vpop.eup %1972 }
 0x74f   :  { %v1379_v5 = vsel %vm402_vm0, %v1973_v0, 0.0  ;;  %v1975_v9 = vpop.eup %1974 }
 0x750   :  { %1380 = vadd.xlane.f32.xlu0 %v1379_v5  ;;  %v1376_v11 = vsel %vm402_vm0, %v1975_v9, 0.0 }
 0x759   :  { %1392 = vrot.lane.b32.xlu1 %v2189_v21, %s1987_s26 }
 0x766   :  { %1394 = vrot.lane.b32.xlu0 %v2180_v18, %s1987_s26 }
 0x76a   :  { %1503 = vrot.lane.b32.xlu0 %v2395_v22, %s1987_s26 }
 0x76e   :  { %1507 = vrot.lane.b32.xlu0 %v2399_v26, %s1987_s26 }
 0x772   :  { %1519 = vrot.lane.b32.xlu0 %v1202_v33, %s1986_s1 }
 0x776   :  { %1523 = vrot.lane.b32.xlu0 %v1212_v39, %s1986_s1 }
 0x77d   :  { %1377 = vadd.xlane.f32.xlu1 %v1376_v11 }
 0x78e   :  { %1390 = vrot.lane.b32.xlu1 %v2198_v23, %s1987_s26 }
 0x792   :  { %1505 = vrot.lane.b32.xlu1 %v2393_v20, %s1987_s26 }
 0x796   :  { %1509 = vrot.lane.b32.xlu1 %v2397_v24, %s1987_s26 }
 0x79a   :  { %1521 = vrot.lane.b32.xlu1 %v2449_v31, %s1986_s1 }
 0x79e   :  { %1525 = vrot.lane.b32.xlu1 %v2451_v38, %s1986_s1 }
 0x7cf   :  { %v1375_v21 = vpop.xlane.xlu0 %1374 }
 0x7d1   :  { %v1372_v18 = vpop.xlane.xlu1 %1371 }
 0x7d2   :  { %1976 = vrcp.f32 %v1372_v18 }
 0x7d3   :  { %1978 = vrcp.f32 %v1375_v21 }
 0x7d5   :  { %v1393_v23 = vpop.permute.xlu1 %1392 }
 0x7d9   :  { %v1381_v22 = vpop.xlane.xlu0 %1380 }
 0x7da   :  { %1980 = vrcp.f32 %v1381_v22 }
 0x7dd   :  { %v1395_v26 = vpop.permute.xlu0 %1394 }
 0x7de   :  { %1840 = vmatprep.subr.mxu1 %v1395_v26 }
 0x7df   :  { %v1977_v54 = vpop.eup %1976  ;;  %1841 = vmatpush3.msra.mxu1 %v1395_v26 }
 0x7e0   :  { %1842 = vmatprep.subr.mxu1 %v1393_v23  ;;  %v1386_v20 = vmul.f32 %v1977_v54, %v1971_v16  ;;  %v1979_v6 = vpop.eup %1978 }
 0x7e1   :  { %1843 = vmatpush3.msra.mxu1 %v1393_v23  ;;  %v1387_v25 = vmul.f32 %v1979_v6, %v1969_v3  ;;  %v1504_v33 = vpop.permute.xlu0 %1503 }
 0x7e2   :  { %1846 = vmatprep.mubr.msk.f32.mxu1 %vm402_vm0, %v1386_v20  ;;  %v1547_v48 = vsel %vm402_vm0, %v2387_v13, %v1504_v33 }
 0x7e5   :  { %v1508_v39 = vpop.permute.xlu0 %1507 }
 0x7e6   :  { %v1549_v55 = vsel %vm402_vm0, %v2391_v19, %v1508_v39 }
 0x7e7   :  { %v1981_v27 = vpop.eup %1980 }
 0x7e8   :  { %v1389_v30 = vmul.f32 %v1981_v27, %v1973_v0 }
 0x7e9   :  { %v1520_v41 = vpop.permute.xlu0 %1519 }
 0x7ea   :  { %v1552_v35 = vsel %vm1551_vm6, %v1547_v48, %v1520_v41 }
 0x7ed   :  { %v1524_v43 = vpop.permute.xlu0 %1523 }
 0x7ee   :  { %v1554_v57 = vsel %vm1551_vm6, %v1549_v55, %v1524_v43 }
 0x806   :  { %v1378_v24 = vpop.xlane.xlu1 %1377 }
 0x807   :  { %1982 = vrcp.f32 %v1378_v24 }
 0x80a   :  { %v1391_v17 = vpop.permute.xlu1 %1390 }
 0x80b   :  { %1844 = vmatprep.subr.mxu1 %v1391_v17 }
 0x80c   :  { %1845 = vmatpush3.msra.mxu1 %v1391_v17 }
 0x80d   :  { %1847 = vmatmul.mubr.msk.f32.vlgmr.msra.gmra.mxu1 %vm402_vm0, %v1387_v25 }
 0x80e   :  { %v1506_v31 = vpop.permute.xlu1 %1505 }
 0x80f   :  { %v1548_v44 = vsel %vm402_vm0, %v2385_v12, %v1506_v31 }
 0x812   :  { %v1510_v38 = vpop.permute.xlu1 %1509 }
 0x813   :  { %v1550_v12 = vsel %vm402_vm0, %v2389_v15, %v1510_v38 }
 0x814   :  { %v1983_v28 = vpop.eup %1982 }
 0x815   :  { %v1388_v29 = vmul.f32 %v1983_v28, %v1975_v9 }
 0x816   :  { %v1522_v40 = vpop.permute.xlu1 %1521 }
 0x817   :  { %1849 = vmatprep.mubr.msk.f32.mxu1 %vm402_vm0, %v1388_v29  ;;  %v1553_v45 = vsel %vm1551_vm6, %v1548_v44, %v1522_v40 }
 0x818   :  { %1850 = vmatmul.mubr.msk.f32.gmra.mxu1 %vm402_vm0, %v1389_v30 }
 0x81a   :  { %v1526_v42 = vpop.permute.xlu1 %1525 }
 0x81b   :  { %v1555_v13 = vsel %vm1551_vm6, %v1550_v12, %v1526_v42 }
 0x8cd   :  { %v1848_v32 = vpop.f32.mrf.mxu1 }
 0x8ce   :  { %1537 = vrot.lane.b32.xlu1 %v1848_v32, %s1985_s0 }
 0x8cf   :  { %v1480_v34 = vpop.f32.mrf.mxu1 }
 0x8d0   :  { %1535 = vrot.lane.b32.xlu0 %v1480_v34, %s1985_s0 }
 0x8d8   :  { %v1851_v36 = vpop.f32.mrf.mxu1 }
 0x8d9   :  { %1541 = vrot.lane.b32.xlu1 %v1851_v36, %s1985_s0 }
 0x8da   :  { %v1490_v37 = vpop.f32.mrf.mxu1 }
 0x8db   :  { %1539 = vrot.lane.b32.xlu0 %v1490_v37, %s1985_s0 }
 0x940   :  { %v1538_v47 = vpop.permute.xlu1 %1537 }
 0x941   :  { %v1558_v50 = vsel %vm1556_vm5, %v1553_v45, %v1538_v47 }
 0x942   :  { %1562 = vst [vmem:[%s2532_s5 + $0x8] sm:$0xff] %v1558_v50  ;;  %v1536_v46 = vpop.permute.xlu0 %1535 }
 0x943   :  { %v1557_v49 = vsel %vm1556_vm5, %v1552_v35, %v1536_v46 }
 0x944   :  { %1561 = vst [vmem:[%s2532_s5] sm:$0xff] %v1557_v49 }
 0x94b   :  { %v1542_v53 = vpop.permute.xlu1 %1541 }
 0x94c   :  { %v1560_v51 = vsel %vm1556_vm5, %v1555_v13, %v1542_v53 }
 0x94d   :  { %1564 = vst [vmem:[%s2532_s5 + $0x18] sm:$0xff] %v1560_v51  ;;  %v1540_v52 = vpop.permute.xlu0 %1539 }
 0x94e   :  { %v1559_v14 = vsel %vm1556_vm5, %v1554_v57, %v1540_v52 }
 0x94f   :  { %1563 = vst [vmem:[%s2532_s5 + $0x10] sm:$0xff] %v1559_v14 }

// kernel: interaction_forward.3
= control target key start
LH: loop header
LB: loop body
LE: loop exit
PB: predicated region body
PF: predicated region fallthrough
CT: control target
= control target key end

     0   :  { %s6250_s6 = smov 1   ;;  %s6251_s10 = smov 2   ;;  %s8262_s0 = inlined_call_operand.smem [shape: u32[31], index: -1, kind: input, shape index: {}] }
   0x1   :  { %s6296_s5 = sld [smem:[%s8262_s0]]   ;;  %s6252_s14 = smov 3  }
   0x2   :  { %s6301_s9 = sld [smem:[%s8262_s0 + %s6250_s6]]   ;;  %s6253_s18 = smov 4  }
   0x3   :  { %s6306_s13 = sld [smem:[%s8262_s0 + %s6251_s10]]   ;;  %s6254_s22 = smov 5  }
   0x4   :  { %s6311_s17 = sld [smem:[%s8262_s0 + %s6252_s14]]   ;;  %s6255_s26 = smov 6  }
   0x5   :  { %s6316_s21 = sld [smem:[%s8262_s0 + %s6253_s18]]   ;;  %s6256_s30 = smov 7  }
   0x6   :  { %s6321_s25 = sld [smem:[%s8262_s0 + %s6254_s22]]   ;;  %s6257_s4 = smov 8  }
   0x7   :  { %8317 = sst [smem:[#allocation8_spill]] %s6296_s5  ;;  %s6258_s10 = smov 9  }
   0x8   :  { %8318 = sst [smem:[#allocation9_spill]] %s6301_s9  ;;  %s6259_s15 = smov 10  }
   0x9   :  { %8319 = sst [smem:[#allocation10_spill]] %s6306_s13  ;;  %s6260_s20 = smov 11  }
   0xa   :  { %8320 = sst [smem:[#allocation11_spill]] %s6311_s17  ;;  %s6262_s1 = smov 13  }
   0xb   :  { %s6326_s29 = sld [smem:[%s8262_s0 + %s6255_s26]]   ;;  %s6261_s26 = smov 12  }
   0xc   :  { %s6331_s3 = sld [smem:[%s8262_s0 + %s6256_s30]]   ;;  %s6263_s7 = smov 14  }
   0xd   :  { %s6336_s8 = sld [smem:[%s8262_s0 + %s6257_s4]]   ;;  %s6265_s22 = smov 16  }
   0xe   :  { %s6341_s14 = sld [smem:[%s8262_s0 + %s6258_s10]]   ;;  %s6266_s28 = smov 17  }
   0xf   :  { %s6346_s19 = sld [smem:[%s8262_s0 + %s6259_s15]]   ;;  %s6264_s15 = smov 15  }
  0x10   :  { %s6351_s24 = sld [smem:[%s8262_s0 + %s6260_s20]]  }
  0x11   :  { %s6356_s30 = sld [smem:[%s8262_s0 + %s6261_s26]]  }
  0x12   :  { %8321 = sst [smem:[#allocation12_spill]] %s6331_s3 }
  0x13   :  { %8322 = sst [smem:[#allocation13_spill]] %s6336_s8 }
  0x14   :  { %8323 = sst [smem:[#allocation14_spill]] %s6341_s14 }
  0x15   :  { %8324 = sst [smem:[#allocation15_spill]] %s6346_s19 }
  0x16   :  { %8325 = sst [smem:[#allocation16_spill]] %s6351_s24 }
  0x17   :  { %8326 = sst [smem:[#allocation17_spill]] %s6356_s30 }
  0x18   :  { %s6361_s6 = sld [smem:[%s8262_s0 + %s6262_s1]]  }
  0x19   :  { %s6366_s12 = sld [smem:[%s8262_s0 + %s6263_s7]]   ;;  %s6267_s7 = smov 18  }
  0x1a   :  { %s6371_s20 = sld [smem:[%s8262_s0 + %s6264_s15]]   ;;  %s6268_s15 = smov 19  }
  0x1b   :  { %s6376_s27 = sld [smem:[%s8262_s0 + %s6265_s22]]   ;;  %s6269_s22 = smov 20  }
  0x1c   :  { %s6381_s4 = sld [smem:[%s8262_s0 + %s6266_s28]]   ;;  %s6270_s28 = smov 21  }
  0x1d   :  { %s6386_s30 = sld [smem:[%s8262_s0 + %s6267_s7]]   ;;  %s6271_s7 = smov 22  }
  0x1e   :  { %8327 = sst [smem:[#allocation18_spill]] %s6361_s6 }
  0x1f   :  { %8328 = sst [smem:[#allocation19_spill]] %s6366_s12 }
  0x20   :  { %s6391_s24 = sld [smem:[%s8262_s0 + %s6268_s15]]   ;;  %s6272_s15 = smov 23  }
  0x21   :  { %s6396_s19 = sld [smem:[%s8262_s0 + %s6269_s22]]   ;;  %s6273_s22 = smov 24  }
  0x22   :  { %8329 = sst [smem:[#allocation20_spill]] %s6381_s4 }
  0x23   :  { %8330 = sst [smem:[#allocation21_spill]] %s6386_s30 }
  0x24   :  { %s6401_s8 = sld [smem:[%s8262_s0 + %s6270_s28]]   ;;  %s6274_s28 = smov 25  }
  0x25   :  { %s6406_s3 = sld [smem:[%s8262_s0 + %s6271_s7]]   ;;  %s6275_s7 = smov 26  }
  0x26   :  { %s6411_s14 = sld [smem:[%s8262_s0 + %s6272_s15]]   ;;  %s6276_s15 = smov 27  }
  0x27   :  { %8331 = sst [smem:[#allocation22_spill]] %s6396_s19 }
  0x28   :  { %s6416_s19 = sld [smem:[%s8262_s0 + %s6273_s22]]   ;;  %s6277_s22 = smov 28  }
  0x29   :  { %s6421_s30 = sld [smem:[%s8262_s0 + %s6274_s28]]   ;;  %s6278_s28 = smov 29  }
  0x2a   :  { %8332 = sst [smem:[#allocation23_spill]] %s6401_s8 }
  0x2b   :  { %8333 = sst [smem:[#allocation24_spill]] %s6406_s3 }
  0x2c   :  { %8334 = sst [smem:[#allocation25_spill]] %s6411_s14 }
  0x2d   :  { %s6426_s3 = sld [smem:[%s8262_s0 + %s6275_s7]]   ;;  %s6279_s7 = smov 30  }
  0x2e   :  { %8335 = sst [smem:[#allocation26_spill]] %s6416_s19 }
  0x2f   :  { %8336 = sst [smem:[#allocation27_spill]] %s6421_s30 }
  0x30   :  { %s6431_s14 = sld [smem:[%s8262_s0 + %s6276_s15]]  }
  0x31   :  { %s6436_s19 = sld [smem:[%s8262_s0 + %s6277_s22]]  }
  0x32   :  { %s6441_s30 = sld [smem:[%s8262_s0 + %s6278_s28]]  }
  0x33   :  { %8337 = sst [smem:[#allocation28_spill]] %s6426_s3 }
  0x34   :  { %s6446_s3 = sld [smem:[%s8262_s0 + %s6279_s7]]  }
  0x3a   :  { %8338 = sst [smem:[#allocation29_spill]] %s6446_s3 }
  0x3b   :  { %67 = vsyncpa [#allocation3], 0 }
  0x3c   :  { %69 = vsyncpa [#allocation3 + $0x1], 0 }
  0x3d   :  { %70 = vsyncpa [#allocation5], 0 }
  0x3e   :  { %72 = vsyncpa [#allocation5 + $0x1], 0  ;;  %s6448_s15 = smov 0   ;;  %s6450_s16 = smov 0  }
  0x3f   :  { %s6452_s18 = smov 0   ;;  %s6454_s22 = smov 0  }
  0x40 LB: > { %s8339_s8 = sld [smem:[#allocation23_spill]]  ;;  %s6469_s0 = sadd.s32 4294967295, %s6248_s22   ;;  %s6240_s16 = sphi %s6450_s16, %s8540_s16   ;;  %s6236_s15 = sphi %s6448_s15, %s8539_s15   ;;  %s6248_s22 = sphi %s6454_s22, %s8542_s22   ;;  %s6244_s18 = sphi %s6452_s18, %s8541_s18  }
  0x41   : > { %s8340_s4 = sld [smem:[#allocation20_spill]]  ;;  %s5289_s23 = sadd.s32 4294967294, %s6248_s22  }
  0x42   : > { %s6473_s26 = sadd.s32 1, %s6248_s22   ;;  %s696_s28 = sadd.s32 1, %s6244_s18 }
  0x43   : > { %s693_s1 = ssub.s32 %s6248_s22, %s6473_s26  ;;  %p706_p0 = scmp.ne.s32.totalorder %s6244_s18, %s6240_s16 }
  0x44   : > { %p694_p1 = scmp.eq.s32.totalorder %s693_s1, 0  ;;  %p707_p2 = scmp.eq.s32.totalorder %s6469_s0, 1 }
  0x45   : > { %p712_p3 = scmp.ne.s32.totalorder %s6240_s16, %s6236_s15  ;;  %p713_p4 = scmp.eq.s32.totalorder %s5289_s23, 1 }
  0x46   : > { %s6484_s2 = scalar_select %p694_p1, %s6244_s18, %s696_s28  }
  0x47   : > { %p6486_p5 = por %p707_p2, %p706_p0  ;;  %p6490_p6 = por %p713_p4, %p712_p3 }
  0x48   : > { %p5292_p7 = scmp.ge.s32.totalorder %s6248_s22, 1  ;;  %p991_p8 = scmp.lt.s32.totalorder %s6248_s22, 3 }
  0x4a   : > { %p992_p9 = pnand %p5292_p7, %p991_p8 }
  0x4c   : > { %995 = sbr.rel (%p992_p9) target bundleno = 1324 (0x52c), region = 124 }
  0x51   : > { %s8343_s6 = sld [smem:[#allocation18_spill]]  ;;  %s5295_s11 = sshll.u32 %s6469_s0, 4  ;;  %v5873_v1 = vld [vmem:[%s6371_s20] sm:$0xff]   ;;  %v1747_v2 = vlaneseq  ;;  %v5876_v3 = vld [vmem:[%s8340_s4 + $0xac] ss:$12 sps:$4 sm:$0xff]   ;;  %vm1287_vm0 = vcmask 130048  }
  0x52   : > { %s8344_s5 = sld [smem:[#allocation8_spill]]  ;;  %p1150_p10 = scmp.lt.s32.totalorder %s5295_s11, 31  ;;  %5686 = vmatprep.subr.bf16.mxu1 %v5873_v1  ;;  %v5874_v16 = vld [vmem:[%s8340_s4 + $0xa8] ss:$12 sps:$4 sm:$0xff]   ;;  %v5877_v18 = vld [vmem:[%s8340_s4 + $0x90] ss:$12 sps:$4 sm:$0xff]  }
  0x53   : > { %s5297_s23 = sshll.u32 %s6469_s0, 1  ;;  %5687 = vmatpush3.bf16.msra.mxu1 %v5873_v1  ;;  %v6504_v4 = vshrl.u32 %v1747_v2, 7  ;;  %s8345_s17 = sld [smem:[#allocation11_spill]]  ;;  %v5879_v17 = vld [vmem:[%s8340_s4 + $0x94] ss:$12 sps:$4 sm:$0xff]   ;;  %vm2964_vm1 = vcmask 1041409  }
  0x54   : > { %s8544_s11 = smov (!%p1150_p10, %s5295_s11), 31  ;;  %p1156_p11 = scmp.lt.s32.totalorder %s5297_s23, 3  ;;  %v5882_v28 = vld [vmem:[%s8340_s4 + $0x7c] ss:$12 sps:$4 sm:$0xff]   ;;  %v5880_v31 = vld [vmem:[%s8340_s4 + $0x78] ss:$12 sps:$4 sm:$0xff]  }
  0x55   : > { %s5296_s28 = sshll.u32 %s8544_s11, 3  ;;  %v6521_v14 = vsub.s32 0, %v6504_v4  ;;  %v6524_v15 = vsub.s32 2, %v6504_v4  ;;  %v6547_v26 = vsub.s32 1, %v6504_v4  ;;  %v6550_v27 = vsub.s32 3, %v6504_v4  ;;  %s8349_s9 = sld [smem:[#allocation9_spill]] }
  0x56   : > { %s8546_s23 = smov (!%p1156_p11, %s5297_s23), 3  ;;  %v6557_v34 = vsub.s32 4, %v6504_v4  ;;  %v6560_v35 = vsub.s32 5, %v6504_v4  ;;  %v5885_v36 = vld [vmem:[%s8340_s4 + $0x64] ss:$12 sps:$4 sm:$0xff]   ;;  %v6572_v41 = vsub.s32 6, %v6504_v4 }
  0x57   : > { %v5872_v0 = vld [vmem:[%s8343_s6] sm:$0xff]   ;;  %8346 = vst [vmem:[#allocation30_spill] sm:$0xff] %v6521_v14  ;;  %8347 = vst [vmem:[#allocation31_spill] sm:$0xff] %v6524_v15  ;;  %v6575_v42 = vsub.s32 7, %v6504_v4  ;;  %v5888_v62 = vld [vmem:[%s8340_s4 + $0x4c] ss:$12 sps:$4 sm:$0xff]  }
  0x58   : > { %5668 = vmatprep.subr.bf16.mxu0 %v5872_v0  ;;  %s6507_s1 = scalar_lea.vmem %s8344_s5, %s5296_s28  ;;  %s6518_s28 = sshll.u32 %s8546_s23, 3  ;;  %8348 = vst [vmem:[#allocation32_spill] sm:$0xff] %v6547_v26  ;;  %v5883_v43 = vld [vmem:[%s8340_s4 + $0x60] ss:$12 sps:$4 sm:$0xff]   ;;  %v5886_v63 = vld [vmem:[%s8340_s4 + $0x48] ss:$12 sps:$4 sm:$0xff]  }
  0x59   : > { %5669 = vmatpush3.bf16.msra.mxu0 %v5872_v0  ;;  %v1248_v5 = vld [vmem:[%s6507_s1] sm:$0xff]  ;;  %v1249_v6 = vld [vmem:[%s6507_s1 + $0x8] sm:$0xff]  ;;  %v1250_v7 = vld [vmem:[%s6507_s1 + $0x10] sm:$0xff]  ;;  %s6531_s5 = scalar_lea.vmem %s8345_s17, %s6518_s28  ;;  %s8351_s12 = sld [smem:[#allocation19_spill]]  ;;  %vm2966_vm2 = vcmask 1042434   ;;  %vm2968_vm3 = vcmask 1043459  }
  0x5a   : > { %2492 = vmatprep.subr.bf16.mxu0 %v5876_v3  ;;  %v1264_v8 = vpack.c.bf16 %v1249_v6, %v1248_v5  ;;  %v1251_v9 = vld [vmem:[%s6507_s1 + $0x18] sm:$0xff]  ;;  %v1252_v10 = vld [vmem:[%s6507_s1 + $0x20] sm:$0xff]  ;;  %v1253_v11 = vld [vmem:[%s6507_s1 + $0x28] sm:$0xff]  ;;  %s8352_s13 = sld [smem:[#allocation10_spill]]  ;;  %vm2970_vm4 = vcmask 1044484   ;;  %vm2972_vm5 = vcmask 1045509  }
  0x5b   : > { %v1265_v12 = vpack.c.bf16 %v1251_v9, %v1250_v7  ;;  %v1266_v13 = vpack.c.bf16 %v1253_v11, %v1252_v10  ;;  %v1254_v19 = vld [vmem:[%s6507_s1 + $0x30] sm:$0xff]  ;;  %v1255_v20 = vld [vmem:[%s6507_s1 + $0x38] sm:$0xff]  ;;  %v1745_v21 = vld [vmem:[%s6531_s5] sm:$0xff]  ;;  %vm2974_vm6 = vcmask 1046534   ;;  %vm2976_vm7 = vcmask 1047559   ;;  %s8526_s3 = sld [smem:[#allocation29_spill]] }
  0x5c   : > { %5670 = vmatprep.mubr.msk.bf16.mxu0 %vm1287_vm0, %v1264_v8  ;;  %5688 = vmatprep.mubr.msk.bf16.mxu1 %vm1287_vm0, %v1264_v8  ;;  %v1256_v22 = vld [vmem:[%s6507_s1 + $0x40] sm:$0xff]  ;;  %v1257_v23 = vld [vmem:[%s6507_s1 + $0x48] sm:$0xff]  ;;  %v1750_v24 = vrot.slane %v1745_v21, %v6521_v14  ;;  %v1764_v25 = vrot.slane %v1745_v21, %v6524_v15  ;;  %v1267_v29 = vpack.c.bf16 %v1255_v20, %v1254_v19  ;;  %v1258_v37 = vld [vmem:[%s6507_s1 + $0x50] sm:$0xff]  ;;  %vm6283_vm8 = vmmov 0  }
  0x5d   : > { %5671 = vmatmul.mubr.msk.bf16.vlgmr.msra.gmra.mxu0 %vm1287_vm0, %v1265_v12  ;;  %5689 = vmatmul.mubr.msk.bf16.vlgmr.msra.gmra.mxu1 %vm1287_vm0, %v1265_v12  ;;  %v1268_v30 = vpack.c.bf16 %v1257_v23, %v1256_v22  ;;  %v1757_v32 = vrot.slane %v1745_v21, %v6547_v26  ;;  %v1771_v33 = vrot.slane %v1745_v21, %v6550_v27  ;;  %v1259_v38 = vld [vmem:[%s6507_s1 + $0x58] sm:$0xff]  ;;  %v1260_v39 = vld [vmem:[%s6507_s1 + $0x60] sm:$0xff]  ;;  %v1261_v40 = vld [vmem:[%s6507_s1 + $0x68] sm:$0xff] }
  0x5e   : > { %5674 = vmatprep.mubr.msk.bf16.mxu0 %vm1287_vm0, %v1266_v13  ;;  %5692 = vmatprep.mubr.msk.bf16.mxu1 %vm1287_vm0, %v1266_v13  ;;  %v1778_v44 = vrot.slane %v1745_v21, %v6557_v34  ;;  %v1785_v45 = vrot.slane %v1745_v21, %v6560_v35  ;;  %v1269_v46 = vpack.c.bf16 %v1259_v38, %v1258_v37  ;;  %v1746_v48 = vld [vmem:[%s6531_s5 + $0x8] sm:$0xff]  ;;  %v1262_v51 = vld [vmem:[%s6507_s1 + $0x70] sm:$0xff]  ;;  %v1263_v52 = vld [vmem:[%s6507_s1 + $0x78] sm:$0xff]  ;;  %s1177_s5 = scalar_lea.vmem %s6316_s21, %s6518_s28  ;;  %s1183_s1 = scalar_lea.vmem %s6321_s25, %s6518_s28 }
  0x5f   : > { %2493 = vmatpush1.bf16.msra.mxu0 %v5874_v16  ;;  %1752 = vbcast.lane.b32.xlu0 %v1750_v24, 256  ;;  %v1270_v47 = vpack.c.bf16 %v1261_v40, %v1260_v39  ;;  %v1792_v49 = vrot.slane %v1745_v21, %v6572_v41  ;;  %v1799_v50 = vrot.slane %v1745_v21, %v6575_v42  ;;  %v5891_v0 = vld [vmem:[%s8340_s4 + $0x34] ss:$12 sps:$4 sm:$0xff]   ;;  %v5889_v1 = vld [vmem:[%s8340_s4 + $0x30] ss:$12 sps:$4 sm:$0xff]  }
  0x60   : > { %2494 = vmatprep.subr.bf16.mxu0 %v5879_v17  ;;  %1766 = vbcast.lane.b32.xlu1 %v1764_v25, 256  ;;  %v1806_v53 = vrot.slane %v1746_v48, %v6521_v14  ;;  %v1813_v54 = vrot.slane %v1746_v48, %v6547_v26  ;;  %v1271_v55 = vpack.c.bf16 %v1263_v52, %v1262_v51  ;;  %v5894_v2 = vld [vmem:[%s8340_s4 + $0x1c] ss:$12 sps:$4 sm:$0xff]   ;;  %v5892_v3 = vld [vmem:[%s8340_s4 + $0x18] ss:$12 sps:$4 sm:$0xff]  }
  0x61   : > { %v1820_v56 = vrot.slane %v1746_v48, %v6524_v15  ;;  %v1827_v57 = vrot.slane %v1746_v48, %v6550_v27  ;;  %v1834_v58 = vrot.slane %v1746_v48, %v6557_v34  ;;  %v1841_v59 = vrot.slane %v1746_v48, %v6560_v35  ;;  %v5897_v5 = vld [vmem:[%s8340_s4 + $0x4] ss:$12 sps:$4 sm:$0xff]   ;;  %v5895_v6 = vld [vmem:[%s8340_s4] ss:$12 sps:$4 sm:$0xff]   ;;  %v5898_v9 = vld [vmem:[%s8340_s4 + $0x168] ss:$12 sps:$4 sm:$0xff]  }
  0x62   : > { %v1848_v60 = vrot.slane %v1746_v48, %v6572_v41  ;;  %v1855_v61 = vrot.slane %v1746_v48, %v6575_v42  ;;  %v5900_v7 = vld [vmem:[%s8340_s4 + $0x16c] ss:$12 sps:$4 sm:$0xff]   ;;  %v5901_v8 = vld [vmem:[%s8340_s4 + $0x170] ss:$12 sps:$4 sm:$0xff]   ;;  %v5905_v11 = vld [vmem:[%s8340_s4 + $0x154] ss:$12 sps:$4 sm:$0xff]  }
  0x63   : > { %2495 = vmatpush1.bf16.msra.mxu0 %v5877_v18  ;;  %1759 = vbcast.lane.b32.xlu0 %v1757_v32, 256  ;;  %v5902_v10 = vld [vmem:[%s8340_s4 + $0xb0] ss:$12 sps:$4 sm:$0xff]   ;;  %v5906_v12 = vld [vmem:[%s8340_s4 + $0x158] ss:$12 sps:$4 sm:$0xff]  }
  0x64   : > { %2496 = vmatprep.subr.bf16.mxu0 %v5882_v28  ;;  %1773 = vbcast.lane.b32.xlu1 %v1771_v33, 256  ;;  %v5903_v13 = vld [vmem:[%s8340_s4 + $0x150] ss:$12 sps:$4 sm:$0xff]   ;;  %v5907_v16 = vld [vmem:[%s8340_s4 + $0x98] ss:$12 sps:$4 sm:$0xff]  }
  0x65   : > { %5675 = vmatmul.mubr.msk.bf16.gmra.mxu0 %vm1287_vm0, %v1267_v29  ;;  %5693 = vmatmul.mubr.msk.bf16.gmra.mxu1 %vm1287_vm0, %v1267_v29  ;;  %v5910_v17 = vld [vmem:[%s8340_s4 + $0x13c] ss:$12 sps:$4 sm:$0xff]   ;;  %v5911_v18 = vld [vmem:[%s8340_s4 + $0x140] ss:$12 sps:$4 sm:$0xff]   ;;  %v5908_v19 = vld [vmem:[%s8340_s4 + $0x138] ss:$12 sps:$4 sm:$0xff]  }
  0x66   : > { %5678 = vmatprep.mubr.msk.bf16.mxu0 %vm1287_vm0, %v1268_v30  ;;  %5696 = vmatprep.mubr.msk.bf16.mxu1 %vm1287_vm0, %v1268_v30  ;;  %v5912_v20 = vld [vmem:[%s8340_s4 + $0x80] ss:$12 sps:$4 sm:$0xff]   ;;  %v5915_v21 = vld [vmem:[%s8340_s4 + $0x124] ss:$12 sps:$4 sm:$0xff]   ;;  %v5916_v22 = vld [vmem:[%s8340_s4 + $0x128] ss:$12 sps:$4 sm:$0xff]  }
  0x67   : > { %2497 = vmatpush1.bf16.msra.mxu0 %v5880_v31  ;;  %1780 = vbcast.lane.b32.xlu0 %v1778_v44, 256  ;;  %v5913_v23 = vld [vmem:[%s8340_s4 + $0x120] ss:$12 sps:$4 sm:$0xff]   ;;  %v5917_v24 = vld [vmem:[%s8340_s4 + $0x68] ss:$12 sps:$4 sm:$0xff]  }
  0x68   : > { %2498 = vmatprep.subr.bf16.mxu0 %v5885_v36  ;;  %1787 = vbcast.lane.b32.xlu1 %v1785_v45, 256  ;;  %v5920_v25 = vld [vmem:[%s8340_s4 + $0x10c] ss:$12 sps:$4 sm:$0xff]   ;;  %v5921_v28 = vld [vmem:[%s8340_s4 + $0x110] ss:$12 sps:$4 sm:$0xff]  }
  0x69   : > { %5566 = vmatprep.subr.bf16.mxu1 %v5901_v8  ;;  %v5918_v29 = vld [vmem:[%s8340_s4 + $0x108] ss:$12 sps:$4 sm:$0xff]   ;;  %v5922_v30 = vld [vmem:[%s8340_s4 + $0x50] ss:$12 sps:$4 sm:$0xff]   ;;  %v5926_v32 = vld [vmem:[%s8340_s4 + $0xf8] ss:$12 sps:$4 sm:$0xff]  }
  0x6a   : > { %5567 = vmatpush3.bf16.msra.mxu1 %v5902_v10  ;;  %v5925_v31 = vld [vmem:[%s8340_s4 + $0xf4] ss:$12 sps:$4 sm:$0xff]   ;;  %v5923_v33 = vld [vmem:[%s8340_s4 + $0xf0] ss:$12 sps:$4 sm:$0xff]   ;;  %v5927_v36 = vld [vmem:[%s8340_s4 + $0x38] ss:$12 sps:$4 sm:$0xff]  }
  0x6b   : > { %2499 = vmatpush1.bf16.msra.mxu0 %v5883_v43  ;;  %1794 = vbcast.lane.b32.xlu0 %v1792_v49, 256  ;;  %v5930_v37 = vld [vmem:[%s8340_s4 + $0xdc] ss:$12 sps:$4 sm:$0xff]   ;;  %v5931_v38 = vld [vmem:[%s8340_s4 + $0xe0] ss:$12 sps:$4 sm:$0xff]  }
  0x6c   : > { %1801 = vbcast.lane.b32.xlu1 %v1799_v50, 256  ;;  %2500 = vmatprep.subr.bf16.mxu0 %v5888_v62  ;;  %v5928_v39 = vld [vmem:[%s8340_s4 + $0xd8] ss:$12 sps:$4 sm:$0xff]   ;;  %v5932_v40 = vld [vmem:[%s8340_s4 + $0x20] ss:$12 sps:$4 sm:$0xff]  }
  0x6d   : > { %5679 = vmatmul.mubr.msk.bf16.gmra.mxu0 %vm1287_vm0, %v1269_v46  ;;  %5697 = vmatmul.mubr.msk.bf16.gmra.mxu1 %vm1287_vm0, %v1269_v46  ;;  %v5935_v43 = vld [vmem:[%s8340_s4 + $0xc4] ss:$12 sps:$4 sm:$0xff]   ;;  %v5936_v44 = vld [vmem:[%s8340_s4 + $0xc8] ss:$12 sps:$4 sm:$0xff]   ;;  %v5933_v45 = vld [vmem:[%s8340_s4 + $0xc0] ss:$12 sps:$4 sm:$0xff]  }
  0x6e   : > { %5682 = vmatprep.mubr.msk.bf16.mxu0 %vm1287_vm0, %v1270_v47  ;;  %5700 = vmatprep.mubr.msk.bf16.mxu1 %vm1287_vm0, %v1270_v47  ;;  %v5937_v46 = vld [vmem:[%s8340_s4 + $0x8] ss:$12 sps:$4 sm:$0xff]   ;;  %v3804_v47 = vld [vmem:[%s1177_s5] sm:$0xff]  ;;  %s1189_s4 = scalar_lea.vmem %s6326_s29, %s6518_s28 }
  0x6f   : > { %1808 = vbcast.lane.b32.xlu0 %v1806_v53, 256  ;;  %2501 = vmatpush1.bf16.msra.mxu0 %v5886_v63  ;;  %v3809_v48 = vrot.slane %v3804_v47, %v6521_v14  ;;  %v3816_v49 = vrot.slane %v3804_v47, %v6547_v26  ;;  %v3823_v50 = vrot.slane %v3804_v47, %v6524_v15  ;;  %v6664_v62 = vld [vmem:[%s1183_s1 + $0x8] sm:$0xff]  ;;  %v6280_v63 = vmov 1966171168  }
  0x70   : > { %1815 = vbcast.lane.b32.xlu1 %v1813_v54, 256  ;;  %2502 = vmatprep.subr.bf16.mxu0 %v5891_v0  ;;  %v3830_v51 = vrot.slane %v3804_v47, %v6550_v27  ;;  %v3837_v52 = vrot.slane %v3804_v47, %v6557_v34  ;;  %v3844_v53 = vrot.slane %v3804_v47, %v6560_v35  ;;  %v1867_v0 = vunpack.c.l.s4 %v6280_v63 }
  0x71   : > { %5568 = vmatprep.subr.bf16.mxu1 %v5906_v12  ;;  %v3851_v54 = vrot.slane %v3804_v47, %v6572_v41 }
  0x72   : > { %5569 = vmatpush3.bf16.msra.mxu1 %v5907_v16 }
  0x73   : > { %1822 = vbcast.lane.b32.xlu0 %v1820_v56, 256  ;;  %2503 = vmatpush1.bf16.msra.mxu0 %v5889_v1  ;;  %v6649_v56 = vld [vmem:[%s1177_s5 + $0x8] sm:$0xff]  ;;  %s5298_s5 = sshll.u32 %s8546_s23, 2  ;;  %v4225_v1 = vrot.slane %v6664_v62, %v6521_v14  ;;  %s8410_s23 = sld [smem:[#allocation14_spill]] }
  0x74   : > { %1829 = vbcast.lane.b32.xlu1 %v1827_v57, 256  ;;  %2504 = vmatprep.subr.bf16.mxu0 %v5894_v2  ;;  %v3865_v57 = vrot.slane %v6649_v56, %v6521_v14  ;;  %s1159_s6 = scalar_lea.vmem %s8349_s9, %s5298_s5  ;;  %v4232_v2 = vrot.slane %v6664_v62, %v6547_v26  ;;  %s8414_s5 = sld [smem:[#allocation12_spill]] }
  0x75   : > { %5683 = vmatmul.mubr.msk.bf16.gmra.mxu0 %vm1287_vm0, %v1271_v55  ;;  %5701 = vmatmul.mubr.msk.bf16.gmra.mxu1 %vm1287_vm0, %v1271_v55  ;;  %v3858_v55 = vrot.slane %v3804_v47, %v6575_v42 }
  0x76   : > { %5570 = vmatprep.subr.bf16.mxu1 %v5911_v18 }
  0x77   : > { %1836 = vbcast.lane.b32.xlu0 %v1834_v58, 256  ;;  %2505 = vmatpush1.bf16.msra.mxu0 %v5892_v3  ;;  %v3872_v58 = vrot.slane %v6649_v56, %v6547_v26  ;;  %v6673_v3 = vld [vmem:[%s1189_s4] sm:$0xff] }
  0x78   : > { %1843 = vbcast.lane.b32.xlu1 %v1841_v59, 256  ;;  %2506 = vmatprep.subr.bf16.mxu0 %v5897_v5  ;;  %v6657_v59 = vld [vmem:[%s1183_s1] sm:$0xff]  ;;  %v1868_v5 = vunpack.c.0.s8 %v1867_v0  ;;  %v4536_v8 = vrot.slane %v6673_v3, %v6547_v26 }
  0x79   : > { %5571 = vmatpush3.bf16.msra.mxu1 %v5912_v20  ;;  %v4543_v20 = vrot.slane %v6673_v3, %v6524_v15  ;;  %s7267_s1 = scalar_lea.vmem %s8410_s23, %s6518_s28 }
  0x7a   : > { %5572 = vmatprep.subr.bf16.mxu1 %v5916_v22 }
  0x7b   : > { %1850 = vbcast.lane.b32.xlu0 %v1848_v60, 256  ;;  %2507 = vmatpush1.bf16.msra.mxu0 %v5895_v6  ;;  %v4169_v60 = vrot.slane %v6657_v59, %v6521_v14  ;;  %v6675_v6 = vld [vmem:[%s1159_s6] sm:$0xff]   ;;  %s5300_s6 = sshll.u32 %s8544_s11, 2  ;;  %s8407_s11 = sld [smem:[#allocation21_spill]] }
  0x7c   : > { %1857 = vbcast.lane.b32.xlu1 %v1855_v61, 256  ;;  %2508 = vmatprep.subr.bf16.mxu0 %v5900_v7  ;;  %v4176_v61 = vrot.slane %v6657_v59, %v6547_v26  ;;  %v4529_v7 = vrot.slane %v6673_v3, %v6521_v14  ;;  %v6684_v10 = vunpack.c.l.bf16 %v6675_v6 }
  0x7d   : > { %5573 = vmatpush3.bf16.msra.mxu1 %v5917_v24 }
  0x7e   : > { %5574 = vmatprep.subr.bf16.mxu1 %v5921_v28 }
  0x7f   : > { %2509 = vmatpush2.bf16.msra.mxu0 %v5898_v9  ;;  %3811 = vbcast.lane.b32.xlu0 %v3809_v48, 256  ;;  %v6681_v9 = vld [vmem:[%s1189_s4 + $0x8] sm:$0xff]  ;;  %s6713_s4 = scalar_lea.vmem %s8352_s13, %s5300_s6  ;;  %s8415_s6 = sld [smem:[#allocation13_spill]] }
  0x80   : > { %2510 = vmatprep.subr.bf16.mxu0 %v5905_v11  ;;  %3818 = vbcast.lane.b32.xlu1 %v3816_v49, 256  ;;  %v6687_v11 = vsub.s32 %v1868_v5, %v6504_v4  ;;  %v4585_v12 = vrot.slane %v6681_v9, %v6521_v14  ;;  %v4183_v4 = vrot.slane %v6657_v59, %v6524_v15 }
  0x81   : > { %5575 = vmatpush3.bf16.msra.mxu1 %v5922_v30  ;;  %v3886_v30 = vrot.slane %v6649_v56, %v6550_v27 }
  0x82   : > { %5576 = vmatprep.subr.bf16.mxu1 %v5926_v32  ;;  %8350 = vst [vmem:[#allocation33_spill] sm:$0xff] %v6687_v11  ;;  %v1872_v16 = vrot.slane %v6684_v10, %v6687_v11 }
  0x83   : > { %2511 = vmatpush2.bf16.msra.mxu0 %v5903_v13  ;;  %3825 = vbcast.lane.b32.xlu0 %v3823_v50, 256  ;;  %v4592_v13 = vrot.slane %v6681_v9, %v6547_v26  ;;  %v1865_v50 = vcombine.high %v6684_v10, %v6684_v10  ;;  %v4550_v10 = vrot.slane %v6673_v3, %v6550_v27 }
  0x84   : > { %2512 = vmatprep.subr.bf16.mxu0 %v5910_v17  ;;  %3832 = vbcast.lane.b32.xlu1 %v3830_v51, 256  ;;  %v3879_v17 = vrot.slane %v6649_v56, %v6524_v15  ;;  %v6700_v18 = vrot.slane %v1872_v16, %v6687_v11  ;;  %v1880_v24 = vcombine.high %v1872_v16, %v1872_v16 }
  0x85   : > { %5577 = vmatpush3.bf16.msra.mxu1 %v5927_v36  ;;  %v4190_v51 = vrot.slane %v6657_v59, %v6550_v27  ;;  %s1201_s23 = scalar_lea.vmem %s8415_s6, %s6518_s28 }
  0x86   : > { %5578 = vmatprep.subr.bf16.mxu1 %v5931_v38  ;;  %v1910_v22 = vcombine.high %v6700_v18, %v6700_v18 }
  0x87   : > { %2513 = vmatpush2.bf16.msra.mxu0 %v5908_v19  ;;  %3839 = vbcast.lane.b32.xlu0 %v3837_v52, 256  ;;  %v4239_v19 = vrot.slane %v6664_v62, %v6524_v15  ;;  %v4246_v52 = vrot.slane %v6664_v62, %v6550_v27 }
  0x88   : > { %2514 = vmatprep.subr.bf16.mxu0 %v5915_v21  ;;  %3846 = vbcast.lane.b32.xlu1 %v3844_v53, 256  ;;  %v6708_v21 = vld [vmem:[%s8351_s12] ss:$0 sm:$0xff]  ;;  %v6732_v36 = vrot.slane %v1910_v22, %v6521_v14 }
  0x89   : > { %5579 = vmatpush3.bf16.msra.mxu1 %v5932_v40 }
  0x8a   : > { %5580 = vmatprep.subr.bf16.mxu1 %v5936_v44 }
  0x8b   : > { %2515 = vmatpush2.bf16.msra.mxu0 %v5913_v23  ;;  %3853 = vbcast.lane.b32.xlu0 %v3851_v54, 256  ;;  %v6716_v23 = vld [vmem:[%s6376_s27] ss:$0 sm:$0xff] }
  0x8c   : > { %2516 = vmatprep.subr.bf16.mxu0 %v5920_v25  ;;  %3860 = vbcast.lane.b32.xlu1 %v3858_v55, 256 }
  0x8d   : > { %5581 = vmatpush3.bf16.msra.mxu1 %v5937_v46  ;;  %v6746_v46 = vld [vmem:[%s6713_s4] sm:$0xff]  }
  0x8f   : > { %2517 = vmatpush2.bf16.msra.mxu0 %v5918_v29  ;;  %3867 = vbcast.lane.b32.xlu0 %v3865_v57, 256  ;;  %v4599_v29 = vrot.slane %v6681_v9, %v6524_v15 }
  0x90   : > { %2518 = vmatprep.subr.bf16.mxu0 %v5925_v31  ;;  %3874 = vbcast.lane.b32.xlu1 %v3872_v58, 256 }
  0x93   : > { %2519 = vmatpush2.bf16.msra.mxu0 %v5923_v33  ;;  %4171 = vbcast.lane.b32.xlu0 %v4169_v60, 256  ;;  %v6729_v33 = vld [vmem:[%s6713_s4 + $0x8] sm:$0xff]  }
  0x94   : > { %2520 = vmatprep.subr.bf16.mxu0 %v5930_v37  ;;  %4178 = vbcast.lane.b32.xlu1 %v4176_v61, 256 }
  0x97   : > { %2521 = vmatpush2.bf16.msra.mxu0 %v5928_v39  ;;  %4227 = vbcast.lane.b32.xlu0 %v4225_v1, 256  ;;  %v6735_v39 = vrot.slane %v1880_v24, %v6687_v11 }
  0x98   : > { %2522 = vmatprep.subr.bf16.mxu0 %v5935_v43  ;;  %4234 = vbcast.lane.b32.xlu1 %v4232_v2, 256 }
  0x9b   : > { %2523 = vmatpush2.bf16.msra.mxu0 %v5933_v45  ;;  %4531 = vbcast.lane.b32.xlu0 %v4529_v7, 256 }
  0x9c   : > { %4538 = vbcast.lane.b32.xlu1 %v4536_v8, 256 }
  0x9f   : > { %4587 = vbcast.lane.b32.xlu0 %v4585_v12, 256  ;;  %v4606_v12 = vrot.slane %v6681_v9, %v6550_v27 }
  0xa0   : > { %4594 = vbcast.lane.b32.xlu1 %v4592_v13, 256 }
  0xa3   : > { %3881 = vbcast.lane.b32.xlu0 %v3879_v17, 256 }
  0xa4   : > { %4185 = vbcast.lane.b32.xlu1 %v4183_v4, 256  ;;  %v1912_v4 = vcombine.high %v6735_v39, %v6735_v39 }
  0xa7   : > { %4241 = vbcast.lane.b32.xlu0 %v4239_v19, 256  ;;  %v6786_v19 = vrot.slane %v1865_v50, %v6687_v11  ;;  %v6809_v50 = vrot.slane %v1912_v4, %v6521_v14 }
  0xa8   : > { %4545 = vbcast.lane.b32.xlu1 %v4543_v20, 256 }
  0xab   : > { %4601 = vbcast.lane.b32.xlu0 %v4599_v29, 256 }
  0xac   : > { %3888 = vbcast.lane.b32.xlu1 %v3886_v30, 256 }
  0xaf   : > { %4192 = vbcast.lane.b32.xlu0 %v4190_v51, 256  ;;  %v6813_v51 = vrot.slane %v6786_v19, %v6687_v11 }
  0xb0   : > { %4248 = vbcast.lane.b32.xlu1 %v4246_v52, 256 }
  0xb3   : > { %4552 = vbcast.lane.b32.xlu0 %v4550_v10, 256 }
  0xb4   : > { %4608 = vbcast.lane.b32.xlu1 %v4606_v12, 256  ;;  %v4253_v12 = vrot.slane %v6664_v62, %v6557_v34 }
 0x11d   : > { %v5672_v25 = vpop.f32.mrf.mxu0  ;;  %v5690_v28 = vpop.f32.mrf.mxu1 }
 0x11e   : > { %v6723_v31 = vadd.f32 %v5672_v25, %v6708_v21  ;;  %v6726_v32 = vadd.f32 %v5690_v28, %v6716_v23 }
 0x11f   : > { %v1346_v37 = vpop.f32.mrf.mxu0  ;;  %v1570_v38 = vpop.f32.mrf.mxu1 }
 0x120   : > { %v5339_v40 = vmul.f32 -1.442695, %v6723_v31  ;;  %v5365_v43 = vmul.f32 -1.442695, %v6726_v32  ;;  %v6740_v44 = vadd.f32 %v6708_v21, %v1346_v37  ;;  %v6743_v45 = vadd.f32 %v6716_v23, %v1570_v38 }
 0x121   : > { %v5673_v48 = vpop.f32.mrf.mxu0  ;;  %v5691_v49 = vpop.f32.mrf.mxu1  ;;  %v3893_v38 = vrot.slane %v6649_v56, %v6557_v34 }
 0x122   : > { %6018 = vpow2.f32 %v5339_v40  ;;  %v5337_v53 = vmul.f32 -1.442695, %v6740_v44  ;;  %v5363_v54 = vmul.f32 -1.442695, %v6743_v45  ;;  %v6758_v55 = vadd.f32 %v5673_v48, %v6708_v21 }
 0x123   : > { %6020 = vpow2.f32 %v5365_v43  ;;  %v6764_v60 = vadd.f32 %v5691_v49, %v6716_v23  ;;  %v1349_v61 = vpop.f32.mrf.mxu0  ;;  %v1573_v63 = vpop.f32.mrf.mxu1  ;;  %v4197_v40 = vrot.slane %v6657_v59, %v6557_v34  ;;  %3895 = vbcast.lane.b32.xlu0 %v3893_v38, 256 }
 0x124   : > { %6022 = vpow2.f32 %v5337_v53  ;;  %v5340_v0 = vmul.f32 -1.442695, %v6758_v55  ;;  %v6768_v1 = vadd.f32 %v6708_v21, %v1349_v61  ;;  %v6771_v2 = vadd.f32 %v6716_v23, %v1573_v63 }
 0x125   : > { %6024 = vpow2.f32 %v5363_v54  ;;  %v5366_v5 = vmul.f32 -1.442695, %v6764_v60  ;;  %v5676_v7 = vpop.f32.mrf.mxu0  ;;  %v5694_v8 = vpop.f32.mrf.mxu1  ;;  %4199 = vbcast.lane.b32.xlu1 %v4197_v40, 256 }
 0x126   : > { %6026 = vpow2.f32 %v5340_v0  ;;  %v5338_v13 = vmul.f32 -1.442695, %v6768_v1  ;;  %v5364_v16 = vmul.f32 -1.442695, %v6771_v2  ;;  %v6781_v17 = vadd.f32 %v5676_v7, %v6708_v21 }
 0x127   : > { %6028 = vpow2.f32 %v5366_v5  ;;  %v6789_v20 = vadd.f32 %v5694_v8, %v6716_v23  ;;  %v1362_v22 = vpop.f32.mrf.mxu0  ;;  %v1586_v27 = vpop.f32.mrf.mxu1  ;;  %v6826_v5 = vld [vmem:[%s6713_s4 + $0x18] sm:$0xff]   ;;  %4255 = vbcast.lane.b32.xlu0 %v4253_v12, 256  ;;  %v4620_v12 = vrot.slane %v6681_v9, %v6560_v35 }
 0x128   : > { %8353 = vst [vmem:[#allocation34_spill] sm:$0xff] %v6781_v17  ;;  %6030 = vpow2.f32 %v5338_v13  ;;  %v5343_v24 = vmul.f32 -1.442695, %v6781_v17  ;;  %v6793_v25 = vadd.f32 %v6708_v21, %v1362_v22  ;;  %v6796_v28 = vadd.f32 %v6716_v23, %v1586_v27 }
 0x129   : > { %6032 = vpow2.f32 %v5364_v16  ;;  %v5369_v29 = vmul.f32 -1.442695, %v6789_v20  ;;  %v5677_v30 = vpop.f32.mrf.mxu0  ;;  %v5695_v37 = vpop.f32.mrf.mxu1  ;;  %v4557_v13 = vrot.slane %v6673_v3, %v6557_v34  ;;  %v1881_v16 = vcombine.high %v6786_v19, %v6786_v19 }
 0x12a   : > { %6034 = vpow2.f32 %v5343_v24  ;;  %v5341_v43 = vmul.f32 -1.442695, %v6793_v25  ;;  %v5367_v48 = vmul.f32 -1.442695, %v6796_v28  ;;  %v6806_v49 = vadd.f32 %v5677_v30, %v6708_v21 }
 0x12b   : > { %6036 = vpow2.f32 %v5369_v29  ;;  %v6816_v52 = vadd.f32 %v5695_v37, %v6716_v23  ;;  %v1365_v53 = vpop.f32.mrf.mxu0  ;;  %v1589_v54 = vpop.f32.mrf.mxu1  ;;  %v4613_v30 = vrot.slane %v6681_v9, %v6557_v34  ;;  %4559 = vbcast.lane.b32.xlu1 %v4557_v13, 256  ;;  %v4211_v34 = vrot.slane %v6657_v59, %v6572_v41 }
 0x12c   : > { %8354 = vst [vmem:[#allocation35_spill] sm:$0xff] %v6806_v49  ;;  %6038 = vpow2.f32 %v5341_v43  ;;  %v5344_v61 = vmul.f32 -1.442695, %v6806_v49  ;;  %v6820_v63 = vadd.f32 %v6708_v21, %v1365_v53  ;;  %v6823_v0 = vadd.f32 %v6716_v23, %v1589_v54  ;;  %v6853_v53 = vld [vmem:[%s6713_s4 + $0x10] sm:$0xff]  }
 0x12d   : > { %6040 = vpow2.f32 %v5367_v48  ;;  %v5370_v7 = vmul.f32 -1.442695, %v6816_v52  ;;  %v6829_v8 = vpop.f32.mrf.mxu0  ;;  %v6831_v10 = vpop.f32.mrf.mxu1  ;;  %4615 = vbcast.lane.b32.xlu0 %v4613_v30, 256 }
 0x12e   : > { %6042 = vpow2.f32 %v5344_v61  ;;  %v5342_v4 = vmul.f32 -1.442695, %v6820_v63  ;;  %v5368_v22 = vmul.f32 -1.442695, %v6823_v0  ;;  %v6886_v30 = vadd.f32 %v6829_v8, %v6708_v21 }
 0x12f   : > { %v6019_v27 = vpop.eup %6018  ;;  %6044 = vpow2.f32 %v5370_v7  ;;  %v6845_v37 = vpop.f32.mrf.mxu0 }
 0x130   : > { %v6847_v38 = vpop.f32.mrf.mxu1  ;;  %v6021_v40 = vpop.eup %6020  ;;  %v1459_v43 = vadd.f32 1.0, %v6019_v27  ;;  %6046 = vpow2.f32 %v5342_v4  ;;  %v3900_v27 = vrot.slane %v6649_v56, %v6560_v35  ;;  %8355 = vst [vmem:[#allocation36_spill] sm:$0xff] %v6886_v30 }
 0x131   : > { %v6023_v54 = vpop.eup %6022  ;;  %v1683_v61 = vadd.f32 1.0, %v6021_v40  ;;  %6048 = vpow2.f32 %v5368_v22  ;;  %v6855_v47 = vpop.f32.mrf.mxu0  ;;  %v6866_v22 = vrot.slane %v1881_v16, %v6687_v11 }
 0x132   : > { %v6857_v7 = vpop.f32.mrf.mxu1  ;;  %v6025_v19 = vpop.eup %6024  ;;  %6050 = vrcp.f32 %v1459_v43  ;;  %v1457_v48 = vadd.f32 1.0, %v6023_v54  ;;  %v4204_v43 = vrot.slane %v6657_v59, %v6560_v35  ;;  %v4564_v54 = vrot.slane %v6673_v3, %v6560_v35  ;;  %3902 = vbcast.lane.b32.xlu1 %v3900_v27, 256 }
 0x133   : > { %v6027_v40 = vpop.eup %6026  ;;  %6052 = vrcp.f32 %v1683_v61  ;;  %v1681_v29 = vadd.f32 1.0, %v6025_v19  ;;  %v6870_v13 = vpop.f32.mrf.mxu0  ;;  %v4260_v19 = vrot.slane %v6664_v62, %v6560_v35  ;;  %v6892_v35 = vadd.f32 %v6831_v10, %v6716_v23 }
 0x134   : > { %v6029_v24 = vpop.eup %6028  ;;  %6054 = vrcp.f32 %v1457_v48  ;;  %v1460_v58 = vadd.f32 1.0, %v6027_v40  ;;  %v1605_v61 = vpop.f32.mrf.mxu1  ;;  %4206 = vbcast.lane.b32.xlu0 %v4204_v43, 256  ;;  %v5347_v43 = vmul.f32 -1.442695, %v6886_v30  ;;  %v6912_v10 = vadd.f32 %v6716_v23, %v6847_v38 }
 0x135   : > { %v6031_v16 = vpop.eup %6030  ;;  %6056 = vrcp.f32 %v1681_v29  ;;  %v1684_v4 = vadd.f32 1.0, %v6029_v24  ;;  %v5684_v27 = vpop.f32.mrf.mxu0  ;;  %8356 = vst [vmem:[#allocation37_spill] sm:$0xff] %v6892_v35  ;;  %v6924_v38 = vadd.f32 %v6708_v21, %v6870_v13 }
 0x136   : > { %v6033_v48 = vpop.eup %6032  ;;  %6058 = vrcp.f32 %v1460_v58  ;;  %v1458_v40 = vadd.f32 1.0, %v6031_v16  ;;  %v5702_v57 = vpop.f32.mrf.mxu1  ;;  %4262 = vbcast.lane.b32.xlu1 %v4260_v19, 256  ;;  %v6907_v19 = vadd.f32 %v6708_v21, %v6845_v37  ;;  %8358 = vst [vmem:[#allocation39_spill] sm:$0xff] %v6912_v10  ;;  %v6920_v37 = vadd.f32 %v6857_v7, %v6716_v23 }
 0x137   : > { %v6035_v29 = vpop.eup %6034  ;;  %6060 = vrcp.f32 %v1684_v4  ;;  %v1682_v24 = vadd.f32 1.0, %v6033_v48  ;;  %v1394_v8 = vpop.f32.mrf.mxu0  ;;  %8361 = vst [vmem:[#allocation42_spill] sm:$0xff] %v6924_v38  ;;  %v6932_v7 = vadd.f32 %v5684_v27, %v6708_v21  ;;  %v5371_v13 = vmul.f32 -1.442695, %v6912_v10 }
 0x138   : > { %v6037_v15 = vpop.eup %6036  ;;  %6062 = vrcp.f32 %v1458_v40  ;;  %v1463_v58 = vadd.f32 1.0, %v6035_v29  ;;  %8357 = vst [vmem:[#allocation38_spill] sm:$0xff] %v6907_v19  ;;  %8360 = vst [vmem:[#allocation41_spill] sm:$0xff] %v6920_v37  ;;  %v1618_v30 = vpop.f32.mrf.mxu1  ;;  %4566 = vbcast.lane.b32.xlu0 %v4564_v54, 256  ;;  %v6935_v54 = vadd.f32 %v5702_v57, %v6716_v23  ;;  %v5374_v27 = vmul.f32 -1.442695, %v6920_v37 }
 0x139   : > { %v6039_v4 = vpop.eup %6038  ;;  %6064 = vrcp.f32 %v1682_v24  ;;  %v1687_v48 = vadd.f32 1.0, %v6037_v15  ;;  %8363 = vst [vmem:[#allocation44_spill] sm:$0xff] %v6932_v7  ;;  %v8366_v57 = vrot.slane %v6649_v56, %v6572_v41 }
 0x13a   : > { %v6041_v29 = vpop.eup %6040  ;;  %6066 = vrcp.f32 %v1463_v58  ;;  %v1461_v26 = vadd.f32 1.0, %v6039_v4  ;;  %v5373_v4 = vmul.f32 -1.442695, %v6892_v35  ;;  %4622 = vbcast.lane.b32.xlu1 %v4620_v12, 256  ;;  %8364 = vst [vmem:[#allocation45_spill] sm:$0xff] %v6935_v54  ;;  %v5685_v12 = vpop.f32.mrf.mxu0 }
 0x13b   : > { %v6043_v24 = vpop.eup %6042  ;;  %6068 = vrcp.f32 %v1687_v48  ;;  %v1685_v15 = vadd.f32 1.0, %v6041_v29  ;;  %v6916_v29 = vadd.f32 %v6855_v47, %v6708_v21 }
 0x13c   : > { %v6045_v40 = vpop.eup %6044  ;;  %6070 = vrcp.f32 %v1461_v26  ;;  %v1464_v58 = vadd.f32 1.0, %v6043_v24  ;;  %3909 = vbcast.lane.b32.xlu0 %v8366_v57, 256  ;;  %v5351_v57 = vmul.f32 -1.442695, %v6932_v7  ;;  %v1397_v49 = vpop.f32.mrf.mxu0 }
 0x13d   : > { %v6047_v16 = vpop.eup %6046  ;;  %6072 = vrcp.f32 %v1685_v15  ;;  %v1688_v48 = vadd.f32 1.0, %v6045_v40  ;;  %8359 = vst [vmem:[#allocation40_spill] sm:$0xff] %v6916_v29  ;;  %v6927_v40 = vadd.f32 %v6716_v23, %v1605_v61  ;;  %v6940_v61 = vadd.f32 %v6708_v21, %v1394_v8 }
 0x13e   : > { %v6049_v26 = vpop.eup %6048  ;;  %6074 = vrcp.f32 %v1464_v58  ;;  %v1462_v24 = vadd.f32 1.0, %v6047_v16  ;;  %v5345_v16 = vmul.f32 -1.442695, %v6907_v19  ;;  %4213 = vbcast.lane.b32.xlu1 %v4211_v34, 256  ;;  %v5346_v8 = vmul.f32 -1.442695, %v6924_v38 }
 0x13f   : > { %8362 = vst [vmem:[#allocation43_spill] sm:$0xff] %v6927_v40  ;;  %v6929_v15 = vpop.eup %6050  ;;  %6076 = vrcp.f32 %v1688_v48  ;;  %v1686_v47 = vadd.f32 1.0, %v6049_v26  ;;  %8365 = vst [vmem:[#allocation46_spill] sm:$0xff] %v6940_v61  ;;  %v5348_v48 = vmul.f32 -1.442695, %v6916_v29  ;;  %v5703_v26 = vpop.f32.mrf.mxu1 }
 0x140   : > { %v6053_v58 = vpop.eup %6052  ;;  %6078 = vrcp.f32 %v1462_v24  ;;  %v6952_v29 = vpop.permute.xlu1 %1766  ;;  %v5377_v34 = vmul.f32 -1.442695, %v6935_v54  ;;  %v8369_v54 = vrot.slane %v6700_v18, %v6521_v14  ;;  %v8372_v18 = vrot.slane %v6735_v39, %v6521_v14 }
 0x141   : > { %v6055_v35 = vpop.eup %6054  ;;  %6080 = vrcp.f32 %v1686_v47  ;;  %v5372_v47 = vmul.f32 -1.442695, %v6927_v40  ;;  %v6957_v24 = vpop.permute.xlu0 %1752 }
 0x142   : > { %v6057_v19 = vpop.eup %6056  ;;  %v1505_v10 = vmul.f32 %v6055_v35, %v6740_v44  ;;  %6082 = vpow2.f32 %v5347_v43  ;;  %v5349_v44 = vmul.f32 -1.442695, %v6940_v61  ;;  %v6961_v35 = vadd.f32 %v6716_v23, %v1618_v30  ;;  %v1621_v7 = vpop.f32.mrf.mxu1 }
 0x143   : > { %v6059_v37 = vpop.eup %6058  ;;  %v1729_v17 = vmul.f32 %v6057_v19, %v6743_v45  ;;  %6084 = vpow2.f32 %v5373_v4  ;;  %v6964_v43 = vadd.f32 %v5685_v12, %v6708_v21  ;;  %v1731_v45 = vmul.f32 %v6053_v58, %v6726_v32 }
 0x144   : > { %v6061_v11 = vpop.eup %6060  ;;  %6086 = vpow2.f32 %v5345_v16  ;;  %v6969_v4 = vadd.f32 %v5703_v26, %v6716_v23  ;;  %v8367_v16 = vrot.slane %v6664_v62, %v6572_v41  ;;  %v8368_v30 = vrot.slane %v6673_v3, %v6572_v41 }
 0x145   : > { %v6063_v40 = vpop.eup %6062  ;;  %v1732_v19 = vmul.f32 %v6061_v11, %v6764_v60  ;;  %6088 = vpow2.f32 %v5371_v13  ;;  %v2043_v32 = vmul.f32 %v8369_v54, %v1505_v10  ;;  %v6982_v60 = vadd.f32 %v6708_v21, %v1397_v49  ;;  %v7000_v10 = vpop.permute.xlu1 %1773 }
 0x146   : > { %4269 = vbcast.lane.b32.xlu0 %v8367_v16, 256  ;;  %4573 = vbcast.lane.b32.xlu1 %v8368_v30, 256  ;;  %v6065_v12 = vpop.eup %6064  ;;  %v1506_v11 = vmul.f32 %v6063_v40, %v6768_v1  ;;  %6090 = vpow2.f32 %v5348_v48  ;;  %v8370_v13 = vunpack.c.l.bf16 %v6746_v46  ;;  %v8371_v16 = vunpack.c.h.bf16 %v6729_v33  ;;  %8373 = vst [vmem:[#allocation47_spill] sm:$0xff] %v7000_v10 }
 0x147   : > { %v6984_v58 = vpop.eup %6066  ;;  %v1730_v30 = vmul.f32 %v6065_v12, %v6771_v2  ;;  %6092 = vpow2.f32 %v5374_v27  ;;  %v5375_v21 = vmul.f32 -1.442695, %v6961_v35  ;;  %v6998_v49 = vadd.f32 %v6716_v23, %v1621_v7  ;;  %v7009_v27 = vpop.permute.xlu0 %1759 }
 0x148   : > { %v2107_v26 = vmul.f32 %v8370_v13, %v1729_v17  ;;  %v2110_v61 = vmul.f32 %v8371_v16, %v1732_v19  ;;  %v6991_v38 = vpop.eup %6068  ;;  %v2044_v1 = vmul.f32 %v8372_v18, %v1506_v11  ;;  %6094 = vpow2.f32 %v5346_v8 }
 0x149   : > { %v7002_v17 = vpop.eup %6070  ;;  %v8374_v40 = vunpack.c.l.bf16 %v6729_v33  ;;  %v8375_v54 = vunpack.c.h.bf16 %v6746_v46  ;;  %6096 = vpow2.f32 %v5372_v47  ;;  %v5378_v39 = vmul.f32 -1.442695, %v6969_v4 }
 0x14a   : > { %v8376_v8 = vrot.slane %v6681_v9, %v6572_v41  ;;  %v8377_v23 = vrot.slane %v6649_v56, %v6575_v42  ;;  %v6073_v7 = vpop.eup %6072  ;;  %v1508_v33 = vmul.f32 %v6059_v37, %v6758_v55  ;;  %v2059_v46 = vmul.f32 %v2043_v32, %v6957_v24 }
 0x14b   : > { %v2109_v2 = vmul.f32 %v8374_v40, %v1731_v45  ;;  %v2108_v48 = vmul.f32 %v8375_v54, %v1730_v30  ;;  %v5350_v45 = vmul.f32 -1.442695, %v6982_v60  ;;  %v2060_v47 = vmul.f32 %v2044_v1, %v7009_v27  ;;  %v7021_v19 = vpop.eup %6074 }
 0x14c   : > { %4629 = vbcast.lane.b32.xlu0 %v8376_v8, 256  ;;  %3916 = vbcast.lane.b32.xlu1 %v8377_v23, 256  ;;  %6098 = vpow2.f32 %v5351_v57  ;;  %v2123_v12 = vmul.f32 %v2107_v26, %v6957_v24  ;;  %v2126_v11 = vmul.f32 %v2110_v61, %v7000_v10  ;;  %v6077_v56 = vpop.eup %6076  ;;  %v1507_v13 = vmul.f32 %v6929_v15, %v6723_v31 }
 0x14d   : > { %v2124_v41 = vmul.f32 %v2108_v48, %v7009_v27  ;;  %6100 = vpow2.f32 %v5377_v34  ;;  %v5376_v55 = vmul.f32 -1.442695, %v6998_v49  ;;  %v2139_v37 = vpack.c.bf16 %v2060_v47, %v2059_v46  ;;  %v6079_v32 = vpop.eup %6078 }
 0x14e   : > { %v1733_v16 = vmul.f32 %v6073_v7, %v6796_v28  ;;  %6102 = vpow2.f32 %v5375_v21  ;;  %v2125_v57 = vmul.f32 %v2109_v2, %v6952_v29  ;;  %v8378_v26 = vrot.slane %v6657_v59, %v6575_v42  ;;  %v6081_v31 = vpop.eup %6080  ;;  %v7053_v7 = vpop.permute.xlu1 %1787 }
 0x14f   : > { %v2147_v30 = vpack.c.bf16 %v2124_v41, %v2123_v12  ;;  %v8379_v61 = vrot.slane %v6664_v62, %v6575_v42  ;;  %v2046_v15 = vmul.f32 %v6809_v50, %v1508_v33  ;;  %6104 = vpow2.f32 %v5349_v44  ;;  %v6083_v18 = vpop.eup %6082 }
 0x150   : > { %4220 = vbcast.lane.b32.xlu0 %v8378_v26, 256  ;;  %v5352_v34 = vmul.f32 -1.442695, %v6964_v43  ;;  %v4634_v28 = vrot.slane %v6681_v9, %v6575_v42  ;;  %v1913_v1 = vcombine.high %v6866_v22, %v6866_v22  ;;  %v1734_v59 = vmul.f32 %v6081_v31, %v6823_v0  ;;  %v6085_v21 = vpop.eup %6084 }
 0x151   : > { %4276 = vbcast.lane.b32.xlu1 %v8379_v61, 256  ;;  %6106 = vpow2.f32 %v5378_v39  ;;  %2524 = vmatprep.mubr.bf16.mxu0 %v2147_v30  ;;  %v2148_v62 = vpack.c.bf16 %v2126_v11, %v2125_v57  ;;  %v2045_v40 = vmul.f32 %v6732_v36, %v1507_v13  ;;  %v5524_v50 = vunpack.c.h.bf16 %v6826_v5  ;;  %v6087_v9 = vpop.eup %6086  ;;  %v7066_v13 = vpop.permute.xlu0 %1780 }
 0x152   : > { %2637 = vmatprep.mubr.bf16.mxu1 %v2147_v30  ;;  %v1986_v44 = vrot.slane %v6866_v22, %v6521_v14  ;;  %6108 = vpow2.f32 %v5350_v45  ;;  %2525 = vmatmul.mubr.bf16.vlgmr.msra.gmra.mxu0 %v2139_v37  ;;  %v8380_v2 = vunpack.c.l.bf16 %v6853_v53  ;;  %v8381_v0 = vunpack.c.h.bf16 %v6853_v53  ;;  %v6089_v36 = vpop.eup %6088  ;;  %8383 = vst [vmem:[#allocation48_spill] sm:$0xff] %v7066_v13 }
 0x153   : > { %2638 = vmatmul.mubr.bf16.vlgmr.msra.gmra.mxu1 %v2139_v37  ;;  %v1691_v39 = vadd.f32 1.0, %v6085_v21  ;;  %6110 = vpow2.f32 %v5376_v55  ;;  %2534 = vmatprep.mubr.bf16.mxu0 %v2148_v62  ;;  %v1510_v8 = vmul.f32 %v6079_v32, %v6820_v63  ;;  %v1465_v23 = vadd.f32 1.0, %v6087_v9  ;;  %v6091_v53 = vpop.eup %6090 }
 0x154   : > { %v2111_v54 = vmul.f32 %v8380_v2, %v1733_v16  ;;  %v2112_v48 = vmul.f32 %v8381_v0, %v1734_v59  ;;  %2645 = vmatprep.mubr.bf16.mxu1 %v2148_v62  ;;  %6112 = vpow2.f32 %v5352_v34  ;;  %v2062_v33 = vmul.f32 %v2046_v15, %v7000_v10  ;;  %v6093_v41 = vpop.eup %6092  ;;  %v7079_v34 = vpop.permute.xlu1 %1801 }
 0x155   : > { %v8382_v45 = vrot.slane %v6673_v3, %v6575_v42  ;;  %4636 = vbcast.lane.b32.xlu1 %v4634_v28, 256  ;;  %v1736_v46 = vmul.f32 %v6077_v56, %v6816_v52  ;;  %6114 = vrcp.f32 %v1691_v39  ;;  %v1689_v47 = vadd.f32 1.0, %v6089_v36  ;;  %v6095_v3 = vpop.eup %6094  ;;  %v8389_v39 = vld [vmem:[#allocation34_spill] sm:$0xff] }
 0x156   : > { %v2128_v12 = vmul.f32 %v2112_v48, %v7053_v7  ;;  %v1509_v63 = vmul.f32 %v7002_v17, %v6793_v25  ;;  %v7064_v11 = vunpack.c.h.bf16 %v6675_v6  ;;  %6116 = vrcp.f32 %v1465_v23  ;;  %v6097_v37 = vpop.eup %6096 }
 0x157   : > { %4580 = vbcast.lane.b32.xlu0 %v8382_v45, 256  ;;  %v2061_v42 = vmul.f32 %v2045_v40, %v6952_v29  ;;  %v1735_v52 = vmul.f32 %v6991_v38, %v6789_v20  ;;  %6118 = vrcp.f32 %v1689_v47  ;;  %v1692_v56 = vadd.f32 1.0, %v6093_v41  ;;  %v8385_v38 = vld [vmem:[#allocation33_spill] sm:$0xff]  ;;  %v8387_v40 = vld [vmem:[#allocation35_spill] sm:$0xff] }
 0x158   : > { %v2127_v55 = vmul.f32 %v2111_v54, %v7066_v13  ;;  %v2048_v32 = vmul.f32 %v1986_v44, %v1510_v8  ;;  %v1468_v16 = vadd.f32 1.0, %v6091_v53  ;;  %v1466_v25 = vadd.f32 1.0, %v6095_v3  ;;  %v7089_v44 = vpop.permute.xlu0 %1794  ;;  %v5545_v53 = vld [vmem:[%s6713_s4 + $0x28] sm:$0xff]  }
 0x159   : > { %v2140_v17 = vpack.c.bf16 %v2062_v33, %v2061_v42  ;;  %v2114_v6 = vmul.f32 %v5524_v50, %v1736_v46  ;;  %6120 = vrcp.f32 %v1692_v56  ;;  %v1690_v30 = vadd.f32 1.0, %v6097_v37  ;;  %v7072_v26 = vpop.eup %6098  ;;  %v5544_v56 = vld [vmem:[%s6713_s4 + $0x20] sm:$0xff]  }
 0x15a   : > { %v2149_v57 = vpack.c.bf16 %v2128_v12, %v2127_v55  ;;  %v8384_v61 = vrot.slane %v6813_v51, %v6521_v14  ;;  %v1467_v20 = vadd.f32 1.0, %v6083_v18  ;;  %v1921_v15 = vrot.slane %v7064_v11, %v8385_v38  ;;  %v6101_v28 = vpop.eup %6100 }
 0x15b   : > { %6122 = vrcp.f32 %v1466_v25  ;;  %2535 = vmatmul.mubr.bf16.gmra.mxu0 %v2140_v17  ;;  %2646 = vmatmul.mubr.bf16.gmra.mxu1 %v2140_v17  ;;  %v8386_v59 = vunpack.c.l.bf16 %v6826_v5  ;;  %v6103_v21 = vpop.eup %6102  ;;  %v1512_v50 = vmul.f32 %v7021_v19, %v8387_v40  ;;  %v1994_v18 = vrot.slane %v1913_v1, %v6521_v14 }
 0x15c   : > { %v2047_v31 = vmul.f32 %v8384_v61, %v1509_v63  ;;  %6124 = vrcp.f32 %v1690_v30  ;;  %2544 = vmatprep.mubr.bf16.mxu0 %v2149_v57  ;;  %2653 = vmatprep.mubr.bf16.mxu1 %v2149_v57  ;;  %v2064_v9 = vmul.f32 %v2048_v32, %v7053_v7  ;;  %v6105_v5 = vpop.eup %6104  ;;  %v8388_v2 = vcombine.high %v6813_v51, %v6813_v51  ;;  %v7113_v57 = vpop.permute.xlu1 %1815 }
 0x15d   : > { %v2113_v62 = vmul.f32 %v8386_v59, %v1735_v52  ;;  %6126 = vrcp.f32 %v1468_v16  ;;  %v1693_v0 = vadd.f32 1.0, %v6103_v21  ;;  %v2130_v19 = vmul.f32 %v2114_v6, %v7079_v34 }
 0x15e   : > { %v1990_v54 = vrot.slane %v8388_v2, %v6521_v14  ;;  %v6107_v48 = vpop.eup %6106  ;;  %v1511_v22 = vmul.f32 %v6984_v58, %v8389_v39  ;;  %6128 = vrcp.f32 %v1467_v20  ;;  %v7100_v1 = vrot.slane %v1921_v15, %v8385_v38  ;;  %v8393_v2 = vld [vmem:[#allocation41_spill] sm:$0xff]  ;;  %v8394_v39 = vld [vmem:[#allocation42_spill] sm:$0xff] }
 0x15f   : > { %v2063_v36 = vmul.f32 %v2047_v31, %v7066_v13  ;;  %v6109_v8 = vpop.eup %6108  ;;  %v1929_v23 = vcombine.high %v1921_v15, %v1921_v15  ;;  %6130 = vrcp.f32 %v1693_v0  ;;  %v2129_v51 = vmul.f32 %v2113_v62, %v7089_v44  ;;  %v8390_v31 = vld [vmem:[#allocation39_spill] sm:$0xff]  ;;  %v8391_v62 = vld [vmem:[#allocation38_spill] sm:$0xff] }
 0x160   : > { %v6111_v33 = vpop.eup %6110  ;;  %v2050_v45 = vmul.f32 %v1994_v18, %v1512_v50  ;;  %v1470_v46 = vadd.f32 1.0, %v6109_v8  ;;  %v1696_v41 = vadd.f32 1.0, %v6107_v48  ;;  %v2049_v3 = vmul.f32 %v1990_v54, %v1511_v22  ;;  %v7119_v50 = vpop.permute.xlu0 %1808 }
 0x161   : > { %v2141_v47 = vpack.c.bf16 %v2064_v9, %v2063_v36  ;;  %v6113_v12 = vpop.eup %6112  ;;  %v1694_v58 = vadd.f32 1.0, %v6111_v33  ;;  %v2150_v63 = vpack.c.bf16 %v2130_v19, %v2129_v51  ;;  %v1959_v52 = vcombine.high %v7100_v1, %v7100_v1  ;;  %v8392_v9 = vld [vmem:[#allocation37_spill] sm:$0xff]  ;;  %v8395_v33 = vld [vmem:[#allocation43_spill] sm:$0xff] }
 0x162   : > { %v6115_v42 = vpop.eup %6114  ;;  %v1469_v55 = vadd.f32 1.0, %v6105_v5  ;;  %v5531_v32 = vunpack.c.l.bf16 %v5545_v53  ;;  %v1951_v16 = vrot.slane %v1929_v23, %v8385_v38  ;;  %v1695_v25 = vadd.f32 1.0, %v6101_v28 }
 0x163   : > { %2545 = vmatmul.mubr.bf16.gmra.mxu0 %v2141_v47  ;;  %2654 = vmatmul.mubr.bf16.gmra.mxu1 %v2141_v47  ;;  %v6117_v37 = vpop.eup %6116  ;;  %6132 = vrcp.f32 %v1694_v58  ;;  %v1998_v6 = vrot.slane %v7100_v1, %v6521_v14  ;;  %v1914_v30 = vcombine.high %v7064_v11, %v7064_v11  ;;  %v2066_v61 = vmul.f32 %v2050_v45, %v7079_v34 }
 0x164   : > { %2554 = vmatprep.mubr.bf16.mxu0 %v2150_v63  ;;  %2661 = vmatprep.mubr.bf16.mxu1 %v2150_v63  ;;  %v6119_v17 = vpop.eup %6118  ;;  %6134 = vrcp.f32 %v1470_v46  ;;  %v5527_v15 = vunpack.c.l.bf16 %v5544_v56  ;;  %v5532_v59 = vunpack.c.h.bf16 %v5545_v53  ;;  %v1513_v21 = vmul.f32 %v6117_v37, %v8391_v62  ;;  %v8397_v37 = vld [vmem:[#allocation40_spill] sm:$0xff] }
 0x165   : > { %v1737_v20 = vmul.f32 %v6119_v17, %v8390_v31  ;;  %6136 = vrcp.f32 %v1696_v41  ;;  %v2002_v40 = vrot.slane %v1951_v16, %v6521_v14  ;;  %v2065_v11 = vmul.f32 %v2049_v3, %v7089_v44  ;;  %v7127_v41 = vpop.permute.xlu1 %1829  ;;  %v7134_v17 = vpop.permute.xlu0 %1822  ;;  %v8399_v31 = vld [vmem:[#allocation36_spill] sm:$0xff] }
 0x166   : > { %v6121_v28 = vpop.eup %6120  ;;  %6138 = vrcp.f32 %v1469_v55  ;;  %v1739_v5 = vmul.f32 %v6115_v42, %v8392_v9  ;;  %v5528_v0 = vunpack.c.h.bf16 %v5544_v56  ;;  %v1961_v48 = vcombine.high %v1951_v16, %v1951_v16  ;;  %8396 = vst [vmem:[#allocation33_spill] sm:$0xff] %v7127_v41  ;;  %v5546_v56 = vld [vmem:[%s6713_s4 + $0x30] sm:$0xff]   ;;  %8398 = vst [vmem:[#allocation35_spill] sm:$0xff] %v7134_v17 }
 0x167   : > { %v1740_v54 = vmul.f32 %v6121_v28, %v8393_v2  ;;  %6140 = vrcp.f32 %v1695_v25  ;;  %v1472_v1 = vadd.f32 1.0, %v6113_v12  ;;  %v2142_v36 = vpack.c.bf16 %v2066_v61, %v2065_v11 }
 0x168   : > { %v6123_v18 = vpop.eup %6122  ;;  %v2115_v23 = vmul.f32 %v5527_v15, %v1737_v20  ;;  %v2051_v53 = vmul.f32 %v1998_v6, %v1513_v21  ;;  %v1471_v47 = vadd.f32 1.0, %v7072_v26  ;;  %v2006_v63 = vrot.slane %v1959_v52, %v6521_v14 }
 0x169   : > { %v6125_v19 = vpop.eup %6124  ;;  %v1514_v22 = vmul.f32 %v6123_v18, %v8394_v39  ;;  %v2118_v51 = vmul.f32 %v5532_v59, %v1740_v54  ;;  %v2117_v42 = vmul.f32 %v5531_v32, %v1739_v5  ;;  %v1928_v3 = vrot.slane %v1914_v30, %v8385_v38 }
 0x16a   : > { %v6127_v8 = vpop.eup %6126  ;;  %v1738_v45 = vmul.f32 %v6125_v19, %v8395_v33  ;;  %v2010_v25 = vrot.slane %v1961_v48, %v6521_v14  ;;  %6142 = vrcp.f32 %v1472_v1  ;;  %v2131_v61 = vmul.f32 %v2115_v23, %v7119_v50  ;;  %v7150_v23 = vpop.permute.xlu1 %1843 }
 0x16b   : > { %v2052_v46 = vmul.f32 %v2002_v40, %v1514_v22  ;;  %2555 = vmatmul.mubr.bf16.gmra.mxu0 %v2142_v36  ;;  %2662 = vmatmul.mubr.bf16.gmra.mxu1 %v2142_v36  ;;  %v6129_v58 = vpop.eup %6128  ;;  %v1516_v16 = vmul.f32 %v6127_v8, %v8397_v37  ;;  %v1930_v6 = vcombine.high %v1928_v3, %v1928_v3  ;;  %6144 = vrcp.f32 %v1471_v47  ;;  %v5547_v36 = vld [vmem:[%s6713_s4 + $0x38] sm:$0xff]   ;;  %s1195_s4 = scalar_lea.vmem %s8414_s5, %s6518_s28  ;;  %s8417_s5 = sld [smem:[#allocation15_spill]] }
 0x16c   : > { %v2116_v12 = vmul.f32 %v5528_v0, %v1738_v45  ;;  %v6131_v55 = vpop.eup %6130  ;;  %v2134_v32 = vmul.f32 %v2118_v51, %v7127_v41  ;;  %v1515_v30 = vmul.f32 %v6129_v58, %v8399_v31  ;;  %v5535_v20 = vunpack.c.l.bf16 %v5546_v56  ;;  %8400 = vst [vmem:[#allocation34_spill] sm:$0xff] %v7150_v23 }
 0x16d   : > { %v2068_v26 = vmul.f32 %v2052_v46, %v7113_v57  ;;  %v2067_v15 = vmul.f32 %v2051_v53, %v7119_v50  ;;  %v1741_v59 = vmul.f32 %v6131_v55, %v6961_v35  ;;  %v5536_v28 = vunpack.c.h.bf16 %v5546_v56  ;;  %v8401_v46 = vld [vmem:[#allocation46_spill] sm:$0xff] }
 0x16e   : > { %v2132_v52 = vmul.f32 %v2116_v12, %v7113_v57  ;;  %v2133_v21 = vmul.f32 %v2117_v42, %v7134_v17  ;;  %v2054_v11 = vmul.f32 %v2010_v25, %v1516_v16  ;;  %v2053_v0 = vmul.f32 %v2006_v63, %v1515_v30  ;;  %v7157_v63 = vpop.permute.xlu0 %1836 }
 0x16f   : > { %v2143_v18 = vpack.c.bf16 %v2068_v26, %v2067_v15  ;;  %v1958_v19 = vrot.slane %v1930_v6, %v8385_v38  ;;  %v2119_v48 = vmul.f32 %v5535_v20, %v1741_v59  ;;  %v1944_v1 = vrot.slane %v1928_v3, %v8385_v38  ;;  %8402 = vst [vmem:[#allocation39_spill] sm:$0xff] %v7157_v63 }
 0x170   : > { %v2151_v62 = vpack.c.bf16 %v2132_v52, %v2131_v61  ;;  %v6133_v40 = vpop.eup %6132  ;;  %v2152_v2 = vpack.c.bf16 %v2134_v32, %v2133_v21  ;;  %v2070_v51 = vmul.f32 %v2054_v11, %v7127_v41  ;;  %v5540_v45 = vunpack.c.h.bf16 %v5547_v36  ;;  %v7162_v61 = vpop.permute.xlu1 %1857 }
 0x171   : > { %v6135_v9 = vpop.eup %6134  ;;  %v1742_v5 = vmul.f32 %v6133_v40, %v6998_v49  ;;  %v2018_v8 = vrot.slane %v1958_v19, %v6521_v14  ;;  %v2014_v58 = vrot.slane %v1944_v1, %v6521_v14  ;;  %v2069_v38 = vmul.f32 %v2053_v0, %v7134_v17  ;;  %8404 = vst [vmem:[#allocation38_spill] sm:$0xff] %v7162_v61  ;;  %s7387_s6 = scalar_lea.vmem %s8417_s5, %s6518_s28  ;;  %s8438_s5 = sld [smem:[#allocation24_spill]] }
 0x172   : > { %2564 = vmatprep.mubr.bf16.mxu0 %v2151_v62  ;;  %2669 = vmatprep.mubr.bf16.mxu1 %v2151_v62  ;;  %v6137_v54 = vpop.eup %6136  ;;  %v1518_v49 = vmul.f32 %v6135_v9, %v6982_v60  ;;  %v8403_v60 = vld [vmem:[#allocation45_spill] sm:$0xff]  ;;  %v5539_v12 = vunpack.c.l.bf16 %v5547_v36  ;;  %v2135_v3 = vmul.f32 %v2119_v48, %v7157_v63  ;;  %v1962_v56 = vcombine.high %v1958_v19, %v1958_v19  ;;  %v7166_v20 = vpop.permute.xlu0 %1850  ;;  %v5938_v19 = vld [vmem:[%s6391_s24 + $0xa8] ss:$12 sps:$4 sm:$0xff]   ;;  %v5947_v36 = vld [vmem:[%s6391_s24 + $0x60] ss:$12 sps:$4 sm:$0xff]  }
 0x173   : > { %2565 = vmatmul.mubr.bf16.gmra.mxu0 %v2143_v18  ;;  %2670 = vmatmul.mubr.bf16.gmra.mxu1 %v2143_v18  ;;  %v6139_v35 = vpop.eup %6138  ;;  %v2120_v39 = vmul.f32 %v5536_v28, %v1742_v5  ;;  %v1744_v33 = vmul.f32 %v6137_v54, %v6969_v4  ;;  %v2144_v37 = vpack.c.bf16 %v2070_v51, %v2069_v38  ;;  %v8406_v28 = vld [vmem:[#allocation44_spill] sm:$0xff] }
 0x174   : > { %2574 = vmatprep.mubr.bf16.mxu0 %v2152_v2  ;;  %2677 = vmatprep.mubr.bf16.mxu1 %v2152_v2  ;;  %v6141_v22 = vpop.eup %6140  ;;  %v1517_v47 = vmul.f32 %v6139_v35, %v8401_v46  ;;  %v2056_v55 = vmul.f32 %v2018_v8, %v1518_v49  ;;  %v1960_v26 = vcombine.high %v1944_v1, %v1944_v1  ;;  %v5940_v35 = vld [vmem:[%s6391_s24 + $0xac] ss:$12 sps:$4 sm:$0xff]   ;;  %v5941_v48 = vld [vmem:[%s6391_s24 + $0x90] ss:$12 sps:$4 sm:$0xff]   ;;  %v8287_v8 = vmov 0.0  }
 0x175   : > { %v2136_v53 = vmul.f32 %v2120_v39, %v7150_v23  ;;  %v1743_v42 = vmul.f32 %v6141_v22, %v8403_v60  ;;  %v2122_v16 = vmul.f32 %v5540_v45, %v1744_v33  ;;  %v2026_v30 = vrot.slane %v1962_v56, %v6521_v14  ;;  %8405 = vst [vmem:[#allocation37_spill] sm:$0xff] %v7166_v20  ;;  %v5943_v39 = vld [vmem:[%s6391_s24 + $0x94] ss:$12 sps:$4 sm:$0xff]   ;;  %v5944_v22 = vld [vmem:[%s6391_s24 + $0x78] ss:$12 sps:$4 sm:$0xff]  }
 0x176   : > { %v2055_v6 = vmul.f32 %v2014_v58, %v1517_v47  ;;  %v2072_v15 = vmul.f32 %v2056_v55, %v7150_v23  ;;  %v2022_v21 = vrot.slane %v1960_v26, %v6521_v14  ;;  %3167 = vmatprep.subr.bf16.mxu1 %v5940_v35  ;;  %v5946_v1 = vld [vmem:[%s6391_s24 + $0x7c] ss:$12 sps:$4 sm:$0xff]   ;;  %v5949_v49 = vld [vmem:[%s6391_s24 + $0x64] ss:$12 sps:$4 sm:$0xff]   ;;  %5704 = vmatprep.subr.bf16.mxu0 %v8287_v8  ;;  %v5952_v33 = vld [vmem:[%s6391_s24 + $0x4c] ss:$12 sps:$4 sm:$0xff]  }
 0x177   : > { %v6143_v4 = vpop.eup %6142  ;;  %v2153_v25 = vpack.c.bf16 %v2136_v53, %v2135_v3  ;;  %v2121_v32 = vmul.f32 %v5539_v12, %v1743_v42  ;;  %v2138_v59 = vmul.f32 %v2122_v16, %v7162_v61  ;;  %3168 = vmatpush1.bf16.msra.mxu1 %v5938_v19  ;;  %v5953_v51 = vld [vmem:[%s6391_s24 + $0xb0] ss:$12 sps:$4 sm:$0xff]   ;;  %v5950_v45 = vld [vmem:[%s6391_s24 + $0x48] ss:$12 sps:$4 sm:$0xff]   ;;  %v5954_v53 = vld [vmem:[%s6391_s24 + $0x98] ss:$12 sps:$4 sm:$0xff]  }
 0x178   : > { %v6145_v52 = vpop.eup %6144  ;;  %v1520_v31 = vmul.f32 %v6143_v4, %v6964_v43  ;;  %v2071_v40 = vmul.f32 %v2055_v6, %v7157_v63  ;;  %3169 = vmatprep.subr.bf16.mxu1 %v5943_v39  ;;  %5705 = vmatpush3.bf16.msra.mxu0 %v5953_v51  ;;  %v5958_v46 = vld [vmem:[%s6391_s24 + $0x80] ss:$12 sps:$4 sm:$0xff]   ;;  %v5959_v58 = vld [vmem:[%s6391_s24 + $0x68] ss:$12 sps:$4 sm:$0xff]   ;;  %v5955_v42 = vld [vmem:[%s6391_s24 + $0x30] ss:$12 sps:$4 sm:$0xff]  }
 0x179   : > { %v1519_v62 = vmul.f32 %v6145_v52, %v8406_v28  ;;  %v2137_v11 = vmul.f32 %v2121_v32, %v7166_v20  ;;  %5706 = vmatprep.subr.bf16.mxu0 %v8287_v8  ;;  %v5957_v38 = vld [vmem:[%s6391_s24 + $0x34] ss:$12 sps:$4 sm:$0xff]   ;;  %v5963_v12 = vld [vmem:[%s6391_s24 + $0x50] ss:$12 sps:$4 sm:$0xff]   ;;  %v5964_v56 = vld [vmem:[%s6391_s24 + $0x38] ss:$12 sps:$4 sm:$0xff]  }
 0x17a   : > { %v2058_v18 = vmul.f32 %v2026_v30, %v1520_v31  ;;  %v2145_v43 = vpack.c.bf16 %v2072_v15, %v2071_v40  ;;  %v5960_v4 = vld [vmem:[%s6391_s24 + $0x18] ss:$12 sps:$4 sm:$0xff]   ;;  %v5968_v16 = vld [vmem:[%s6391_s24 + $0x20] ss:$12 sps:$4 sm:$0xff]   ;;  %v5969_v52 = vld [vmem:[%s6391_s24 + $0x8] ss:$12 sps:$4 sm:$0xff]  }
 0x17b   : > { %2575 = vmatmul.mubr.bf16.gmra.mxu0 %v2144_v37  ;;  %2678 = vmatmul.mubr.bf16.gmra.mxu1 %v2144_v37  ;;  %v2154_v9 = vpack.c.bf16 %v2138_v59, %v2137_v11  ;;  %v2057_v5 = vmul.f32 %v2022_v21, %v1519_v62  ;;  %v5962_v37 = vld [vmem:[%s6391_s24 + $0x1c] ss:$12 sps:$4 sm:$0xff]   ;;  %v5967_v26 = vld [vmem:[%s6391_s24 + $0x4] ss:$12 sps:$4 sm:$0xff]   ;;  %v5965_v6 = vld [vmem:[%s6391_s24] ss:$12 sps:$4 sm:$0xff]  }
 0x17c   : > { %2584 = vmatprep.mubr.bf16.mxu0 %v2153_v25  ;;  %2685 = vmatprep.mubr.bf16.mxu1 %v2153_v25  ;;  %v2074_v2 = vmul.f32 %v2058_v18, %v7162_v61  ;;  %v5972_v31 = vld [vmem:[%s8339_s8 + $0xac] ss:$12 sps:$4 sm:$0xff]  }
 0x17d   : > { %v2073_v54 = vmul.f32 %v2057_v5, %v7166_v20  ;;  %3170 = vmatpush1.bf16.msra.mxu1 %v5941_v48  ;;  %5707 = vmatpush3.bf16.msra.mxu0 %v5954_v53  ;;  %v2219_v5 = vld [vmem:[%s8407_s11] sm:$0x7] }
 0x17e   : > { %3171 = vmatprep.subr.bf16.mxu1 %v5946_v1  ;;  %5708 = vmatprep.subr.bf16.mxu0 %v8287_v8  ;;  %v7230_v35 = vrot.slane %v2219_v5, %v6521_v14 }
 0x17f   : > { %v2146_v0 = vpack.c.bf16 %v2074_v2, %v2073_v54  ;;  %v8408_v2 = vld [vmem:[#allocation32_spill] sm:$0xff] }
 0x180   : > { %v7224_v54 = vrot.slane %v2219_v5, %v8408_v2 }
 0x181   : > { %3172 = vmatpush1.bf16.msra.mxu1 %v5944_v22  ;;  %5709 = vmatpush3.bf16.msra.mxu0 %v5958_v46 }
 0x182   : > { %3173 = vmatprep.subr.bf16.mxu1 %v5949_v49  ;;  %5710 = vmatprep.subr.bf16.mxu0 %v8287_v8  ;;  %8409 = vst [vmem:[#allocation41_spill] sm:$0xff] %v7224_v54 }
 0x183   : > { %2585 = vmatmul.mubr.bf16.gmra.mxu0 %v2145_v43  ;;  %2686 = vmatmul.mubr.bf16.gmra.mxu1 %v2145_v43 }
 0x184   : > { %2594 = vmatprep.mubr.bf16.mxu0 %v2154_v9  ;;  %2693 = vmatprep.mubr.bf16.mxu1 %v2154_v9 }
 0x185   : > { %3174 = vmatpush1.bf16.msra.mxu1 %v5947_v36  ;;  %5711 = vmatpush3.bf16.msra.mxu0 %v5959_v58 }
 0x186   : > { %3175 = vmatprep.subr.bf16.mxu1 %v5952_v33  ;;  %5712 = vmatprep.subr.bf16.mxu0 %v8287_v8 }
 0x189   : > { %3176 = vmatpush1.bf16.msra.mxu1 %v5950_v45  ;;  %5713 = vmatpush3.bf16.msra.mxu0 %v5963_v12 }
 0x18a   : > { %3177 = vmatprep.subr.bf16.mxu1 %v5957_v38  ;;  %5714 = vmatprep.subr.bf16.mxu0 %v8287_v8 }
 0x18b   : > { %2595 = vmatmul.mubr.bf16.gmra.mxu0 %v2146_v0  ;;  %2694 = vmatmul.mubr.bf16.gmra.mxu1 %v2146_v0 }
 0x18d   : > { %3178 = vmatpush1.bf16.msra.mxu1 %v5955_v42  ;;  %5715 = vmatpush3.bf16.msra.mxu0 %v5964_v56 }
 0x18e   : > { %5716 = vmatprep.subr.bf16.mxu0 %v8287_v8  ;;  %3179 = vmatprep.subr.bf16.mxu1 %v5962_v37 }
 0x191   : > { %3180 = vmatpush1.bf16.msra.mxu1 %v5960_v4  ;;  %5717 = vmatpush3.bf16.msra.mxu0 %v5968_v16 }
 0x192   : > { %5718 = vmatprep.subr.bf16.mxu0 %v8287_v8  ;;  %3181 = vmatprep.subr.bf16.mxu1 %v5967_v26 }
 0x195   : > { %3182 = vmatpush1.bf16.msra.mxu1 %v5965_v6  ;;  %5719 = vmatpush3.bf16.msra.mxu0 %v5969_v52 }
 0x196   : > { %5724 = vmatprep.subr.bf16.mxu0 %v8287_v8  ;;  %3420 = vmatprep.subr.bf16.mxu1 %v5972_v31 }
 0x212   : > { %v2526_v47 = vpop.f32.mrf.mxu0 }
 0x213   : > { %v2527_v49 = vadd.f32 %v2526_v47, %v7230_v35 }
 0x214   : > { %v2528_v60 = vpop.f32.mrf.mxu0 }
 0x215   : > { %v2529_v45 = vadd.f32 %v2528_v60, %v7224_v54  ;;  %v2702_v38 = vmul.f32 %v2527_v49, %v6957_v24 }
 0x216   : > { %v2530_v3 = vpop.f32.mrf.mxu0 }
 0x217   : > { %v2531_v22 = vadd.f32 %v2530_v3, %v7230_v35  ;;  %v2703_v3 = vmul.f32 %v2529_v45, %v6957_v24  ;;  %v2750_v4 = vrot.slane %v2702_v38, 4 }
 0x218   : > { %v2532_v55 = vpop.f32.mrf.mxu0 }
 0x219   : > { %v2533_v19 = vadd.f32 %v2532_v55, %v7224_v54  ;;  %v2705_v53 = vmul.f32 %v2531_v22, %v7009_v27  ;;  %v2846_v6 = vrot.slane %v2703_v3, 4 }
 0x21b   : > { %v2536_v25 = vpop.f32.mrf.mxu0  ;;  %v2706_v1 = vmul.f32 %v2533_v19, %v7009_v27  ;;  %v2756_v56 = vrot.slane %v2705_v53, 4  ;;  %v2751_v19 = vadd.f32 %v2750_v4, %v2702_v38 }
 0x21c   : > { %v2537_v36 = vadd.f32 %v2536_v25, %v7230_v35 }
 0x21d   : > { %v2538_v32 = vpop.f32.mrf.mxu0  ;;  %v2852_v46 = vrot.slane %v2706_v1, 4  ;;  %v2757_v52 = vadd.f32 %v2756_v56, %v2705_v53 }
 0x21e   : > { %v2539_v48 = vadd.f32 %v2538_v32, %v7224_v54  ;;  %v2708_v58 = vmul.f32 %v2537_v36, %v6952_v29  ;;  %v2847_v36 = vadd.f32 %v2846_v6, %v2703_v3 }
 0x21f   : > { %v2540_v30 = vpop.f32.mrf.mxu0  ;;  %v2853_v47 = vadd.f32 %v2852_v46, %v2706_v1  ;;  %v2758_v49 = vrot.slane %v2757_v52, 2  ;;  %v2752_v46 = vrot.slane %v2751_v19, 2 }
 0x220   : > { %v2709_v51 = vmul.f32 %v2539_v48, %v6952_v29  ;;  %v2762_v55 = vrot.slane %v2708_v58, 4  ;;  %v2541_v37 = vadd.f32 %v2540_v30, %v7230_v35 }
 0x221   : > { %v2542_v15 = vpop.f32.mrf.mxu0  ;;  %v2854_v32 = vrot.slane %v2853_v47, 2 }
 0x222   : > { %v2858_v42 = vrot.slane %v2709_v51, 4  ;;  %v2543_v60 = vadd.f32 %v2542_v15, %v7224_v54  ;;  %v2763_v31 = vadd.f32 %v2762_v55, %v2708_v58  ;;  %v2711_v5 = vmul.f32 %v2541_v37, %v7000_v10 }
 0x223   : > { %v2546_v59 = vpop.f32.mrf.mxu0 }
 0x224   : > { %v2859_v16 = vadd.f32 %v2858_v42, %v2709_v51  ;;  %v2547_v25 = vadd.f32 %v2546_v59, %v7230_v35  ;;  %v2712_v22 = vmul.f32 %v2543_v60, %v7000_v10  ;;  %v2855_v51 = vadd.f32 %v2854_v32, %v2853_v47  ;;  %v7270_v32 = vld [vmem:[%s7267_s1] sm:$0xff] }
 0x225   : > { %v2548_v28 = vpop.f32.mrf.mxu0  ;;  %v2764_v45 = vrot.slane %v2763_v31, 2  ;;  %v2768_v53 = vrot.slane %v2711_v5, 4  ;;  %v2753_v60 = vadd.f32 %v2752_v46, %v2751_v19  ;;  %v4034_v14 = vrot.slane %v7270_v32, 1 }
 0x226   : > { %v2860_v48 = vrot.slane %v2859_v16, 2  ;;  %v2714_v30 = vmul.f32 %v2547_v25, %v7066_v13  ;;  %v2549_v15 = vadd.f32 %v2548_v28, %v7224_v54  ;;  %v2864_v38 = vrot.slane %v2712_v22, 4 }
 0x227   : > { %v2550_v62 = vpop.f32.mrf.mxu0  ;;  %v2848_v28 = vrot.slane %v2847_v36, 2  ;;  %v2856_v3 = vrot.slane %v2855_v51, 1  ;;  %v2765_v4 = vadd.f32 %v2764_v45, %v2763_v31  ;;  %v2769_v47 = vadd.f32 %v2768_v53, %v2711_v5 }
 0x228   : > { %v2551_v59 = vadd.f32 %v2550_v62, %v7230_v35  ;;  %v2861_v58 = vadd.f32 %v2860_v48, %v2859_v16  ;;  %v2774_v42 = vrot.slane %v2714_v30, 4  ;;  %v2715_v56 = vmul.f32 %v2549_v15, %v7066_v13 }
 0x229   : > { %v7210_v21 = vpop.f32.mrf.mxu0  ;;  %v2759_v62 = vadd.f32 %v2758_v49, %v2757_v52  ;;  %v2865_v6 = vadd.f32 %v2864_v38, %v2712_v22  ;;  %v7277_v49 = vadd.f32 %v2856_v3, %v2855_v51  ;;  %v2766_v31 = vrot.slane %v2765_v4, 1 }
 0x22a   : > { %v2717_v55 = vmul.f32 %v2551_v59, %v7053_v7  ;;  %v2862_v25 = vrot.slane %v2861_v58, 1  ;;  %v2775_v16 = vadd.f32 %v2774_v42, %v2714_v30  ;;  %v2870_v48 = vrot.slane %v2715_v56, 4 }
 0x22b   : > { %v7212_v40 = vpop.f32.mrf.mxu0  ;;  %v2849_v59 = vadd.f32 %v2848_v28, %v2847_v36  ;;  %v2760_v2 = vrot.slane %v2759_v62, 1  ;;  %v2553_v52 = vadd.f32 %v7210_v21, %v7224_v54  ;;  %v4035_v5 = vrot.slane %v7270_v32, 2 }
 0x22c   : > { %v2780_v15 = vrot.slane %v2717_v55, 4  ;;  %v2770_v19 = vrot.slane %v2769_v47, 2  ;;  %v2754_v22 = vrot.slane %v2753_v60, 1  ;;  %v7280_v30 = vadd.f32 %v2862_v25, %v2861_v58 }
 0x22d   : > { %v7214_v11 = vpop.f32.mrf.mxu0  ;;  %v2866_v45 = vrot.slane %v2865_v6, 2  ;;  %v2776_v53 = vrot.slane %v2775_v16, 2  ;;  %v2871_v36 = vadd.f32 %v2870_v48, %v2715_v56  ;;  %v2850_v42 = vrot.slane %v2849_v59, 1 }
 0x22e   : > { %v2781_v46 = vadd.f32 %v2780_v15, %v2717_v55  ;;  %v2761_v21 = vadd.f32 %v2760_v2, %v2759_v62  ;;  %v2718_v28 = vmul.f32 %v2553_v52, %v7053_v7  ;;  %v7287_v3 = vmul.f32 %v4034_v14, %v7277_v49  ;;  %v7294_v15 = vld [vmem:[%s7267_s1 + $0x8] sm:$0xff] }
 0x22f   : > { %v7216_v18 = vpop.f32.mrf.mxu0  ;;  %v2767_v58 = vadd.f32 %v2766_v31, %v2765_v4  ;;  %v2771_v25 = vadd.f32 %v2770_v19, %v2769_v47  ;;  %v2755_v10 = vadd.f32 %v2754_v22, %v2753_v60  ;;  %v7291_v56 = vmul.f32 %v4035_v5, %v7280_v30 }
 0x230   : > { %v2867_v55 = vadd.f32 %v2866_v45, %v2865_v6  ;;  %v2777_v48 = vadd.f32 %v2776_v53, %v2775_v16  ;;  %v2872_v2 = vrot.slane %v2871_v36, 2  ;;  %v2782_v62 = vrot.slane %v2781_v46, 2 }
 0x231   : > { %v7218_v43 = vpop.f32.mrf.mxu0  ;;  %v7298_v47 = vadd.f32 %v2850_v42, %v2849_v59  ;;  %v2965_v60 = vsel %vm2964_vm1, %v2761_v21, %v2755_v10  ;;  %v2876_v31 = vrot.slane %v2718_v28, 4  ;;  %v2772_v19 = vrot.slane %v2771_v25, 1 }
 0x232   : > { %v2967_v16 = vsel %vm2966_vm2, %v2767_v58, %v2965_v60  ;;  %v2868_v53 = vrot.slane %v2867_v55, 1  ;;  %v2778_v14 = vrot.slane %v2777_v48, 1  ;;  %v2873_v42 = vadd.f32 %v2872_v2, %v2871_v36 }
 0x233   : > { %v7220_v9 = vpop.f32.mrf.mxu0  ;;  %v2783_v10 = vadd.f32 %v2782_v62, %v2781_v46  ;;  %v2557_v21 = vadd.f32 %v7212_v40, %v7230_v35  ;;  %v2561_v5 = vadd.f32 %v7216_v18, %v7230_v35  ;;  %v2877_v60 = vadd.f32 %v2876_v31, %v2718_v28 }
 0x234   : > { %v2567_v45 = vadd.f32 %v7220_v9, %v7230_v35  ;;  %v2773_v36 = vadd.f32 %v2772_v19, %v2771_v25  ;;  %v2563_v40 = vadd.f32 %v7218_v43, %v7224_v54  ;;  %v7326_v2 = vadd.f32 %v2868_v53, %v2867_v55 }
 0x235   : > { %v7226_v0 = vpop.f32.mrf.mxu0  ;;  %v2779_v28 = vadd.f32 %v2778_v14, %v2777_v48  ;;  %v2874_v9 = vrot.slane %v2873_v42, 1  ;;  %v2784_v31 = vrot.slane %v2783_v10, 1  ;;  %v2723_v25 = vmul.f32 %v2561_v5, %v7079_v34 }
 0x236   : > { %v2878_v43 = vrot.slane %v2877_v60, 2  ;;  %v2726_v6 = vmul.f32 %v2567_v45, %v7119_v50  ;;  %v2969_v55 = vsel %vm2968_vm3, %v2773_v36, %v2967_v16  ;;  %v2724_v48 = vmul.f32 %v2563_v40, %v7079_v34 }
 0x237   : > { %v7233_v39 = vpop.f32.mrf.mxu0  ;;  %v2971_v53 = vsel %vm2970_vm4, %v2779_v28, %v2969_v55  ;;  %v7341_v52 = vadd.f32 %v2874_v9, %v2873_v42  ;;  %v2792_v13 = vrot.slane %v2723_v25, 4 }
 0x238   : > { %v2571_v22 = vadd.f32 %v7233_v39, %v7230_v35  ;;  %v2559_v39 = vadd.f32 %v7214_v11, %v7224_v54  ;;  %v2798_v36 = vrot.slane %v2726_v6, 4  ;;  %v2888_v51 = vrot.slane %v2724_v48, 4 }
 0x239   : > { %v7240_v33 = vpop.f32.mrf.mxu0 }
 0x23a   : > { %v2729_v46 = vmul.f32 %v2571_v22, %v7113_v57  ;;  %v2721_v22 = vmul.f32 %v2559_v39, %v7089_v44  ;;  %v2785_v39 = vadd.f32 %v2784_v31, %v2783_v10  ;;  %v2793_v31 = vadd.f32 %v2792_v13, %v2723_v25 }
 0x23b   : > { %v7246_v12 = vpop.f32.mrf.mxu0 }
 0x23c   : > { %v2577_v59 = vadd.f32 %v7246_v12, %v7230_v35  ;;  %v2804_v14 = vrot.slane %v2729_v46, 4  ;;  %v2882_v16 = vrot.slane %v2721_v22, 4  ;;  %v7351_v9 = vsel %vm2972_vm5, %v2785_v39, %v2971_v53 }
 0x23d   : > { %v7252_v26 = vpop.f32.mrf.mxu0 }
 0x23e   : > { %v2732_v11 = vmul.f32 %v2577_v59, %v7134_v17 }
 0x23f   : > { %v7259_v1 = vpop.f32.mrf.mxu0 }
 0x240   : > { %v2581_v12 = vadd.f32 %v7259_v1, %v7230_v35  ;;  %v2720_v1 = vmul.f32 %v2557_v21, %v7089_v44  ;;  %v2810_v59 = vrot.slane %v2732_v11, 4 }
 0x241   : > { %v7263_v37 = vpop.f32.mrf.mxu0 }
 0x242   : > { %v2786_v45 = vrot.slane %v2720_v1, 4  ;;  %v2811_v55 = vadd.f32 %v2810_v59, %v2732_v11 }
 0x243   : > { %v7272_v8 = vpop.f32.mrf.mxu0 }
 0x244   : > { %v2587_v18 = vadd.f32 %v7272_v8, %v7230_v35  ;;  %v2735_v8 = vmul.f32 %v2581_v12, %v7127_v41  ;;  %v7343_v12 = vadd.f32 %v2878_v43, %v2877_v60  ;;  %v2787_v60 = vadd.f32 %v2786_v45, %v2720_v1 }
 0x245   : > { %v7282_v38 = vpop.f32.mrf.mxu0  ;;  %v2799_v43 = vadd.f32 %v2798_v36, %v2726_v6  ;;  %v2812_v53 = vrot.slane %v2811_v55, 2  ;;  %v2794_v6 = vrot.slane %v2793_v31, 2 }
 0x246   : > { %8411 = vst [vmem:[#allocation42_spill] sm:$0xff] %v7282_v38  ;;  %v2816_v40 = vrot.slane %v2735_v8, 4 }
 0x247   : > { %v2590_v4 = vpop.f32.mrf.mxu0 }
 0x248   : > { %v2591_v62 = vadd.f32 %v2590_v4, %v7230_v35  ;;  %v2738_v4 = vmul.f32 %v2587_v18, %v7157_v63  ;;  %v2573_v18 = vadd.f32 %v7240_v33, %v7224_v54  ;;  %v2569_v33 = vadd.f32 %v7226_v0, %v7224_v54 }
 0x249   : > { %v7313_v58 = vpop.f32.mrf.mxu0  ;;  %v2817_v11 = vadd.f32 %v2816_v40, %v2735_v8  ;;  %v2800_v8 = vrot.slane %v2799_v43, 2 }
 0x24a   : > { %8412 = vst [vmem:[#allocation43_spill] sm:$0xff] %v7313_v58  ;;  %v2741_v5 = vmul.f32 %v2591_v62, %v7150_v23  ;;  %v2805_v58 = vadd.f32 %v2804_v14, %v2729_v46  ;;  %v2822_v28 = vrot.slane %v2738_v4, 4  ;;  %v2579_v62 = vadd.f32 %v7252_v26, %v7224_v54 }
 0x24b   : > { %v2596_v19 = vpop.f32.mrf.mxu0  ;;  %v2883_v46 = vadd.f32 %v2882_v16, %v2721_v22  ;;  %v2889_v26 = vadd.f32 %v2888_v51, %v2724_v48  ;;  %v2788_v22 = vrot.slane %v2787_v60, 2  ;;  %v2727_v45 = vmul.f32 %v2569_v33, %v7119_v50 }
 0x24c   : > { %v2597_v21 = vadd.f32 %v2596_v19, %v7230_v35  ;;  %v2828_v42 = vrot.slane %v2741_v5, 4  ;;  %v2583_v19 = vadd.f32 %v7263_v37, %v7224_v54  ;;  %v2806_v59 = vrot.slane %v2805_v58, 2 }
 0x24d   : > { %v7357_v14 = vpop.f32.mrf.mxu0  ;;  %v2733_v1 = vmul.f32 %v2579_v62, %v7134_v17  ;;  %v2884_v0 = vrot.slane %v2883_v46, 2  ;;  %v2818_v51 = vrot.slane %v2817_v11, 2  ;;  %v2890_v16 = vrot.slane %v2889_v26, 2 }
 0x24e   : > { %v2744_v10 = vmul.f32 %v2597_v21, %v7166_v20  ;;  %8413 = vst [vmem:[#allocation40_spill] sm:$0xff] %v7357_v14  ;;  %v2730_v21 = vmul.f32 %v2573_v18, %v7113_v57  ;;  %v2823_v20 = vadd.f32 %v2822_v28, %v2738_v4  ;;  %v2829_v13 = vadd.f32 %v2828_v42, %v2741_v5 }
 0x24f   : > { %v2736_v39 = vmul.f32 %v2583_v19, %v7127_v41  ;;  %v2600_v48 = vpop.f32.mrf.mxu0  ;;  %v2807_v36 = vadd.f32 %v2806_v59, %v2805_v58  ;;  %v2813_v18 = vadd.f32 %v2812_v53, %v2811_v55  ;;  %v2906_v28 = vrot.slane %v2733_v1, 4 }
 0x250   : > { %v2834_v25 = vrot.slane %v2744_v10, 4  ;;  %v2900_v4 = vrot.slane %v2730_v21, 4  ;;  %v2824_v40 = vrot.slane %v2823_v20, 2  ;;  %v2830_v5 = vrot.slane %v2829_v13, 2 }
 0x251   : > { %v2789_v42 = vadd.f32 %v2788_v22, %v2787_v60  ;;  %v2795_v37 = vadd.f32 %v2794_v6, %v2793_v31  ;;  %v2912_v23 = vrot.slane %v2736_v39, 4  ;;  %v2601_v14 = vadd.f32 %v2600_v48, %v7230_v35 }
 0x252   : > { %v2835_v62 = vadd.f32 %v2834_v25, %v2744_v10  ;;  %v2801_v19 = vadd.f32 %v2800_v8, %v2799_v43  ;;  %v2894_v41 = vrot.slane %v2727_v45, 4  ;;  %v2819_v63 = vadd.f32 %v2818_v51, %v2817_v11 }
 0x253   : > { %v2808_v33 = vrot.slane %v2807_v36, 1  ;;  %v2901_v54 = vadd.f32 %v2900_v4, %v2730_v21  ;;  %v2825_v17 = vadd.f32 %v2824_v40, %v2823_v20  ;;  %v2747_v58 = vmul.f32 %v2601_v14, %v7162_v61 }
 0x254   : > { %v2836_v38 = vrot.slane %v2835_v62, 2  ;;  %v2814_v55 = vrot.slane %v2813_v18, 1  ;;  %v2907_v59 = vadd.f32 %v2906_v28, %v2733_v1  ;;  %v2831_v53 = vadd.f32 %v2830_v5, %v2829_v13 }
 0x255   : > { %v2913_v10 = vadd.f32 %v2912_v23, %v2736_v39  ;;  %v2840_v31 = vrot.slane %v2747_v58, 4  ;;  %v8302_v25 = vmov 0   ;;  %v2790_v35 = vrot.slane %v2789_v42, 1 }
 0x256   : > { %v2837_v60 = vadd.f32 %v2836_v38, %v2835_v62  ;;  %3199 = vmatprep.mubr.bf16.mxu1 %v8302_v25  ;;  %v2885_v43 = vadd.f32 %v2884_v0, %v2883_v46  ;;  %v2802_v11 = vrot.slane %v2801_v19, 1  ;;  %v2820_v22 = vrot.slane %v2819_v63, 1 }
 0x257   : > { %v8416_v20 = vmov 0.0   ;;  %v2796_v14 = vrot.slane %v2795_v37, 1  ;;  %v2895_v21 = vadd.f32 %v2894_v41, %v2727_v45  ;;  %v2902_v23 = vrot.slane %v2901_v54, 2 }
 0x258   : > { %5720 = vmatprep.mubr.msk.bf16.mxu0 %vm6283_vm8, %v8416_v20  ;;  %v2826_v38 = vrot.slane %v2825_v17, 1  ;;  %v2809_v1 = vadd.f32 %v2808_v33, %v2807_v36  ;;  %v2908_v13 = vrot.slane %v2907_v59, 2  ;;  %v2832_v6 = vrot.slane %v2831_v53, 1 }
 0x259   : > { %v2841_v39 = vadd.f32 %v2840_v31, %v2747_v58  ;;  %v2891_v8 = vadd.f32 %v2890_v16, %v2889_v26  ;;  %v2815_v46 = vadd.f32 %v2814_v55, %v2813_v18  ;;  %v2914_v0 = vrot.slane %v2913_v10, 2  ;;  %v2942_v58 = vld [vmem:[%s1195_s4] sm:$0xff] }
 0x25a   : > { %v2838_v51 = vrot.slane %v2837_v60, 1  ;;  %v2791_v48 = vadd.f32 %v2790_v35, %v2789_v42  ;;  %v2803_v4 = vadd.f32 %v2802_v11, %v2801_v19  ;;  %v2821_v40 = vadd.f32 %v2820_v22, %v2819_v63  ;;  %v2944_v26 = vld [vmem:[%s1201_s23] sm:$0xff]  ;;  %v2945_v19 = vld [vmem:[%s1201_s23 + $0x8] sm:$0xff] }
 0x25b   : > { %v2842_v28 = vrot.slane %v2841_v39, 2  ;;  %v2797_v5 = vadd.f32 %v2796_v14, %v2795_v37  ;;  %v2896_v62 = vrot.slane %v2895_v21, 2  ;;  %v2903_v25 = vadd.f32 %v2902_v23, %v2901_v54  ;;  %v2943_v54 = vld [vmem:[%s1195_s4 + $0x8] sm:$0xff]  ;;  %s8428_s4 = sld [smem:[#allocation16_spill]] }
 0x25c   : > { %v2827_v41 = vadd.f32 %v2826_v38, %v2825_v17  ;;  %v2978_v45 = vsel %vm2964_vm1, %v2809_v1, %v2803_v4  ;;  %v2909_v36 = vadd.f32 %v2908_v13, %v2907_v59  ;;  %v2833_v33 = vadd.f32 %v2832_v6, %v2831_v53 }
 0x25d   : > { %v2843_v61 = vadd.f32 %v2842_v28, %v2841_v39  ;;  %v2886_v16 = vrot.slane %v2885_v43, 1  ;;  %v2979_v18 = vsel %vm2966_vm2, %v2815_v46, %v2978_v45  ;;  %v2915_v55 = vadd.f32 %v2914_v0, %v2913_v10 }
 0x25e   : > { %v2839_v31 = vadd.f32 %v2838_v51, %v2837_v60  ;;  %v2975_v63 = vsel %vm2974_vm6, %v2791_v48, %v7351_v9  ;;  %v2892_v42 = vrot.slane %v2891_v8, 1  ;;  %v2980_v37 = vsel %vm2968_vm3, %v2821_v40, %v2979_v18 }
 0x25f   : > { %v2844_v17 = vrot.slane %v2843_v61, 1  ;;  %v2977_v59 = vsel %vm2976_vm7, %v2797_v5, %v2975_v63  ;;  %v2904_v53 = vrot.slane %v2903_v25, 1  ;;  %v2981_v35 = vsel %vm2970_vm4, %v2827_v41, %v2980_v37  ;;  %v5973_v41 = vld [vmem:[%s8339_s8 + $0xb0] ss:$12 sps:$4 sm:$0xff]  }
 0x260   : > { %v2946_v11 = vadd.f32 %v2944_v26, %v2942_v58  ;;  %v2897_v22 = vadd.f32 %v2896_v62, %v2895_v21  ;;  %v2910_v10 = vrot.slane %v2909_v36, 1  ;;  %v2982_v60 = vsel %vm2972_vm5, %v2833_v33, %v2981_v35  ;;  %v5970_v62 = vld [vmem:[%s8339_s8 + $0xa8] ss:$12 sps:$4 sm:$0xff]   ;;  %v7410_v33 = vld [vmem:[%s7387_s6] sm:$0xff] }
 0x261   : > { %v2845_v14 = vadd.f32 %v2844_v17, %v2843_v61  ;;  %v8418_v9 = vrot.slane %v7270_v32, 3  ;;  %v2916_v38 = vrot.slane %v2915_v55, 1  ;;  %v2983_v1 = vsel %vm2974_vm6, %v2839_v31, %v2982_v60  ;;  %v5976_v58 = vld [vmem:[%s8339_s8 + $0x94] ss:$12 sps:$4 sm:$0xff]   ;;  %s7487_s23 = scalar_lea.vmem %s8428_s4, %s6518_s28  ;;  %s8084_s4 = scalar_lea.vmem %s6441_s30, %s6518_s28 }
 0x262   : > { %v2947_v13 = vadd.f32 %v2945_v19, %v2943_v54  ;;  %v8419_v6 = vrot.slane %v7270_v32, 4  ;;  %v8420_v61 = vrot.slane %v7343_v12, 1  ;;  %v7397_v46 = vadd.f32 %v2886_v16, %v2885_v43  ;;  %v5974_v19 = vld [vmem:[%s8339_s8 + $0x90] ss:$12 sps:$4 sm:$0xff]  }
 0x263   : > { %v4067_v23 = vmul.f32 %v8418_v9, %v7326_v2  ;;  %v2984_v0 = vsel %vm2976_vm7, %v2845_v14, %v2983_v1  ;;  %v7400_v51 = vadd.f32 %v2892_v42, %v2891_v8  ;;  %v7402_v48 = vadd.f32 %v2904_v53, %v2903_v25  ;;  %v5980_v9 = vld [vmem:[%s8339_s8 + $0x7c] ss:$12 sps:$4 sm:$0xff]  }
 0x264   : > { %v4068_v21 = vmul.f32 %v8419_v6, %v7341_v52  ;;  %v7395_v39 = vadd.f32 %v8420_v61, %v7343_v12  ;;  %v2987_v4 = vadd.f32 %v2977_v59, %v2946_v11  ;;  %v2988_v40 = vadd.f32 %v2984_v0, %v2947_v13  ;;  %v5977_v59 = vld [vmem:[%s8339_s8 + $0x98] ss:$12 sps:$4 sm:$0xff]  }
 0x265   : > { %v2898_v28 = vrot.slane %v2897_v22, 1  ;;  %v7404_v5 = vadd.f32 %v2910_v10, %v2909_v36  ;;  %v4038_v45 = vrot.slane %v7270_v32, 5  ;;  %v7412_v12 = vadd.f32 %v2916_v38, %v2915_v55 }
 0x266   : > { %v2989_v43 = vpack.c.bf16 %v2988_v40, %v2987_v4  ;;  %v4039_v8 = vrot.slane %v7270_v32, 6  ;;  %v4040_v25 = vrot.slane %v7270_v32, 7  ;;  %v4064_v36 = vmul.f32 %v7270_v32, %v7298_v47 }
 0x267   : > { %v4394_v26 = vrot.slane %v7410_v33, 1  ;;  %v4100_v16 = vrot.slane %v4067_v23, 5  ;;  %v4069_v18 = vmul.f32 %v4038_v45, %v7395_v39  ;;  %v4102_v31 = vrot.slane %v4068_v21, 4  ;;  %v7457_v45 = vld [vmem:[%s7387_s6 + $0x8] sm:$0xff] }
 0x268   : > { %v8421_v55 = vrot.slane %v7294_v15, 1  ;;  %3200 = vmatmul.mubr.bf16.vlgmr.msra.gmra.mxu1 %v2989_v43  ;;  %5721 = vmatmul.mubr.bf16.vlgmr.msra.gmra.mxu0 %v2989_v43  ;;  %v4070_v42 = vmul.f32 %v4039_v8, %v7397_v46  ;;  %v4071_v37 = vmul.f32 %v4040_v25, %v7400_v51  ;;  %v8422_v17 = vrot.slane %v7294_v15, 2  ;;  %v5984_v8 = vld [vmem:[%s8339_s8 + $0x64] ss:$12 sps:$4 sm:$0xff]  }
 0x269   : > { %3421 = vmatpush1.bf16.msra.mxu1 %v5970_v62  ;;  %5725 = vmatpush3.bf16.msra.mxu0 %v5973_v41  ;;  %v8423_v53 = vrot.slane %v7287_v3, 7  ;;  %v4104_v11 = vrot.slane %v4069_v18, 3  ;;  %v7434_v10 = vadd.f32 %v2898_v28, %v2897_v22  ;;  %v8424_v60 = vrot.slane %v7294_v15, 3  ;;  %v5978_v28 = vld [vmem:[%s8339_s8 + $0x78] ss:$12 sps:$4 sm:$0xff]  }
 0x26a   : > { %v4073_v63 = vmul.f32 %v8421_v55, %v7402_v48  ;;  %v4074_v54 = vmul.f32 %v8422_v17, %v7404_v5  ;;  %3422 = vmatprep.subr.bf16.mxu1 %v5976_v58  ;;  %5726 = vmatprep.subr.bf16.mxu0 %v8416_v20  ;;  %v8425_v23 = vrot.slane %v7291_v56, 6  ;;  %v4106_v3 = vrot.slane %v4070_v42, 2  ;;  %v5981_v62 = vld [vmem:[%s8339_s8 + $0x80] ss:$12 sps:$4 sm:$0xff]   ;;  %v5985_v17 = vld [vmem:[%s8339_s8 + $0x68] ss:$12 sps:$4 sm:$0xff]  }
 0x26b   : > { %v4097_v35 = vsel %vm2964_vm1, %v8423_v53, %v4064_v36  ;;  %v4075_v14 = vmul.f32 %v8424_v60, %v7412_v12  ;;  %v4395_v1 = vrot.slane %v7410_v33, 2  ;;  %v8426_v13 = vmov 0   ;;  %5740 = vmatprep.mubr.msk.bf16.mxu0 %vm6283_vm8, %v8416_v20  ;;  %v5988_v53 = vld [vmem:[%s8339_s8 + $0x4c] ss:$12 sps:$4 sm:$0xff]  }
 0x26c   : > { %v4099_v38 = vsel %vm2966_vm2, %v8425_v23, %v4097_v35  ;;  %3452 = vmatprep.mubr.bf16.mxu1 %v8426_v13  ;;  %v4108_v6 = vrot.slane %v4071_v37, 1  ;;  %v4425_v21 = vmul.f32 %v4394_v26, %v7277_v49  ;;  %v4396_v56 = vrot.slane %v7410_v33, 3  ;;  %v5982_v37 = vld [vmem:[%s8339_s8 + $0x60] ss:$12 sps:$4 sm:$0xff]  }
 0x26d   : > { %v4101_v22 = vsel %vm2968_vm3, %v4100_v16, %v4099_v38  ;;  %v4110_v61 = vrot.slane %v4073_v63, 7  ;;  %v4397_v4 = vrot.slane %v7410_v33, 4  ;;  %v4112_v40 = vrot.slane %v4074_v54, 6  ;;  %3423 = vmatpush1.bf16.msra.mxu1 %v5974_v19  ;;  %5727 = vmatpush3.bf16.msra.mxu0 %v5977_v59 }
 0x26e   : > { %v4103_v0 = vsel %vm2970_vm4, %v4102_v31, %v4101_v22  ;;  %v4072_v43 = vmul.f32 %v7294_v15, %v7434_v10  ;;  %v4114_v58 = vrot.slane %v4075_v14, 5  ;;  %3424 = vmatprep.subr.bf16.mxu1 %v5980_v9  ;;  %5728 = vmatprep.subr.bf16.mxu0 %v8416_v20  ;;  %v4426_v36 = vmul.f32 %v4395_v1, %v7280_v30  ;;  %v7494_v22 = vpop.permute.xlu0 %3811 }
 0x26f   : > { %v4105_v41 = vsel %vm2972_vm5, %v4104_v11, %v4103_v0  ;;  %v4401_v26 = vrot.slane %v7457_v45, 1  ;;  %v4456_v18 = vrot.slane %v4425_v21, 7  ;;  %v4427_v31 = vmul.f32 %v4396_v56, %v7326_v2  ;;  %v5986_v56 = vld [vmem:[%s8339_s8 + $0x48] ss:$12 sps:$4 sm:$0xff]  }
 0x270   : > { %v4107_v25 = vsel %vm2974_vm6, %v4106_v3, %v4105_v41  ;;  %v4111_v55 = vsel %vm2964_vm1, %v4110_v61, %v4072_v43  ;;  %v4428_v63 = vmul.f32 %v4397_v4, %v7341_v52  ;;  %v4402_v42 = vrot.slane %v7457_v45, 2  ;;  %v5989_v61 = vld [vmem:[%s8339_s8 + $0x50] ss:$12 sps:$4 sm:$0xff]   ;;  %v7501_v4 = vld [vmem:[%s7487_s23] sm:$0xff] }
 0x271   : > { %v7467_v16 = vsel %vm2976_vm7, %v4108_v6, %v4107_v25  ;;  %3425 = vmatpush1.bf16.msra.mxu1 %v5978_v28  ;;  %5729 = vmatpush3.bf16.msra.mxu0 %v5981_v62  ;;  %v4113_v54 = vsel %vm2966_vm2, %v4112_v40, %v4111_v55  ;;  %v4424_v19 = vmul.f32 %v7410_v33, %v7298_v47  ;;  %v4403_v59 = vrot.slane %v7457_v45, 3  ;;  %v5992_v28 = vld [vmem:[%s8339_s8 + $0x34] ss:$12 sps:$4 sm:$0xff]   ;;  %v7513_v55 = vld [vmem:[%s7487_s23 + $0x8] sm:$0xff] }
 0x272   : > { %8427 = vst [vmem:[#allocation36_spill] sm:$0xff] %v7467_v16  ;;  %3426 = vmatprep.subr.bf16.mxu1 %v5984_v8  ;;  %5730 = vmatprep.subr.bf16.mxu0 %v8416_v20  ;;  %v7482_v35 = vsel %vm2968_vm3, %v4114_v58, %v4113_v54  ;;  %v4398_v11 = vrot.slane %v7410_v33, 5  ;;  %v4458_v60 = vrot.slane %v4426_v36, 6  ;;  %v4433_v14 = vmul.f32 %v4401_v26, %v7402_v48 }
 0x273   : > { %8429 = vst [vmem:[#allocation46_spill] sm:$0xff] %v7482_v35  ;;  %v4399_v9 = vrot.slane %v7410_v33, 6  ;;  %v4400_v23 = vrot.slane %v7410_v33, 7  ;;  %v4460_v38 = vrot.slane %v4427_v31, 5  ;;  %v4457_v1 = vsel %vm2964_vm1, %v4456_v18, %v4424_v19  ;;  %8430 = vst [vmem:[#allocation45_spill] sm:$0xff] %v7513_v55 }
 0x274   : > { %v4429_v3 = vmul.f32 %v4398_v11, %v7395_v39  ;;  %v4462_v6 = vrot.slane %v4428_v63, 4  ;;  %v4434_v21 = vmul.f32 %v4402_v42, %v7404_v5  ;;  %v4435_v40 = vmul.f32 %v4403_v59, %v7412_v12  ;;  %v5996_v11 = vld [vmem:[%s8339_s8 + $0x1c] ss:$12 sps:$4 sm:$0xff]  }
 0x275   : > { %3427 = vmatpush1.bf16.msra.mxu1 %v5982_v37  ;;  %5731 = vmatpush3.bf16.msra.mxu0 %v5985_v17  ;;  %v4430_v0 = vmul.f32 %v4399_v9, %v7397_v46  ;;  %v4431_v62 = vmul.f32 %v4400_v23, %v7400_v51  ;;  %v4754_v43 = vrot.slane %v7501_v4, 1  ;;  %v4470_v58 = vrot.slane %v4433_v14, 7  ;;  %v5990_v37 = vld [vmem:[%s8339_s8 + $0x30] ss:$12 sps:$4 sm:$0xff]   ;;  %v5993_v17 = vld [vmem:[%s8339_s8 + $0x38] ss:$12 sps:$4 sm:$0xff]   ;;  %v7525_v14 = vpop.permute.xlu0 %3825 }
 0x276   : > { %3428 = vmatprep.subr.bf16.mxu1 %v5988_v53  ;;  %5732 = vmatprep.subr.bf16.mxu0 %v8416_v20  ;;  %v4464_v41 = vrot.slane %v4429_v3, 3  ;;  %v4459_v8 = vsel %vm2966_vm2, %v4458_v60, %v4457_v1  ;;  %v4755_v36 = vrot.slane %v7501_v4, 2  ;;  %v4756_v26 = vrot.slane %v7501_v4, 3 }
 0x277   : > { %v4466_v25 = vrot.slane %v4430_v0, 2  ;;  %v4461_v18 = vsel %vm2968_vm3, %v4460_v38, %v4459_v8  ;;  %v4468_v31 = vrot.slane %v4431_v62, 1  ;;  %v4432_v63 = vmul.f32 %v7457_v45, %v7434_v10 }
 0x278   : > { %v4472_v42 = vrot.slane %v4434_v21, 6  ;;  %v4463_v54 = vsel %vm2970_vm4, %v4462_v6, %v4461_v18  ;;  %v4757_v19 = vrot.slane %v7501_v4, 4  ;;  %v4761_v59 = vrot.slane %v7513_v55, 1  ;;  %v7534_v6 = vpop.permute.xlu1 %3818  ;;  %v6001_v18 = vld [vmem:[%s8339_s8 + $0x8] ss:$12 sps:$4 sm:$0xff]  }
 0x279   : > { %3429 = vmatpush1.bf16.msra.mxu1 %v5986_v56  ;;  %5733 = vmatpush3.bf16.msra.mxu0 %v5989_v61  ;;  %v4474_v53 = vrot.slane %v4435_v40, 5  ;;  %v4465_v60 = vsel %vm2972_vm5, %v4464_v41, %v4463_v54  ;;  %v4785_v9 = vmul.f32 %v4754_v43, %v7277_v49  ;;  %v4471_v38 = vsel %vm2964_vm1, %v4470_v58, %v4432_v63  ;;  %v5994_v56 = vld [vmem:[%s8339_s8 + $0x18] ss:$12 sps:$4 sm:$0xff]   ;;  %v5997_v61 = vld [vmem:[%s8339_s8 + $0x20] ss:$12 sps:$4 sm:$0xff]   ;;  %v7552_v8 = vpop.permute.xlu0 %3839 }
 0x27a   : > { %3430 = vmatprep.subr.bf16.mxu1 %v5992_v28  ;;  %5734 = vmatprep.subr.bf16.mxu0 %v8416_v20  ;;  %v4467_v23 = vsel %vm2974_vm6, %v4466_v25, %v4465_v60  ;;  %v4786_v3 = vmul.f32 %v4755_v36, %v7280_v30  ;;  %v4787_v21 = vmul.f32 %v4756_v26, %v7326_v2  ;;  %v4762_v28 = vrot.slane %v7513_v55, 2  ;;  %v6000_v30 = vld [vmem:[%s8339_s8 + $0x4] ss:$12 sps:$4 sm:$0xff]   ;;  %v5998_v26 = vld [vmem:[%s8339_s8] ss:$12 sps:$4 sm:$0xff]  }
 0x27b   : > { %v7532_v1 = vsel %vm2976_vm7, %v4468_v31, %v4467_v23  ;;  %v4473_v49 = vsel %vm2966_vm2, %v4472_v42, %v4471_v38  ;;  %v4788_v0 = vmul.f32 %v4757_v19, %v7341_v52  ;;  %v4793_v40 = vmul.f32 %v4761_v59, %v7402_v48 }
 0x27c   : > { %8431 = vst [vmem:[#allocation44_spill] sm:$0xff] %v7532_v1  ;;  %v7546_v2 = vsel %vm2968_vm3, %v4474_v53, %v4473_v49  ;;  %v4816_v62 = vrot.slane %v4785_v9, 7  ;;  %v4763_v41 = vrot.slane %v7513_v55, 3  ;;  %v4758_v43 = vrot.slane %v7501_v4, 5  ;;  %v7562_v54 = vpop.permute.xlu1 %3832 }
 0x27d   : > { %3431 = vmatpush1.bf16.msra.mxu1 %v5990_v37  ;;  %5735 = vmatpush3.bf16.msra.mxu0 %v5993_v17  ;;  %8432 = vst [vmem:[#allocation49_spill] sm:$0xff] %v7546_v2  ;;  %v4818_v58 = vrot.slane %v4786_v3, 6  ;;  %v4759_v52 = vrot.slane %v7501_v4, 6  ;;  %v4760_v48 = vrot.slane %v7501_v4, 7  ;;  %v4784_v25 = vmul.f32 %v7501_v4, %v7298_v47  ;;  %v7576_v23 = vpop.permute.xlu0 %3853 }
 0x27e   : > { %3432 = vmatprep.subr.bf16.mxu1 %v5996_v11  ;;  %5736 = vmatprep.subr.bf16.mxu0 %v8416_v20  ;;  %v4820_v36 = vrot.slane %v4787_v21, 5  ;;  %v4789_v31 = vmul.f32 %v4758_v43, %v7395_v39  ;;  %v4822_v63 = vrot.slane %v4788_v0, 4  ;;  %v4830_v42 = vrot.slane %v4793_v40, 7 }
 0x27f   : > { %v4794_v37 = vmul.f32 %v4762_v28, %v7404_v5  ;;  %v4790_v17 = vmul.f32 %v4759_v52, %v7397_v46  ;;  %v4795_v47 = vmul.f32 %v4763_v41, %v7412_v12  ;;  %v4791_v19 = vmul.f32 %v4760_v48, %v7400_v51  ;;  %v5582_v41 = vpop.f32.mrf.mxu1 }
 0x280   : > { %v4817_v59 = vsel %vm2964_vm1, %v4816_v62, %v4784_v25  ;;  %v4824_v53 = vrot.slane %v4789_v31, 3  ;;  %v3257_v39 = vpack.c.bf16 %v7294_v15, %v7270_v32  ;;  %v4792_v60 = vmul.f32 %v7513_v55, %v7434_v10  ;;  %v7581_v3 = vpop.permute.xlu1 %3846 }
 0x281   : > { %3433 = vmatpush1.bf16.msra.mxu1 %v5994_v56  ;;  %5737 = vmatpush3.bf16.msra.mxu0 %v5997_v61  ;;  %v4819_v11 = vsel %vm2966_vm2, %v4818_v58, %v4817_v59  ;;  %v4826_v5 = vrot.slane %v4790_v17, 2  ;;  %v4828_v9 = vrot.slane %v4791_v19, 1  ;;  %v4832_v12 = vrot.slane %v4794_v37, 6  ;;  %v7595_v0 = vpop.permute.xlu0 %3867  ;;  %v5583_v58 = vpop.f32.mrf.mxu1 }
 0x282   : > { %3434 = vmatprep.subr.bf16.mxu1 %v6000_v30  ;;  %5738 = vmatprep.subr.bf16.mxu0 %v8416_v20  ;;  %v4821_v46 = vsel %vm2968_vm3, %v4820_v36, %v4819_v11  ;;  %v4834_v32 = vrot.slane %v4795_v47, 5  ;;  %v4831_v38 = vsel %vm2964_vm1, %v4830_v42, %v4792_v60  ;;  %v3258_v49 = vpack.c.bf16 %v7457_v45, %v7410_v33  ;;  %v6154_v11 = vld [vmem:[%s8407_s11] sm:$0x7]  ;;  %s6284_s11 = smov [#allocation2]  }
 0x283   : > { %v4823_v51 = vsel %vm2970_vm4, %v4822_v63, %v4821_v46  ;;  %v4833_v56 = vsel %vm2966_vm2, %v4832_v12, %v4831_v38  ;;  %v3259_v30 = vpack.c.bf16 %v7513_v55, %v7501_v4  ;;  %v5585_v48 = vpop.f32.mrf.mxu1  ;;  %s6162_s12 = sshll.u32 %s6284_s11, 4  ;;  %s6163_s12 = int_to_ptr.vmem [resolvable:$false] %s6162_s12 }
 0x284   : > { %v4825_v15 = vsel %vm2972_vm5, %v4824_v53, %v4823_v51  ;;  %v7591_v61 = vsel %vm2968_vm3, %v4834_v32, %v4833_v56  ;;  %v7597_v40 = vpop.permute.xlu1 %3860  ;;  %s6164_s13 = scalar_lea.vmem %s6163_s12, 512 }
 0x285   : > { %3435 = vmatpush1.bf16.msra.mxu1 %v5998_v26  ;;  %5739 = vmatpush3.bf16.msra.mxu0 %v6001_v18  ;;  %v4827_v10 = vsel %vm2974_vm6, %v4826_v5, %v4825_v15  ;;  %8434 = vst [vmem:[#allocation51_spill] sm:$0xff] %v7591_v61  ;;  %v4172_v28 = vpop.permute.xlu0 %4171  ;;  %v5586_v36 = vpop.f32.mrf.mxu1  ;;  %v8437_v5 = vld [vmem:[#allocation31_spill] sm:$0xff] }
 0x286   : > { %5752 = vmatprep.subr.bf16.mxu1 %v8416_v20  ;;  %5772 = vmatprep.subr.bf16.mxu0 %v8416_v20  ;;  %v7587_v21 = vsel %vm2976_vm7, %v4828_v9, %v4827_v10  ;;  %v7638_v60 = vrot.slane %v6154_v11, %v8437_v5  ;;  %v5584_v9 = vadd.f32 %v5583_v58, %v5582_v41 }
 0x287   : > { %8433 = vst [vmem:[#allocation50_spill] sm:$0xff] %v7587_v21  ;;  %v5588_v18 = vpop.f32.mrf.mxu1 }
 0x288   : > { %3453 = vmatmul.mubr.bf16.vlgmr.msra.gmra.mxu1 %v3257_v39  ;;  %5741 = vmatmul.mubr.bf16.vlgmr.msra.gmra.mxu0 %v3257_v39  ;;  %v7604_v62 = vpop.permute.xlu1 %3874  ;;  %v2640_v32 = vadd.f32 %v5584_v9, %v7638_v60  ;;  %v6002_v9 = vld [vmem:[%s8438_s5 + $0x38] sm:$0xff]  }
 0x289   : > { %3462 = vmatprep.mubr.bf16.mxu1 %v8426_v13  ;;  %5744 = vmatprep.mubr.msk.bf16.mxu0 %vm6283_vm8, %v8416_v20  ;;  %v7606_v33 = vpop.permute.xlu0 %4227  ;;  %v5589_v42 = vpop.f32.mrf.mxu1 }
 0x28a   : > { %v2704_v10 = vmul.f32 %v2640_v32, %v6957_v24  ;;  %v5590_v61 = vadd.f32 %v5589_v42, %v5588_v18  ;;  %5753 = vmatpush3.bf16.msra.mxu1 %v6002_v9  ;;  %v6003_v32 = vld [vmem:[%s8438_s5 + $0x30] sm:$0xff]  }
 0x28b   : > { %v5591_v17 = vpop.f32.mrf.mxu1  ;;  %5754 = vmatprep.subr.bf16.mxu1 %v8416_v20 }
 0x28c   : > { %v3918_v11 = vmul.f32 %v7494_v22, %v2704_v10  ;;  %v4278_v1 = vmul.f32 %v4172_v28, %v2704_v10 }
 0x28d   : > { %v4532_v45 = vpop.permute.xlu0 %4531  ;;  %v5592_v19 = vpop.f32.mrf.mxu1 }
 0x28e   : > { %v3934_v24 = vrot.slane %v3918_v11, 4  ;;  %v4294_v16 = vrot.slane %v4278_v1, 4  ;;  %5755 = vmatpush3.bf16.msra.mxu1 %v6003_v32 }
 0x28f   : > { %v5594_v39 = vpop.f32.mrf.mxu1  ;;  %5756 = vmatprep.subr.bf16.mxu1 %v8416_v20 }
 0x290   : > { %3463 = vmatmul.mubr.bf16.gmra.mxu1 %v3258_v49  ;;  %5745 = vmatmul.mubr.bf16.gmra.mxu0 %v3258_v49  ;;  %v5587_v49 = vadd.f32 %v5586_v36, %v5585_v48  ;;  %v4638_v48 = vmul.f32 %v4532_v45, %v2704_v10  ;;  %v3935_v28 = vadd.f32 %v3934_v24, %v3918_v11 }
 0x291   : > { %3472 = vmatprep.mubr.bf16.mxu1 %v8426_v13  ;;  %5748 = vmatprep.mubr.msk.bf16.mxu0 %vm6283_vm8, %v8416_v20  ;;  %v7612_v13 = vpop.permute.xlu1 %4178  ;;  %v7616_v4 = vpop.permute.xlu0 %4587 }
 0x292   : > { %v5595_v12 = vpop.f32.mrf.mxu1  ;;  %v2643_v58 = vadd.f32 %v5587_v49, %v7638_v60  ;;  %v2648_v49 = vadd.f32 %v5590_v61, %v7638_v60  ;;  %v4654_v18 = vrot.slane %v4638_v48, 4  ;;  %v4295_v61 = vadd.f32 %v4294_v16, %v4278_v1 }
 0x293   : > { %v3936_v32 = vrot.slane %v3935_v28, 2  ;;  %v5596_v16 = vadd.f32 %v5595_v12, %v5594_v39  ;;  %v8445_v39 = vld [vmem:[#allocation47_spill] sm:$0xff] }
 0x294   : > { %v7645_v15 = vpop.f32.mrf.mxu1  ;;  %v2707_v36 = vmul.f32 %v2643_v58, %v7009_v27  ;;  %v6004_v27 = vld [vmem:[%s8438_s5 + $0x28] sm:$0xff]   ;;  %v2710_v10 = vmul.f32 %v2648_v49, %v6952_v29  ;;  %v5593_v58 = vadd.f32 %v5592_v19, %v5591_v17  ;;  %v4655_v11 = vadd.f32 %v4654_v18, %v4638_v48 }
 0x295   : > { %v7614_v43 = vpop.permute.xlu1 %4234  ;;  %v7620_v25 = vpop.permute.xlu0 %3881  ;;  %5757 = vmatpush3.bf16.msra.mxu1 %v6004_v27  ;;  %v4296_v1 = vrot.slane %v4295_v61, 2  ;;  %v3937_v48 = vadd.f32 %v3936_v32, %v3935_v28 }
 0x296   : > { %v3919_v42 = vmul.f32 %v7534_v6, %v2707_v36  ;;  %v4279_v5 = vmul.f32 %v7612_v13, %v2707_v36  ;;  %5758 = vmatprep.subr.bf16.mxu1 %v8416_v20  ;;  %v2651_v29 = vadd.f32 %v5593_v58, %v7638_v60 }
 0x297   : > { %v4297_v58 = vadd.f32 %v4296_v1, %v4295_v61 }
 0x298   : > { %3473 = vmatmul.mubr.bf16.gmra.mxu1 %v3259_v30  ;;  %5749 = vmatmul.mubr.bf16.gmra.mxu0 %v3259_v30  ;;  %v7652_v30 = vpop.f32.mrf.mxu1  ;;  %v3940_v24 = vrot.slane %v3919_v42, 4  ;;  %v4300_v19 = vrot.slane %v4279_v5, 4  ;;  %v2713_v12 = vmul.f32 %v2651_v29, %v8445_v39 }
 0x299   : > { %5768 = vmatprep.mubr.msk.bf16.mxu1 %vm6283_vm8, %v8416_v20  ;;  %5788 = vmatprep.mubr.msk.bf16.mxu0 %vm6283_vm8, %v8416_v20  ;;  %v7618_v52 = vpop.permute.xlu1 %4538  ;;  %v7624_v31 = vpop.permute.xlu0 %4241  ;;  %v5599_v28 = vadd.f32 %v7652_v30, %v7645_v15 }
 0x29a   : > { %v7658_v21 = vpop.f32.mrf.mxu1  ;;  %v4639_v6 = vmul.f32 %v7618_v52, %v2707_v36  ;;  %v4656_v36 = vrot.slane %v4655_v11, 2  ;;  %v3941_v49 = vadd.f32 %v3940_v24, %v3919_v42  ;;  %v3921_v61 = vmul.f32 %v7562_v54, %v2713_v12 }
 0x29c   : > { %v7665_v22 = vpop.f32.mrf.mxu1  ;;  %v4660_v18 = vrot.slane %v4639_v6, 4  ;;  %v4657_v42 = vadd.f32 %v4656_v36, %v4655_v11  ;;  %v3942_v32 = vrot.slane %v3941_v49, 2 }
 0x29d   : > { %v7622_v26 = vpop.permute.xlu1 %4594  ;;  %v7628_v37 = vpop.permute.xlu0 %4601 }
 0x29e   : > { %8435 = vst [vmem:[#allocation52_spill] sm:$0xff] %v7628_v37  ;;  %v7675_v45 = vpop.f32.mrf.mxu1  ;;  %v4661_v24 = vadd.f32 %v4660_v18, %v4639_v6  ;;  %v2659_v6 = vadd.f32 %v5599_v28, %v7638_v60  ;;  %v4658_v18 = vrot.slane %v4657_v42, 1  ;;  %v6008_v28 = vld [vmem:[%s8438_s5 + $0x8] sm:$0xff]  }
 0x2a1   : > { %v7626_v63 = vpop.permute.xlu1 %4185  ;;  %v7632_v59 = vpop.permute.xlu0 %4192 }
 0x2a2   : > { %v4280_v13 = vmul.f32 %v7626_v63, %v2710_v10  ;;  %v2656_v63 = vadd.f32 %v5596_v16, %v7638_v60  ;;  %v8447_v16 = vld [vmem:[#allocation48_spill] sm:$0xff]  ;;  %v4281_v11 = vmul.f32 %v7632_v59, %v2713_v12 }
 0x2a4   : > { %v2716_v1 = vmul.f32 %v2656_v63, %v8447_v16  ;;  %v6007_v63 = vld [vmem:[%s8438_s5 + $0x10] sm:$0xff]   ;;  %v3952_v16 = vrot.slane %v3921_v61, 4 }
 0x2a5   : > { %v7630_v47 = vpop.permute.xlu1 %4545  ;;  %v7640_v46 = vpop.permute.xlu0 %4552 }
 0x2a6   : > { %v4640_v52 = vmul.f32 %v7630_v47, %v2710_v10 }
 0x2a8   : > { %v4666_v47 = vrot.slane %v4640_v52, 4 }
 0x2a9   : > { %v7634_v53 = vpop.permute.xlu1 %3888  ;;  %v7647_v38 = vpop.permute.xlu0 %3895 }
 0x2aa   : > { %8436 = vst [vmem:[#allocation53_spill] sm:$0xff] %v7634_v53  ;;  %8440 = vst [vmem:[#allocation55_spill] sm:$0xff] %v7647_v38  ;;  %v3920_v38 = vmul.f32 %v7525_v14, %v2710_v10  ;;  %v3938_v10 = vrot.slane %v3937_v48, 1  ;;  %v4667_v30 = vadd.f32 %v4666_v47, %v4640_v52 }
 0x2ac   : > { %v3946_v27 = vrot.slane %v3920_v38, 4  ;;  %v7712_v36 = vadd.f32 %v3938_v10, %v3937_v48 }
 0x2ad   : > { %v7642_v51 = vpop.permute.xlu1 %4248  ;;  %v7655_v41 = vpop.permute.xlu0 %4255 }
 0x2ae   : > { %8439 = vst [vmem:[#allocation54_spill] sm:$0xff] %v7642_v51  ;;  %8442 = vst [vmem:[#allocation57_spill] sm:$0xff] %v7655_v41  ;;  %v6005_v41 = vld [vmem:[%s8438_s5 + $0x20] sm:$0xff]   ;;  %v4301_v51 = vadd.f32 %v4300_v19, %v4279_v5  ;;  %v3947_v29 = vadd.f32 %v3946_v27, %v3920_v38  ;;  %v4298_v5 = vrot.slane %v4297_v58, 1  ;;  %v3943_v38 = vadd.f32 %v3942_v32, %v3941_v49 }
 0x2af   : > { %5759 = vmatpush3.bf16.msra.mxu1 %v6005_v41  ;;  %v6006_v41 = vld [vmem:[%s8438_s5 + $0x18] sm:$0xff]   ;;  %8448 = vst [vmem:[#allocation48_spill] sm:$0xff] %v7712_v36  ;;  %v4662_v27 = vrot.slane %v4661_v24, 2  ;;  %v5602_v49 = vadd.f32 %v7665_v22, %v7658_v21  ;;  %v4668_v32 = vrot.slane %v4667_v30, 2  ;;  %v4312_v36 = vrot.slane %v4281_v11, 4 }
 0x2b0   : > { %5760 = vmatprep.subr.bf16.mxu1 %v8416_v20  ;;  %v4302_v15 = vrot.slane %v4301_v51, 2  ;;  %v3953_v21 = vadd.f32 %v3952_v16, %v3921_v61 }
 0x2b1   : > { %v7650_v56 = vpop.permute.xlu1 %4608  ;;  %v7669_v35 = vpop.permute.xlu0 %4615 }
 0x2b2   : > { %8441 = vst [vmem:[#allocation56_spill] sm:$0xff] %v7650_v56  ;;  %8443 = vst [vmem:[#allocation58_spill] sm:$0xff] %v7669_v35  ;;  %v7684_v35 = vpop.f32.mrf.mxu1  ;;  %v4303_v10 = vadd.f32 %v4302_v15, %v4301_v51 }
 0x2b3   : > { %5761 = vmatpush3.bf16.msra.mxu1 %v6006_v41  ;;  %v3948_v41 = vrot.slane %v3947_v29, 2 }
 0x2b4   : > { %v7694_v14 = vpop.f32.mrf.mxu1  ;;  %5762 = vmatprep.subr.bf16.mxu1 %v8416_v20 }
 0x2b5   : > { %v7661_v2 = vpop.permute.xlu1 %4199  ;;  %v7682_v55 = vpop.permute.xlu0 %4206 }
 0x2b6   : > { %v7705_v37 = vpop.f32.mrf.mxu1  ;;  %v4282_v52 = vmul.f32 %v7661_v2, %v2716_v1  ;;  %v7732_v2 = vadd.f32 %v4658_v18, %v4657_v42  ;;  %v4669_v42 = vadd.f32 %v4668_v32, %v4667_v30 }
 0x2b7   : > { %5763 = vmatpush3.bf16.msra.mxu1 %v6007_v63 }
 0x2b8   : > { %v7716_v54 = vpop.f32.mrf.mxu1  ;;  %5764 = vmatprep.subr.bf16.mxu1 %v8416_v20  ;;  %8451 = vst [vmem:[#allocation62_spill] sm:$0xff] %v7732_v2  ;;  %v4318_v15 = vrot.slane %v4282_v52, 4 }
 0x2b9   : > { %v7673_v9 = vpop.permute.xlu1 %4559  ;;  %v7698_v56 = vpop.permute.xlu0 %4566 }
 0x2ba   : > { %v4642_v48 = vmul.f32 %v7673_v9, %v2716_v1  ;;  %v4663_v9 = vadd.f32 %v4662_v27, %v4661_v24  ;;  %v4319_v30 = vadd.f32 %v4318_v15, %v4282_v52 }
 0x2bb   : > { %5765 = vmatpush3.bf16.msra.mxu1 %v6008_v28 }
 0x2bc   : > { %5766 = vmatprep.subr.bf16.mxu1 %v8416_v20  ;;  %v4664_v61 = vrot.slane %v4663_v9, 1 }
 0x2bd   : > { %v7690_v17 = vpop.permute.xlu1 %3902  ;;  %v7714_v39 = vpop.permute.xlu0 %3909 }
 0x2be   : > { %8444 = vst [vmem:[#allocation59_spill] sm:$0xff] %v7690_v17  ;;  %v4306_v17 = vrot.slane %v4280_v13, 4  ;;  %8449 = vst [vmem:[#allocation60_spill] sm:$0xff] %v7714_v39  ;;  %v2719_v39 = vmul.f32 %v2659_v6, %v7053_v7  ;;  %v2664_v7 = vadd.f32 %v5602_v49, %v7638_v60  ;;  %v4313_v6 = vadd.f32 %v4312_v36, %v4281_v11 }
 0x2c0   : > { %v4307_v19 = vadd.f32 %v4306_v17, %v4280_v13  ;;  %v4641_v13 = vmul.f32 %v7640_v46, %v2713_v12  ;;  %v3922_v17 = vmul.f32 %v7552_v8, %v2716_v1  ;;  %v7730_v8 = vadd.f32 %v4298_v5, %v4297_v58  ;;  %v7734_v12 = vpop.f32.mrf.mxu1  ;;  %v6009_v58 = vld [vmem:[%s8438_s5] sm:$0xff]  }
 0x2c1   : > { %v7703_v53 = vpop.permute.xlu1 %4262  ;;  %v3944_v46 = vrot.slane %v3943_v38, 1  ;;  %v3949_v1 = vadd.f32 %v3948_v41, %v3947_v29  ;;  %v4304_v5 = vrot.slane %v4303_v10, 1  ;;  %v3923_v24 = vmul.f32 %v7581_v3, %v2719_v39  ;;  %5767 = vmatpush3.bf16.msra.mxu1 %v6009_v58 }
 0x2c2   : > { %8446 = vst [vmem:[#allocation47_spill] sm:$0xff] %v7703_v53  ;;  %v4308_v59 = vrot.slane %v4307_v19, 2  ;;  %v4672_v22 = vrot.slane %v4641_v13, 4  ;;  %v3958_v63 = vrot.slane %v3922_v17, 4  ;;  %v7736_v53 = vpop.permute.xlu0 %4269  ;;  %v4643_v18 = vmul.f32 %v7698_v56, %v2719_v39  ;;  %v5612_v41 = vpop.f32.mrf.mxu1 }
 0x2c3   : > { %v7742_v29 = vadd.f32 %v3944_v46, %v3943_v38  ;;  %v3950_v16 = vrot.slane %v3949_v1, 1  ;;  %v2722_v3 = vmul.f32 %v2664_v7, %v7089_v44  ;;  %v7747_v36 = vadd.f32 %v4304_v5, %v4303_v10 }
 0x2c4   : > { %v4309_v51 = vadd.f32 %v4308_v59, %v4307_v19  ;;  %v4283_v19 = vmul.f32 %v7682_v55, %v2719_v39  ;;  %v3954_v59 = vrot.slane %v3953_v21, 2  ;;  %v4673_v49 = vadd.f32 %v4672_v22, %v4641_v13 }
 0x2c5   : > { %v7723_v47 = vpop.permute.xlu1 %4622  ;;  %v3959_v28 = vadd.f32 %v3958_v63, %v3922_v17  ;;  %v4670_v38 = vrot.slane %v4669_v42, 1  ;;  %v4314_v32 = vrot.slane %v4313_v6, 2  ;;  %v3964_v46 = vrot.slane %v3923_v24, 4  ;;  %v5613_v17 = vpop.f32.mrf.mxu1 }
 0x2c6   : > { %8450 = vst [vmem:[#allocation61_spill] sm:$0xff] %v7723_v47  ;;  %v4678_v47 = vrot.slane %v4642_v48, 4  ;;  %v4310_v2 = vrot.slane %v4309_v51, 1  ;;  %v7749_v55 = vadd.f32 %v4664_v61, %v4663_v9  ;;  %v4324_v56 = vrot.slane %v4283_v19, 4  ;;  %v7751_v20 = vpop.permute.xlu0 %4629 }
 0x2c7   : > { %v4684_v39 = vrot.slane %v4643_v18, 4  ;;  %v5605_v13 = vadd.f32 %v7684_v35, %v7675_v45  ;;  %v7755_v52 = vadd.f32 %v3950_v16, %v3949_v1  ;;  %v4674_v44 = vrot.slane %v4673_v49, 2  ;;  %v5615_v16 = vpop.f32.mrf.mxu1 }
 0x2c8   : > { %v4679_v11 = vadd.f32 %v4678_v47, %v4642_v48  ;;  %8452 = vst [vmem:[#allocation63_spill] sm:$0xff] %v7749_v55  ;;  %v3955_v48 = vadd.f32 %v3954_v59, %v3953_v21  ;;  %v3960_v47 = vrot.slane %v3959_v28, 2  ;;  %v7757_v10 = vadd.f32 %v4310_v2, %v4309_v51 }
 0x2c9   : > { %v4214_v27 = vpop.permute.xlu1 %4213  ;;  %v4320_v22 = vrot.slane %v4319_v30, 2  ;;  %v7759_v7 = vadd.f32 %v4670_v38, %v4669_v42  ;;  %v4315_v58 = vadd.f32 %v4314_v32, %v4313_v6  ;;  %v3965_v5 = vadd.f32 %v3964_v46, %v3923_v24 }
 0x2ca   : > { %v4680_v63 = vrot.slane %v4679_v11, 2  ;;  %v4284_v15 = vmul.f32 %v4214_v27, %v2722_v3  ;;  %v5608_v61 = vadd.f32 %v7705_v37, %v7694_v14  ;;  %v4325_v35 = vadd.f32 %v4324_v56, %v4283_v19  ;;  %v4221_v32 = vpop.permute.xlu0 %4220 }
 0x2cb   : > { %8453 = vst [vmem:[#allocation64_spill] sm:$0xff] %v7759_v7  ;;  %v4685_v45 = vadd.f32 %v4684_v39, %v4643_v18  ;;  %v3924_v1 = vmul.f32 %v7576_v23, %v2722_v3  ;;  %v2667_v21 = vadd.f32 %v5605_v13, %v7638_v60  ;;  %v4675_v2 = vadd.f32 %v4674_v44, %v4673_v49 }
 0x2cc   : > { %v3961_v51 = vadd.f32 %v3960_v47, %v3959_v28  ;;  %v5611_v27 = vadd.f32 %v7734_v12, %v7716_v54  ;;  %v3956_v42 = vrot.slane %v3955_v48, 1  ;;  %v4321_v38 = vadd.f32 %v4320_v22, %v4319_v30  ;;  %v5616_v28 = vpop.f32.mrf.mxu1 }
 0x2cd   : > { %v4574_v9 = vpop.permute.xlu1 %4573  ;;  %v4681_v6 = vadd.f32 %v4680_v63, %v4679_v11  ;;  %v4330_v24 = vrot.slane %v4284_v15, 4  ;;  %v4316_v46 = vrot.slane %v4315_v58, 1  ;;  %v3966_v37 = vrot.slane %v3965_v5, 2 }
 0x2ce   : > { %v4644_v59 = vmul.f32 %v4574_v9, %v2722_v3  ;;  %v2672_v14 = vadd.f32 %v5608_v61, %v7638_v60  ;;  %v5614_v19 = vadd.f32 %v5613_v17, %v5612_v41  ;;  %v4326_v23 = vrot.slane %v4325_v35, 2 }
 0x2cf   : > { %v4686_v18 = vrot.slane %v4685_v45, 2  ;;  %v3970_v56 = vrot.slane %v3924_v1, 4  ;;  %v2725_v49 = vmul.f32 %v2667_v21, %v7079_v34  ;;  %v4676_v3 = vrot.slane %v4675_v2, 1  ;;  %v4581_v21 = vpop.permute.xlu0 %4580 }
 0x2d0   : > { %v3962_v39 = vrot.slane %v3961_v51, 1  ;;  %v4690_v13 = vrot.slane %v4644_v59, 4  ;;  %v2675_v54 = vadd.f32 %v5611_v27, %v7638_v60  ;;  %v7770_v12 = vadd.f32 %v3956_v42, %v3955_v48  ;;  %v7782_v48 = vpop.f32.mrf.mxu1 }
 0x2d1   : > { %v4322_v30 = vrot.slane %v4321_v38, 1  ;;  %v4682_v11 = vrot.slane %v4681_v6, 1  ;;  %v4331_v44 = vadd.f32 %v4330_v24, %v4284_v15  ;;  %v7772_v47 = vadd.f32 %v4316_v46, %v4315_v58  ;;  %v8458_v46 = vld [vmem:[#allocation35_spill] sm:$0xff] }
 0x2d2   : > { %v7774_v22 = vadd.f32 %v3966_v37, %v3965_v5  ;;  %v2728_v41 = vmul.f32 %v2672_v14, %v7119_v50  ;;  %v2680_v17 = vadd.f32 %v5614_v19, %v7638_v60  ;;  %v7778_v34 = vadd.f32 %v4326_v23, %v4325_v35 }
 0x2d3   : > { %v7780_v63 = vadd.f32 %v4686_v18, %v4685_v45  ;;  %v3971_v9 = vadd.f32 %v3970_v56, %v3924_v1  ;;  %v4285_v61 = vmul.f32 %v4221_v32, %v2725_v49  ;;  %v7784_v27 = vadd.f32 %v4676_v3, %v4675_v2 }
 0x2d4   : > { %v7786_v15 = vadd.f32 %v3962_v39, %v3961_v51  ;;  %v4691_v58 = vadd.f32 %v4690_v13, %v4644_v59  ;;  %v2731_v5 = vmul.f32 %v2675_v54, %v7113_v57  ;;  %v7789_v42 = vadd.f32 %v4322_v30, %v4321_v38  ;;  %v7799_v38 = vpop.f32.mrf.mxu1 }
 0x2d5   : > { %8454 = vst [vmem:[#allocation65_spill] sm:$0xff] %v7780_v63  ;;  %8455 = vst [vmem:[#allocation66_spill] sm:$0xff] %v7784_v27  ;;  %v7791_v50 = vadd.f32 %v4682_v11, %v4681_v6  ;;  %v4332_v35 = vrot.slane %v4331_v44, 2  ;;  %v3925_v45 = vmul.f32 %v7597_v40, %v2725_v49  ;;  %v3926_v24 = vmul.f32 %v7595_v0, %v2728_v41  ;;  %v8459_v11 = vld [vmem:[#allocation41_spill] sm:$0xff] }
 0x2d6   : > { %8456 = vst [vmem:[#allocation67_spill] sm:$0xff] %v7789_v42  ;;  %v4645_v32 = vmul.f32 %v4581_v21, %v2725_v49  ;;  %v2734_v2 = vmul.f32 %v2680_v17, %v8458_v46  ;;  %v3972_v37 = vrot.slane %v3971_v9, 2  ;;  %v4336_v57 = vrot.slane %v4285_v61, 4 }
 0x2d7   : > { %8457 = vst [vmem:[#allocation68_spill] sm:$0xff] %v7791_v50  ;;  %v4692_v6 = vrot.slane %v4691_v58, 2  ;;  %v4286_v14 = vmul.f32 %v7606_v33, %v2728_v41  ;;  %v4646_v40 = vmul.f32 %v7616_v4, %v2728_v41  ;;  %v3927_v19 = vmul.f32 %v7604_v62, %v2731_v5  ;;  %v8460_v4 = vld [vmem:[#allocation42_spill] sm:$0xff]  ;;  %v7812_v62 = vpop.f32.mrf.mxu1 }
 0x2d8   : > { %v4333_v23 = vadd.f32 %v4332_v35, %v4331_v44  ;;  %v3976_v0 = vrot.slane %v3925_v45, 4  ;;  %v4287_v18 = vmul.f32 %v7614_v43, %v2731_v5  ;;  %v5617_v56 = vadd.f32 %v5616_v28, %v5615_v16 }
 0x2d9   : > { %v3982_v49 = vrot.slane %v3926_v24, 4  ;;  %v4696_v3 = vrot.slane %v4645_v32, 4  ;;  %v4647_v39 = vmul.f32 %v7622_v26, %v2731_v5  ;;  %v3928_v13 = vmul.f32 %v7620_v25, %v2734_v2 }
 0x2da   : > { %v7807_v54 = vadd.f32 %v3972_v37, %v3971_v9  ;;  %v4337_v30 = vadd.f32 %v4336_v57, %v4285_v61  ;;  %v4288_v33 = vmul.f32 %v7624_v31, %v2734_v2  ;;  %v2589_v41 = vadd.f32 %v8460_v4, %v8459_v11  ;;  %v8461_v37 = vld [vmem:[#allocation52_spill] sm:$0xff]  ;;  %v8462_v4 = vld [vmem:[#allocation39_spill] sm:$0xff] }
 0x2db   : > { %v4693_v44 = vadd.f32 %v4692_v6, %v4691_v58  ;;  %v4342_v17 = vrot.slane %v4286_v14, 4  ;;  %v4702_v43 = vrot.slane %v4646_v40, 4  ;;  %v3988_v16 = vrot.slane %v3927_v19, 4  ;;  %v7819_v58 = vpop.f32.mrf.mxu1 }
 0x2dc   : > { %v4334_v28 = vrot.slane %v4333_v23, 1  ;;  %v7814_v21 = vadd.f32 %v3976_v0, %v3925_v45  ;;  %v4348_v26 = vrot.slane %v4287_v18, 4  ;;  %v2683_v25 = vadd.f32 %v5617_v56, %v7638_v60 }
 0x2dd   : > { %v3983_v9 = vadd.f32 %v3982_v49, %v3926_v24  ;;  %v4697_v5 = vadd.f32 %v4696_v3, %v4645_v32  ;;  %v4708_v61 = vrot.slane %v4647_v39, 4  ;;  %v3994_v35 = vrot.slane %v3928_v13, 4  ;;  %v8464_v32 = vld [vmem:[#allocation33_spill] sm:$0xff]  ;;  %v7825_v63 = vpop.f32.mrf.mxu1 }
 0x2de   : > { %v4338_v31 = vrot.slane %v4337_v30, 2  ;;  %v4354_v46 = vrot.slane %v4288_v33, 4  ;;  %v4648_v57 = vmul.f32 %v8461_v37, %v2734_v2  ;;  %v2739_v59 = vmul.f32 %v2589_v41, %v8462_v4 }
 0x2df   : > { %v4694_v6 = vrot.slane %v4693_v44, 1  ;;  %v4343_v51 = vadd.f32 %v4342_v17, %v4286_v14  ;;  %v4703_v1 = vadd.f32 %v4702_v43, %v4646_v40  ;;  %v3989_v45 = vadd.f32 %v3988_v16, %v3927_v19  ;;  %v8466_v43 = vld [vmem:[#allocation53_spill] sm:$0xff]  ;;  %v8467_v16 = vld [vmem:[#allocation54_spill] sm:$0xff] }
 0x2e0   : > { %v7821_v0 = vadd.f32 %v4334_v28, %v4333_v23  ;;  %v4349_v24 = vadd.f32 %v4348_v26, %v4287_v18  ;;  %v2737_v49 = vmul.f32 %v2683_v25, %v8464_v32  ;;  %v3984_v3 = vrot.slane %v3983_v9, 2  ;;  %v8468_v26 = vld [vmem:[#allocation56_spill] sm:$0xff] }
 0x2e1   : > { %v4698_v50 = vrot.slane %v4697_v5, 2  ;;  %v4709_v27 = vadd.f32 %v4708_v61, %v4647_v39  ;;  %v3995_v7 = vadd.f32 %v3994_v35, %v3928_v13  ;;  %v4339_v2 = vadd.f32 %v4338_v31, %v4337_v30 }
 0x2e2   : > { %8463 = vst [vmem:[#allocation35_spill] sm:$0xff] %v7821_v0  ;;  %v4355_v37 = vadd.f32 %v4354_v46, %v4288_v33  ;;  %v4714_v41 = vrot.slane %v4648_v57, 4  ;;  %v2918_v55 = vrot.slane %v2739_v59, 4  ;;  %v7827_v14 = vadd.f32 %v4694_v6, %v4693_v44  ;;  %v5625_v44 = vpop.f32.mrf.mxu1 }
 0x2e3   : > { %v4344_v40 = vrot.slane %v4343_v51, 2  ;;  %v4704_v19 = vrot.slane %v4703_v1, 2  ;;  %v3990_v23 = vrot.slane %v3989_v45, 2  ;;  %v4350_v17 = vrot.slane %v4349_v24, 2 }
 0x2e4   : > { %8465 = vst [vmem:[#allocation41_spill] sm:$0xff] %v7827_v14  ;;  %v3929_v18 = vmul.f32 %v8466_v43, %v2737_v49  ;;  %v4289_v28 = vmul.f32 %v8467_v16, %v2737_v49  ;;  %v4649_v25 = vmul.f32 %v8468_v26, %v2737_v49  ;;  %v3985_v39 = vadd.f32 %v3984_v3, %v3983_v9 }
 0x2e5   : > { %v4699_v13 = vadd.f32 %v4698_v50, %v4697_v5  ;;  %v4710_v30 = vrot.slane %v4709_v27, 2  ;;  %v3996_v33 = vrot.slane %v3995_v7, 2  ;;  %v4340_v61 = vrot.slane %v4339_v2, 1 }
 0x2e6   : > { %v4356_v35 = vrot.slane %v4355_v37, 2  ;;  %v4715_v31 = vadd.f32 %v4714_v41, %v4648_v57  ;;  %v2919_v46 = vadd.f32 %v2918_v55, %v2739_v59  ;;  %v4345_v6 = vadd.f32 %v4344_v40, %v4343_v51  ;;  %v5627_v59 = vpop.f32.mrf.mxu1 }
 0x2e7   : > { %v4705_v32 = vadd.f32 %v4704_v19, %v4703_v1  ;;  %v3991_v56 = vadd.f32 %v3990_v23, %v3989_v45  ;;  %v5620_v14 = vadd.f32 %v7799_v38, %v7782_v48  ;;  %v4351_v43 = vadd.f32 %v4350_v17, %v4349_v24 }
 0x2e8   : > { %v4000_v0 = vrot.slane %v3929_v18, 4  ;;  %v4360_v16 = vrot.slane %v4289_v28, 4  ;;  %v4720_v42 = vrot.slane %v4649_v25, 4  ;;  %v3986_v49 = vrot.slane %v3985_v39, 1 }
 0x2e9   : > { %v4700_v9 = vrot.slane %v4699_v13, 1  ;;  %v4711_v50 = vadd.f32 %v4710_v30, %v4709_v27  ;;  %v3997_v5 = vadd.f32 %v3996_v33, %v3995_v7  ;;  %v7834_v3 = vadd.f32 %v4340_v61, %v4339_v2  ;;  %v5628_v33 = vpop.f32.mrf.mxu1 }
 0x2ea   : > { %v4357_v26 = vadd.f32 %v4356_v35, %v4355_v37  ;;  %v4716_v57 = vrot.slane %v4715_v31, 2  ;;  %v2920_v55 = vrot.slane %v2919_v46, 2  ;;  %v4346_v51 = vrot.slane %v4345_v6, 1 }
 0x2eb   : > { %8469 = vst [vmem:[#allocation42_spill] sm:$0xff] %v7834_v3  ;;  %v4706_v1 = vrot.slane %v4705_v32, 1  ;;  %v3992_v45 = vrot.slane %v3991_v56, 1  ;;  %v2688_v41 = vadd.f32 %v5620_v14, %v7638_v60  ;;  %v4352_v48 = vrot.slane %v4351_v43, 1 }
 0x2ec   : > { %v4001_v38 = vadd.f32 %v4000_v0, %v3929_v18  ;;  %v4361_v24 = vadd.f32 %v4360_v16, %v4289_v28  ;;  %v4721_v40 = vadd.f32 %v4720_v42, %v4649_v25  ;;  %v7837_v19 = vadd.f32 %v3986_v49, %v3985_v39  ;;  %v7850_v18 = vpop.permute.xlu1 %3916  ;;  %v2602_v16 = vpop.f32.mrf.mxu0 }
 0x2ed   : > { %v7839_v23 = vadd.f32 %v4700_v9, %v4699_v13  ;;  %v4712_v7 = vrot.slane %v4711_v50, 1  ;;  %v3998_v27 = vrot.slane %v3997_v5, 1  ;;  %v4358_v2 = vrot.slane %v4357_v26, 1  ;;  %v8477_v9 = vld [vmem:[#allocation55_spill] sm:$0xff] }
 0x2ee   : > { %v4717_v37 = vadd.f32 %v4716_v57, %v4715_v31  ;;  %v2921_v17 = vadd.f32 %v2920_v55, %v2919_v46  ;;  %v5623_v30 = vadd.f32 %v7819_v58, %v7812_v62  ;;  %v7843_v61 = vadd.f32 %v4346_v51, %v4345_v6  ;;  %v8475_v58 = vld [vmem:[#allocation43_spill] sm:$0xff] }
 0x2ef   : > { %8470 = vst [vmem:[#allocation52_spill] sm:$0xff] %v7839_v23  ;;  %v7845_v14 = vadd.f32 %v4706_v1, %v4705_v32  ;;  %v7847_v0 = vadd.f32 %v3992_v45, %v3991_v56  ;;  %v2740_v42 = vmul.f32 %v2688_v41, %v8462_v4  ;;  %v7852_v28 = vadd.f32 %v4352_v48, %v4351_v43  ;;  %v7864_v43 = vld [vmem:[%s7267_s1 + $0x8] sm:$0xff]  ;;  %v8479_v1 = vld [vmem:[#allocation40_spill] sm:$0xff]  ;;  %v8480_v41 = vld [vmem:[#allocation58_spill] sm:$0xff]  ;;  %s8494_s1 = sld [smem:[#allocation22_spill]] }
 0x2f0   : > { %8471 = vst [vmem:[#allocation39_spill] sm:$0xff] %v7843_v61  ;;  %v4002_v25 = vrot.slane %v4001_v38, 2  ;;  %v4362_v39 = vrot.slane %v4361_v24, 2  ;;  %v4722_v13 = vrot.slane %v4721_v40, 2  ;;  %v7854_v35 = vadd.f32 %v4712_v7, %v4711_v50  ;;  %v8481_v7 = vld [vmem:[#allocation34_spill] sm:$0xff] }
 0x2f1   : > { %8472 = vst [vmem:[#allocation33_spill] sm:$0xff] %v7845_v14  ;;  %8473 = vst [vmem:[#allocation53_spill] sm:$0xff] %v7852_v28  ;;  %v7856_v62 = vadd.f32 %v3998_v27, %v3997_v5  ;;  %v2593_v31 = vadd.f32 %v8475_v58, %v8459_v11  ;;  %v5629_v46 = vadd.f32 %v5628_v33, %v5627_v59  ;;  %v4718_v6 = vrot.slane %v4717_v37, 1  ;;  %v8478_v5 = vld [vmem:[#allocation57_spill] sm:$0xff]  ;;  %v4277_v33 = vpop.permute.xlu1 %4276 }
 0x2f2   : > { %8474 = vst [vmem:[#allocation54_spill] sm:$0xff] %v7854_v35  ;;  %v7860_v56 = vadd.f32 %v4358_v2, %v4357_v26  ;;  %v2922_v32 = vrot.slane %v2921_v17, 1  ;;  %v2691_v4 = vadd.f32 %v5623_v30, %v7638_v60  ;;  %v4044_v49 = vrot.slane %v7864_v43, 4 }
 0x2f3   : > { %v3930_v50 = vmul.f32 %v8477_v9, %v2740_v42  ;;  %v4290_v57 = vmul.f32 %v8478_v5, %v2740_v42  ;;  %v5626_v55 = vadd.f32 %v5625_v44, %v7825_v63  ;;  %v4003_v51 = vadd.f32 %v4002_v25, %v4001_v38  ;;  %v7879_v5 = vld [vmem:[%s7387_s6 + $0x8] sm:$0xff]  ;;  %v8483_v38 = vld [vmem:[#allocation45_spill] sm:$0xff]  ;;  %s8034_s6 = scalar_lea.vmem %s6436_s19, %s6518_s28 }
 0x2f4   : > { %8476 = vst [vmem:[#allocation56_spill] sm:$0xff] %v7860_v56  ;;  %v4363_v59 = vadd.f32 %v4362_v39, %v4361_v24  ;;  %v4723_v26 = vadd.f32 %v4722_v13, %v4721_v40  ;;  %v2599_v45 = vadd.f32 %v8479_v1, %v8459_v11  ;;  %v4650_v48 = vmul.f32 %v8480_v41, %v2740_v42  ;;  %v8486_v41 = vld [vmem:[#allocation59_spill] sm:$0xff] }
 0x2f5   : > { %v2742_v27 = vmul.f32 %v2593_v31, %v8481_v7  ;;  %v2603_v2 = vadd.f32 %v2602_v16, %v8459_v11  ;;  %v2699_v30 = vadd.f32 %v5629_v46, %v7638_v60  ;;  %v7876_v58 = vadd.f32 %v4718_v6, %v4717_v37  ;;  %v8484_v31 = vld [vmem:[#allocation37_spill] sm:$0xff]  ;;  %v4637_v14 = vpop.permute.xlu1 %4636 }
 0x2f6   : > { %v2923_v9 = vadd.f32 %v2922_v32, %v2921_v17  ;;  %v4404_v63 = vrot.slane %v7879_v5, 4  ;;  %v2743_v44 = vmul.f32 %v2691_v4, %v8481_v7  ;;  %v4764_v24 = vrot.slane %v8483_v38, 4  ;;  %v8485_v17 = vld [vmem:[#allocation38_spill] sm:$0xff]  ;;  %v8487_v38 = vld [vmem:[#allocation47_spill] sm:$0xff] }
 0x2f7   : > { %8482 = vst [vmem:[#allocation43_spill] sm:$0xff] %v7876_v58  ;;  %v4006_v40 = vrot.slane %v3930_v50, 4  ;;  %v4366_v42 = vrot.slane %v4290_v57, 4  ;;  %v2696_v25 = vadd.f32 %v5626_v55, %v7638_v60  ;;  %v4004_v39 = vrot.slane %v4003_v51, 1  ;;  %v8488_v58 = vld [vmem:[#allocation61_spill] sm:$0xff] }
 0x2f8   : > { %v4364_v11 = vrot.slane %v4363_v59, 1  ;;  %v4724_v13 = vrot.slane %v4723_v26, 1  ;;  %v2745_v46 = vmul.f32 %v2599_v45, %v8484_v31  ;;  %v4726_v37 = vrot.slane %v4650_v48, 4 }
 0x2f9   : > { %v2924_v6 = vrot.slane %v2742_v27, 4  ;;  %v2748_v32 = vmul.f32 %v2603_v2, %v8485_v17  ;;  %v2749_v16 = vmul.f32 %v2699_v30, %v8485_v17  ;;  %v7888_v1 = vmul.f32 %v4044_v49, %v2923_v9 }
 0x2fa   : > { %v7890_v4 = vmul.f32 %v4404_v63, %v2923_v9  ;;  %v3931_v7 = vmul.f32 %v8486_v41, %v2743_v44  ;;  %v4291_v23 = vmul.f32 %v8487_v38, %v2743_v44  ;;  %v4007_v60 = vadd.f32 %v4006_v40, %v3930_v50 }
 0x2fb   : > { %v4367_v55 = vadd.f32 %v4366_v42, %v4290_v57  ;;  %v4651_v35 = vmul.f32 %v8488_v58, %v2743_v44  ;;  %v2746_v45 = vmul.f32 %v2696_v25, %v8484_v31  ;;  %v7898_v2 = vadd.f32 %v4004_v39, %v4003_v51  ;;  %v8491_v51 = vld [vmem:[#allocation60_spill] sm:$0xff] }
 0x2fc   : > { %v7900_v30 = vadd.f32 %v4364_v11, %v4363_v59  ;;  %v7902_v49 = vmul.f32 %v4764_v24, %v2923_v9  ;;  %v2930_v63 = vrot.slane %v2745_v46, 4  ;;  %v4727_v17 = vadd.f32 %v4726_v37, %v4650_v48 }
 0x2fd   : > { %v2925_v41 = vadd.f32 %v2924_v6, %v2742_v27  ;;  %v2936_v28 = vrot.slane %v2748_v32, 4  ;;  %v4293_v38 = vmul.f32 %v4277_v33, %v2749_v16  ;;  %v7904_v57 = vadd.f32 %v4724_v13, %v4723_v26 }
 0x2fe   : > { %8489 = vst [vmem:[#allocation55_spill] sm:$0xff] %v7900_v30  ;;  %v4012_v58 = vrot.slane %v3931_v7, 4  ;;  %v4372_v44 = vrot.slane %v4291_v23, 4  ;;  %v4653_v40 = vmul.f32 %v4637_v14, %v2749_v16  ;;  %v4008_v42 = vrot.slane %v4007_v60, 2 }
 0x2ff   : > { %8490 = vst [vmem:[#allocation57_spill] sm:$0xff] %v7904_v57  ;;  %v4368_v25 = vrot.slane %v4367_v55, 2  ;;  %v4732_v31 = vrot.slane %v4651_v35, 4  ;;  %v3932_v39 = vmul.f32 %v8491_v51, %v2746_v45  ;;  %v2931_v24 = vadd.f32 %v2930_v63, %v2745_v46 }
 0x300   : > { %v4292_v48 = vmul.f32 %v7736_v53, %v2746_v45  ;;  %v3933_v27 = vmul.f32 %v7850_v18, %v2749_v16  ;;  %v4728_v33 = vrot.slane %v4727_v17, 2  ;;  %v2926_v26 = vrot.slane %v2925_v41, 2 }
 0x301   : > { %v2937_v11 = vadd.f32 %v2936_v28, %v2748_v32  ;;  %v4384_v13 = vrot.slane %v4293_v38, 4  ;;  %v4013_v14 = vadd.f32 %v4012_v58, %v3931_v7  ;;  %v4373_v6 = vadd.f32 %v4372_v44, %v4291_v23 }
 0x302   : > { %v4744_v57 = vrot.slane %v4653_v40, 4  ;;  %v4009_v51 = vadd.f32 %v4008_v42, %v4007_v60  ;;  %v4369_v30 = vadd.f32 %v4368_v25, %v4367_v55  ;;  %v4733_v61 = vadd.f32 %v4732_v31, %v4651_v35 }
 0x303   : > { %v4018_v3 = vrot.slane %v3932_v39, 4  ;;  %v2932_v63 = vrot.slane %v2931_v24, 2  ;;  %v4378_v53 = vrot.slane %v4292_v48, 4  ;;  %v4024_v9 = vrot.slane %v3933_v27, 4 }
 0x304   : > { %v4729_v18 = vadd.f32 %v4728_v33, %v4727_v17  ;;  %v2927_v16 = vadd.f32 %v2926_v26, %v2925_v41  ;;  %v4385_v28 = vadd.f32 %v4384_v13, %v4293_v38  ;;  %v4014_v32 = vrot.slane %v4013_v14, 2 }
 0x305   : > { %v4745_v23 = vadd.f32 %v4744_v57, %v4653_v40  ;;  %v4010_v58 = vrot.slane %v4009_v51, 1  ;;  %v4019_v60 = vadd.f32 %v4018_v3, %v3932_v39  ;;  %v4836_v35 = vrot.slane %v7902_v49, 4 }
 0x306   : > { %v2933_v55 = vadd.f32 %v2932_v63, %v2931_v24  ;;  %v4379_v44 = vadd.f32 %v4378_v53, %v4292_v48  ;;  %v4025_v42 = vadd.f32 %v4024_v9, %v3933_v27  ;;  %v4730_v25 = vrot.slane %v4729_v18, 1 }
 0x307   : > { %v2928_v31 = vrot.slane %v2927_v16, 1  ;;  %v4386_v17 = vrot.slane %v4385_v28, 2  ;;  %v4015_v41 = vadd.f32 %v4014_v32, %v4013_v14  ;;  %v4746_v26 = vrot.slane %v4745_v23, 2 }
 0x308   : > { %v7917_v13 = vadd.f32 %v4010_v58, %v4009_v51  ;;  %v4020_v3 = vrot.slane %v4019_v60, 2  ;;  %v2934_v39 = vrot.slane %v2933_v55, 1  ;;  %v4380_v24 = vrot.slane %v4379_v44, 2 }
 0x309   : > { %v4026_v48 = vrot.slane %v4025_v42, 2  ;;  %v8493_v9 = vrot.slane %v7814_v21, 2  ;;  %v7926_v27 = vadd.f32 %v4730_v25, %v4729_v18  ;;  %v4747_v63 = vadd.f32 %v4746_v26, %v4745_v23  ;;  %v8496_v26 = vld [vmem:[#allocation48_spill] sm:$0xff] }
 0x30a   : > { %v4021_v32 = vadd.f32 %v4020_v3, %v4019_v60  ;;  %v7936_v18 = vadd.f32 %v2934_v39, %v2933_v55  ;;  %v4046_v23 = vrot.slane %v7864_v43, 6  ;;  %v4047_v60 = vrot.slane %v7864_v43, 7 }
 0x30b   : > { %v8495_v55 = vrot.slane %v7774_v22, 1 }
 0x30c   : > { %v4022_v39 = vrot.slane %v4021_v32, 1 }
 0x328   : > { %v7896_v56 = vpop.f32.mrf.mxu0 }
 0x32a   : > { %v5722_v50 = vpop.f32.mrf.mxu0 }
 0x32b   : > { %v4652_v50 = vmul.f32 %v7751_v20, %v2746_v45  ;;  %v4370_v20 = vrot.slane %v4369_v30, 1  ;;  %v4734_v45 = vrot.slane %v4733_v61, 2 }
 0x32c   : > { %v7907_v59 = vpop.f32.mrf.mxu0 }
 0x32d   : > { %8492 = vst [vmem:[#allocation40_spill] sm:$0xff] %v7907_v59  ;;  %v2938_v59 = vrot.slane %v2937_v11, 2  ;;  %v4738_v7 = vrot.slane %v4652_v50, 4  ;;  %v7919_v57 = vadd.f32 %v4370_v20, %v4369_v30  ;;  %v7921_v40 = vadd.f32 %v4734_v45, %v4733_v61  ;;  %v7943_v45 = vld [vmem:[%s8494_s1] sm:$0x7]  ;;  %s1245_s1 = scalar_lea.vmem %s8526_s3, %s6518_s28 }
 0x32e   : > { %v5723_v37 = vpop.f32.mrf.mxu0  ;;  %v4016_v30 = vrot.slane %v4015_v41, 1 }
 0x32f   : > { %v4374_v37 = vrot.slane %v4373_v6, 2  ;;  %v2939_v46 = vadd.f32 %v2938_v59, %v2937_v11  ;;  %v4739_v38 = vadd.f32 %v4738_v7, %v4652_v50  ;;  %v3979_v59 = vadd.f32 %v8493_v9, %v7814_v21  ;;  %v7930_v50 = vpop.f32.mrf.mxu1 }
 0x330   : > { %v7928_v11 = vadd.f32 %v2928_v31, %v2927_v16  ;;  %v4736_v53 = vrot.slane %v7921_v40, 1  ;;  %v4045_v21 = vrot.slane %v7864_v43, 5  ;;  %v7938_v16 = vadd.f32 %v4380_v24, %v4379_v44  ;;  %v8497_v43 = vld [vmem:[#allocation30_spill] sm:$0xff] }
 0x331   : > { %v7915_v33 = vadd.f32 %v4374_v37, %v4373_v6  ;;  %v2940_v14 = vrot.slane %v2939_v46, 1  ;;  %v4387_v6 = vadd.f32 %v4386_v17, %v4385_v28  ;;  %v4740_v51 = vrot.slane %v4739_v38, 2  ;;  %v7945_v25 = vpop.f32.mrf.mxu1 }
 0x332   : > { %v3974_v37 = vrot.slane %v7807_v54, 1  ;;  %v3980_v28 = vrot.slane %v3979_v59, 1  ;;  %v4027_v7 = vadd.f32 %v4026_v48, %v4025_v42  ;;  %v4748_v17 = vrot.slane %v4747_v63, 1 }
 0x333   : > { %v4376_v61 = vrot.slane %v7915_v33, 1  ;;  %v7940_v58 = vadd.f32 %v2940_v14, %v2939_v46  ;;  %v4388_v20 = vrot.slane %v4387_v6, 1  ;;  %v7949_v31 = vadd.f32 %v4740_v51, %v4739_v38 }
 0x334   : > { %v3969_v44 = vadd.f32 %v8495_v55, %v7774_v22  ;;  %v4144_v46 = vsel %vm2964_vm1, %v7742_v29, %v8496_v26  ;;  %v3975_v42 = vadd.f32 %v3974_v37, %v7807_v54  ;;  %v4077_v24 = vmul.f32 %v4045_v21, %v7928_v11  ;;  %v7969_v29 = vpop.f32.mrf.mxu1  ;;  %v8498_v21 = vld [vmem:[#allocation31_spill] sm:$0xff] }
 0x335   : > { %v4145_v3 = vsel %vm2966_vm2, %v7755_v52, %v4144_v46  ;;  %v7963_v38 = vrot.slane %v7943_v45, %v8497_v43  ;;  %v3981_v48 = vadd.f32 %v3980_v28, %v3979_v59  ;;  %v4028_v9 = vrot.slane %v4027_v7, 1 }
 0x336   : > { %v4146_v22 = vsel %vm2968_vm3, %v7770_v12, %v4145_v3  ;;  %v7967_v14 = vadd.f32 %v4388_v20, %v4387_v6  ;;  %v4078_v52 = vmul.f32 %v4046_v23, %v7936_v18  ;;  %v4079_v51 = vmul.f32 %v4047_v60, %v7940_v58 }
 0x337   : > { %v4147_v54 = vsel %vm2970_vm4, %v7786_v15, %v4146_v22  ;;  %v7975_v37 = vadd.f32 %v4748_v17, %v4747_v63  ;;  %v3035_v59 = vrot.slane %v7943_v45, %v8498_v21  ;;  %v4017_v12 = vadd.f32 %v4016_v30, %v4015_v41  ;;  %v7988_v17 = vpop.f32.mrf.mxu1 }
 0x338   : > { %v4148_v28 = vsel %vm2972_vm5, %v3969_v44, %v4147_v54  ;;  %v4023_v20 = vadd.f32 %v4022_v39, %v4021_v32  ;;  %v4118_v55 = vrot.slane %v4077_v24, 3  ;;  %v4151_v15 = vsel %vm2964_vm1, %v7847_v0, %v7837_v19  ;;  %v8499_v44 = vld [vmem:[#allocation46_spill] sm:$0xff]  ;;  %v8502_v54 = vld [vmem:[#allocation67_spill] sm:$0xff] }
 0x339   : > { %v4149_v6 = vsel %vm2974_vm6, %v3975_v42, %v4148_v28  ;;  %v4029_v26 = vadd.f32 %v4028_v9, %v4027_v7  ;;  %v4152_v63 = vsel %vm2966_vm2, %v7856_v62, %v4151_v15  ;;  %v4405_v60 = vrot.slane %v7879_v5, 5  ;;  %v8504_v28 = vld [vmem:[#allocation36_spill] sm:$0xff] }
 0x33a   : > { %v4150_v23 = vsel %vm2976_vm7, %v3981_v48, %v4149_v6  ;;  %v8500_v41 = vrot.slane %v7888_v1, 4  ;;  %v4120_v32 = vrot.slane %v4078_v52, 2  ;;  %v4122_v46 = vrot.slane %v4079_v51, 1  ;;  %v8503_v51 = vld [vmem:[#allocation40_spill] sm:$0xff] }
 0x33b   : > { %v4153_v19 = vsel %vm2968_vm3, %v7898_v2, %v4152_v63  ;;  %v7997_v0 = vadd.f32 %v7896_v56, %v3035_v59  ;;  %v4504_v62 = vsel %vm2964_vm1, %v7747_v36, %v7730_v8  ;;  %v4406_v7 = vrot.slane %v7879_v5, 6 }
 0x33c   : > { %v4117_v30 = vsel %vm2970_vm4, %v8500_v41, %v8499_v44  ;;  %v4407_v42 = vrot.slane %v7879_v5, 7  ;;  %v4154_v24 = vsel %vm2970_vm4, %v7917_v13, %v4153_v19  ;;  %v8501_v56 = vrot.slane %v7778_v34, 1 }
 0x33d   : > { %v4119_v39 = vsel %vm2972_vm5, %v4118_v55, %v4117_v30  ;;  %v4505_v8 = vsel %vm2966_vm2, %v7757_v10, %v4504_v62  ;;  %v4155_v5 = vsel %vm2972_vm5, %v4017_v12, %v4154_v24  ;;  %v4437_v48 = vmul.f32 %v4405_v60, %v7928_v11  ;;  %v8505_v30 = vld [vmem:[#allocation35_spill] sm:$0xff] }
 0x33e   : > { %v4329_v2 = vadd.f32 %v8501_v56, %v7778_v34  ;;  %v4506_v43 = vsel %vm2968_vm3, %v7772_v47, %v4505_v8  ;;  %v4121_v9 = vsel %vm2974_vm6, %v4120_v32, %v4119_v39  ;;  %v4156_v34 = vsel %vm2974_vm6, %v4023_v20, %v4155_v5  ;;  %v8508_v39 = vld [vmem:[#allocation53_spill] sm:$0xff]  ;;  %v8509_v8 = vld [vmem:[#allocation56_spill] sm:$0xff] }
 0x33f   : > { %v4507_v52 = vsel %vm2970_vm4, %v8502_v54, %v4506_v43  ;;  %v4382_v10 = vrot.slane %v7938_v16, 1  ;;  %v8027_v21 = vadd.f32 %v8503_v51, %v3035_v59  ;;  %v4438_v47 = vmul.f32 %v4406_v7, %v7936_v18  ;;  %v8513_v54 = vld [vmem:[#allocation65_spill] sm:$0xff] }
 0x340   : > { %v4439_v6 = vmul.f32 %v4407_v42, %v7940_v58  ;;  %v4123_v15 = vsel %vm2976_vm7, %v4122_v46, %v4121_v9  ;;  %v4157_v63 = vsel %vm2976_vm7, %v4029_v26, %v4156_v34  ;;  %v4508_v59 = vsel %vm2972_vm5, %v4329_v2, %v4507_v52  ;;  %v8506_v42 = vld [vmem:[#allocation42_spill] sm:$0xff]  ;;  %v8512_v9 = vld [vmem:[#allocation55_spill] sm:$0xff] }
 0x341   : > { %v4377_v60 = vadd.f32 %v4376_v61, %v7915_v33  ;;  %v4509_v32 = vsel %vm2974_vm6, %v8505_v30, %v4508_v59  ;;  %v4478_v19 = vrot.slane %v4437_v48, 3  ;;  %v4383_v26 = vadd.f32 %v4382_v10, %v7938_v16  ;;  %v6157_v33 = vld [vmem:[%s7487_s23 + $0x8] sm:$0xff]  ;;  %v8510_v48 = vld [vmem:[#allocation49_spill] sm:$0xff]  ;;  %v8515_v30 = vld [vmem:[#allocation44_spill] sm:$0xff]  ;;  %s8126_s23 = sand.u32 1, %s6240_s16  }
 0x342   : > { %v4510_v46 = vsel %vm2976_vm7, %v8506_v42, %v4509_v32  ;;  %v4765_v61 = vrot.slane %v6157_v33, 5  ;;  %v4480_v56 = vrot.slane %v4438_v47, 2  ;;  %v4482_v2 = vrot.slane %v4439_v6, 1  ;;  %v8517_v42 = vld [vmem:[#allocation63_spill] sm:$0xff]  ;;  %s4885_s8 = scalar_lea.sflag [#allocation3], %s8126_s23 }
 0x343   : > { %v8514_v52 = vrot.slane %v8513_v54, 1  ;;  %v4766_v51 = vrot.slane %v6157_v33, 6  ;;  %v4742_v59 = vrot.slane %v7949_v31, 1 }
 0x345   : > { %v4689_v10 = vadd.f32 %v8514_v52, %v8513_v54  ;;  %v8521_v54 = vld [vmem:[#allocation33_spill] sm:$0xff]  ;;  %v8522_v52 = vld [vmem:[#allocation54_spill] sm:$0xff] }
 0x348   : > { %v8004_v3 = vpop.f32.mrf.mxu1  ;;  %v3517_v1 = vpop.f32.mrf.mxu0 }
 0x349   : > { %v4030_v36 = vmul.f32 %v3517_v1, %v7997_v0  ;;  %v8507_v1 = vld [vmem:[#allocation39_spill] sm:$0xff] }
 0x34a   : > { %v8019_v22 = vpop.f32.mrf.mxu1  ;;  %v5742_v13 = vpop.f32.mrf.mxu0  ;;  %v4511_v24 = vsel %vm2964_vm1, %v8508_v39, %v8507_v1 }
 0x34b   : > { %v4126_v12 = vadd.f32 %v8504_v28, %v4030_v36  ;;  %v4512_v36 = vsel %vm2966_vm2, %v8509_v8, %v4511_v24  ;;  %v8511_v13 = vrot.slane %v7890_v4, 4  ;;  %v8518_v24 = vld [vmem:[#allocation64_spill] sm:$0xff] }
 0x34c   : > { %v8036_v55 = vpop.f32.mrf.mxu1  ;;  %v3520_v20 = vpop.f32.mrf.mxu0  ;;  %v4513_v34 = vsel %vm2968_vm3, %v8512_v9, %v4512_v36  ;;  %v4737_v36 = vadd.f32 %v4736_v53, %v7921_v40  ;;  %v8523_v40 = vld [vmem:[#allocation32_spill] sm:$0xff] }
 0x34d   : > { %v4160_v44 = vadd.f32 %v4150_v23, %v4126_v12  ;;  %v4031_v41 = vmul.f32 %v3520_v20, %v8027_v21  ;;  %v4477_v16 = vsel %vm2970_vm4, %v8511_v13, %v8510_v48  ;;  %v4514_v4 = vsel %vm2970_vm4, %v7919_v57, %v4513_v34  ;;  %v8520_v48 = vld [vmem:[#allocation68_spill] sm:$0xff] }
 0x34e   : > { %v8047_v62 = vpop.f32.mrf.mxu1  ;;  %v5743_v7 = vpop.f32.mrf.mxu0  ;;  %v4479_v47 = vsel %vm2972_vm5, %v4478_v19, %v4477_v16  ;;  %v8516_v19 = vld [vmem:[#allocation62_spill] sm:$0xff]  ;;  %v4743_v13 = vadd.f32 %v4742_v59, %v7949_v31  ;;  %v3031_v53 = vrot.slane %v7943_v45, %v8523_v40  ;;  %v8528_v59 = vld [vmem:[#allocation41_spill] sm:$0xff] }
 0x34f   : > { %4162 = vst [vmem:[%s8034_s6] sm:$0xff] %v4160_v44  ;;  %v4127_v23 = vadd.f32 %v4123_v15, %v4031_v41  ;;  %v4515_v15 = vsel %vm2972_vm5, %v4377_v60, %v4514_v4  ;;  %v4767_v44 = vrot.slane %v6157_v33, 7  ;;  %v4797_v41 = vmul.f32 %v4765_v61, %v7928_v11 }
 0x350   : > { %v3464_v5 = vpop.f32.mrf.mxu1  ;;  %v3525_v43 = vpop.f32.mrf.mxu0  ;;  %v4516_v7 = vsel %vm2974_vm6, %v4383_v26, %v4515_v15  ;;  %v4864_v57 = vsel %vm2964_vm1, %v8517_v42, %v8516_v19  ;;  %v4798_v61 = vmul.f32 %v4766_v51, %v7936_v18  ;;  %v4871_v51 = vsel %vm2964_vm1, %v8522_v52, %v8521_v54  ;;  %v8530_v42 = vld [vmem:[#allocation52_spill] sm:$0xff] }
 0x351   : > { %v4161_v28 = vadd.f32 %v4157_v63, %v4127_v23  ;;  %v4390_v12 = vmul.f32 %v3525_v43, %v7997_v0  ;;  %v4481_v63 = vsel %vm2974_vm6, %v4480_v56, %v4479_v47  ;;  %v4517_v11 = vsel %vm2976_vm7, %v7967_v14, %v4516_v7  ;;  %v8519_v56 = vld [vmem:[#allocation66_spill] sm:$0xff]  ;;  %v8524_v47 = vld [vmem:[#allocation51_spill] sm:$0xff] }
 0x352   : > { %v3466_v6 = vpop.f32.mrf.mxu1  ;;  %v5746_v20 = vpop.f32.mrf.mxu0  ;;  %v4483_v39 = vsel %vm2976_vm7, %v4482_v2, %v4481_v63  ;;  %v4865_v33 = vsel %vm2966_vm2, %v8518_v24, %v4864_v57  ;;  %v4799_v16 = vmul.f32 %v4767_v44, %v7940_v58  ;;  %v4838_v18 = vrot.slane %v4797_v41, 3 }
 0x353   : > { %4163 = vst [vmem:[%s8034_s6 + $0x8] sm:$0xff] %v4161_v28  ;;  %v4486_v32 = vadd.f32 %v8515_v30, %v4390_v12  ;;  %v4866_v8 = vsel %vm2968_vm3, %v8519_v56, %v4865_v33  ;;  %v4837_v58 = vsel %vm2970_vm4, %v4836_v35, %v8524_v47  ;;  %v4840_v31 = vrot.slane %v4798_v61, 2  ;;  %v8527_v20 = vld [vmem:[#allocation57_spill] sm:$0xff]  ;;  %s8310_s6 = sshll.u32 %s8126_s23, 4 }
 0x354   : > { %v3468_v1 = vpop.f32.mrf.mxu1  ;;  %v3528_v60 = vpop.f32.mrf.mxu0  ;;  %v4867_v14 = vsel %vm2970_vm4, %v8520_v48, %v4866_v8  ;;  %v3540_v4 = vmul.f32 %v8019_v22, %v8004_v3  ;;  %v4839_v41 = vsel %vm2972_vm5, %v4838_v18, %v4837_v58  ;;  %v4842_v30 = vrot.slane %v4799_v16, 1  ;;  %v8529_v22 = vld [vmem:[#allocation50_spill] sm:$0xff]  ;;  %s8154_s3 = scalar_lea.vmem [#allocation2], %s8310_s6  ;;  %s8534_s6 = sld [smem:[#allocation28_spill]] }
 0x355   : > { %v4520_v26 = vadd.f32 %v4510_v46, %v4486_v32  ;;  %v4391_v23 = vmul.f32 %v3528_v60, %v8027_v21  ;;  %v3542_v46 = vmul.f32 %v3466_v6, %v3464_v5  ;;  %v4868_v34 = vsel %vm2972_vm5, %v4689_v10, %v4867_v14  ;;  %v8525_v5 = vld [vmem:[#allocation43_spill] sm:$0xff]  ;;  %s4918_s5 = sshll.u32 %s8154_s3, 4  ;;  %s8187_s5 = int_to_ptr.vmem [resolvable:$true] %s4918_s5 }
 0x356   : > { %v3470_v43 = vpop.f32.mrf.mxu1  ;;  %v5747_v2 = vpop.f32.mrf.mxu0  ;;  %v4872_v10 = vsel %vm2966_vm2, %v8525_v5, %v4871_v51  ;;  %v4869_v49 = vsel %vm2974_vm6, %v8528_v59, %v4868_v34  ;;  %v3204_v19 = vadd.f32 %v7945_v25, %v3031_v53  ;;  %v3541_v24 = vmul.f32 %v8047_v62, %v8036_v55  ;;  %s6158_s9 = scalar_lea.vmem %s8187_s5, 256  ;;  %p6165_p1 = scmp.lt.s32.totalorder %s8187_s5, %s6163_s12 }
 0x357   : > { %4522 = vst [vmem:[%s8084_s4] sm:$0xff] %v4520_v26  ;;  %v4487_v9 = vadd.f32 %v4483_v39, %v4391_v23  ;;  %v4873_v15 = vsel %vm2968_vm3, %v8527_v20, %v4872_v10  ;;  %v3546_v3 = vadd.f32 %v3542_v46, %v3540_v4  ;;  %v4870_v57 = vsel %vm2976_vm7, %v8530_v42, %v4869_v49  ;;  %p6159_p12 = scmp.ne.s32.totalorder %s8187_s5, %s6158_s9  ;;  %p6166_p2 = scmp.lt.s32.totalorder %s6164_s13, %s6158_s9 }
 0x358   : > { %v3474_v28 = vpop.f32.mrf.mxu1  ;;  %v3533_v12 = vpop.f32.mrf.mxu0  ;;  %v4874_v32 = vsel %vm2970_vm4, %v7926_v27, %v4873_v15  ;;  %v3202_v25 = vadd.f32 %v7930_v50, %v7963_v38  ;;  %v3208_v62 = vadd.f32 %v7988_v17, %v3031_v53  ;;  %v8532_v18 = vmov 0.0  }
 0x359   : > { %v4521_v6 = vadd.f32 %v4517_v11, %v4487_v9  ;;  %v4750_v45 = vmul.f32 %v3533_v12, %v7997_v0  ;;  %v3543_v0 = vmul.f32 %v3470_v43, %v3468_v1  ;;  %v4841_v11 = vsel %vm2974_vm6, %v4840_v31, %v4839_v41  ;;  %p6160_p13 = pnand %p6159_p12, %p6486_p5  ;;  %p6167_p3 = por %p6166_p2, %p6165_p1 }
 0x35a   : > { %v3476_v44 = vpop.f32.mrf.mxu1  ;;  %v5750_v35 = vpop.f32.mrf.mxu0  ;;  %v4875_v27 = vsel %vm2972_vm5, %v4737_v36, %v4874_v32  ;;  %v4843_v26 = vsel %vm2976_vm7, %v4842_v30, %v4841_v11 }
 0x35b   : > { %4523 = vst [vmem:[%s8084_s4 + $0x8] sm:$0xff] %v4521_v6  ;;  %v4846_v63 = vadd.f32 %v8529_v22, %v4750_v45  ;;  %v3544_v7 = vmul.f32 %v3476_v44, %v3474_v28  ;;  %v4876_v23 = vsel %vm2974_vm6, %v4743_v13, %v4875_v27  ;;  %v3547_v43 = vadd.f32 %v3543_v0, %v3541_v24  ;;  %s8531_s4 = sld [smem:[#allocation26_spill]]  ;;  %p6161_p0 = pneg %p6160_p13 }
 0x35c   : > { %v3478_v60 = vpop.f32.mrf.mxu1  ;;  %v3536_v39 = vpop.f32.mrf.mxu0  ;;  %v3206_v13 = vadd.f32 %v7969_v29, %v7963_v38 }
 0x35d   : > { %v4880_v33 = vadd.f32 %v4870_v57, %v4846_v63  ;;  %v3548_v1 = vadd.f32 %v3546_v3, %v3544_v7  ;;  %v4751_v61 = vmul.f32 %v3536_v39, %v8027_v21  ;;  %v4877_v21 = vsel %vm2976_vm7, %v7975_v37, %v4876_v23  ;;  %p6168_p4 = pnand %p6167_p3, %p6161_p0 }
 0x35e   : > { %v3480_v56 = vpop.f32.mrf.mxu1  ;;  %v5751_v8 = vpop.f32.mrf.mxu0 }
 0x35f   : > { %4882 = vst [vmem:[%s1245_s1] sm:$0xff] %v4880_v33  ;;  %v3550_v36 = vmul.f32 %v3548_v1, %v3204_v19  ;;  %v4847_v2 = vadd.f32 %v4843_v26, %v4751_v61  ;;  %v3545_v55 = vmul.f32 %v3480_v56, %v3478_v60 }
 0x361   : > { %v8148_v50 = vadd.f32 %v3550_v36, %v3202_v25  ;;  %v4881_v48 = vadd.f32 %v4877_v21, %v4847_v2  ;;  %v3549_v14 = vadd.f32 %v3547_v43, %v3545_v55  ;;  %v6010_v38 = vld [vmem:[%s8531_s4 + $0x38] sm:$0xff]   ;;  %v6011_v29 = vld [vmem:[%s8531_s4 + $0x30] sm:$0xff]   ;;  %v6012_v46 = vld [vmem:[%s8531_s4 + $0x28] sm:$0xff]  }
 0x362   : > { %5773 = vmatpush3.bf16.msra.mxu0 %v6010_v38  ;;  %v6013_v9 = vld [vmem:[%s8531_s4 + $0x20] sm:$0xff]   ;;  %v6014_v34 = vld [vmem:[%s8531_s4 + $0x18] sm:$0xff]   ;;  %v6015_v54 = vld [vmem:[%s8531_s4 + $0x10] sm:$0xff]  }
 0x363   : > { %4883 = vst [vmem:[%s1245_s1 + $0x8] sm:$0xff] %v4881_v48  ;;  %v3551_v16 = vmul.f32 %v3549_v14, %v3208_v62  ;;  %3554 = vst [vmem:[%s8154_s3] sm:$0xff] %v8148_v50  ;;  %5774 = vmatprep.subr.bf16.mxu0 %v8532_v18  ;;  %s8533_s1 = sld [smem:[#allocation25_spill]]  ;;  %v6016_v52 = vld [vmem:[%s8531_s4 + $0x8] sm:$0xff]   ;;  %v6017_v51 = vld [vmem:[%s8531_s4] sm:$0xff]  }
 0x365   : > { %v8158_v37 = vadd.f32 %v3551_v16, %v3206_v13 }
 0x366   : > { %5775 = vmatpush3.bf16.msra.mxu0 %v6011_v29 }
 0x367   : > { %v3556_v17 = vpack.c.bf16 %v8158_v37, %v8148_v50  ;;  %3555 = vst [vmem:[%s8154_s3 + $0x8] sm:$0xff] %v8158_v37  ;;  %5776 = vmatprep.subr.bf16.mxu0 %v8532_v18 }
 0x369   : > { %5769 = vmatmul.mubr.bf16.vlgmr.msra.gmra.mxu1 %v3556_v17  ;;  %v5475_v40 = vld [vmem:[%s8533_s1] ss:$0 sm:$0xff]  ;;  %s8315_s1 = sshll.u32 %s6469_s0, 8 }
 0x36a   : > { %5777 = vmatpush3.bf16.msra.mxu0 %v6012_v46  ;;  %s8184_s4 = scalar_lea.hbm %s8534_s6, %s8315_s1 }
 0x36b   : > { %5778 = vmatprep.subr.bf16.mxu0 %v8532_v18 }
 0x36e   : > { %5779 = vmatpush3.bf16.msra.mxu0 %v6013_v9 }
 0x36f   : > { %5780 = vmatprep.subr.bf16.mxu0 %v8532_v18 }
 0x372   : > { %5781 = vmatpush3.bf16.msra.mxu0 %v6014_v34 }
 0x373   : > { %5782 = vmatprep.subr.bf16.mxu0 %v8532_v18 }
 0x376   : > { %5783 = vmatpush3.bf16.msra.mxu0 %v6015_v54 }
 0x377   : > { %5784 = vmatprep.subr.bf16.mxu0 %v8532_v18 }
 0x37a   : > { %5785 = vmatpush3.bf16.msra.mxu0 %v6016_v52 }
 0x37b   : > { %5786 = vmatprep.subr.bf16.mxu0 %v8532_v18 }
 0x37e   : > { %5787 = vmatpush3.bf16.msra.mxu0 %v6017_v51 }
 0x429   : > { %v3662_v53 = vpop.f32.mrf.mxu1 }
 0x42a   : > { %v3663_v28 = vadd.f32 %v5475_v40, %v3662_v53 }
 0x42b   : > { %v5770_v12 = vpop.f32.mrf.mxu1 }
 0x42c   : > { %v5484_v47 = vmul.f32 -1.442695, %v3663_v28 }
 0x42d   : > { %v3665_v58 = vpop.f32.mrf.mxu1 }
 0x42e   : > { %6146 = vpow2.f32 %v5484_v47  ;;  %v3666_v31 = vadd.f32 %v5475_v40, %v3665_v58 }
 0x42f   : > { %v5771_v5 = vpop.f32.mrf.mxu1 }
 0x430   : > { %v5485_v10 = vmul.f32 -1.442695, %v3666_v31 }
 0x432   : > { %6148 = vpow2.f32 %v5485_v10 }
 0x43b   : > { %v6147_v4 = vpop.eup %6146 }
 0x43c   : > { %v3675_v6 = vadd.f32 1.0, %v6147_v4 }
 0x43e   : > { %6150 = vrcp.f32 %v3675_v6 }
 0x43f   : > { %v6149_v45 = vpop.eup %6148 }
 0x440   : > { %v3676_v20 = vadd.f32 1.0, %v6149_v45 }
 0x442   : > { %6152 = vrcp.f32 %v3676_v20 }
 0x44b   : > { %v6151_v15 = vpop.eup %6150 }
 0x44c   : > { %v3681_v49 = vmul.f32 %v6151_v15, %v3663_v28 }
 0x44f   : > { %v6153_v59 = vpop.eup %6152 }
 0x450   : > { %v3682_v44 = vmul.f32 %v6153_v59, %v3666_v31 }
 0x452   : > { %v3683_v35 = vpack.c.bf16 %v3682_v44, %v3681_v49 }
 0x454   : > { %5789 = vmatmul.mubr.bf16.vlgmr.msra.gmra.mxu0 %v3683_v35 }
 0x455   : > { %6171 = shalt.err (!%p6168_p4)
}
 0x456   : > { %s6172_s3 = scalar_lea.hbm %s8184_s4, 256  ;;  %s6176_s1 = scalar_lea.hbm %s8534_s6, 512 }
 0x457   : > { %p6173_p7 = scmp.ne.s32.totalorder %s8184_s4, %s6172_s3  ;;  %p6177_p10 = scmp.lt.s32.totalorder %s8184_s4, %s8534_s6 }
 0x458   : > { %p6178_p11 = scmp.lt.s32.totalorder %s6176_s1, %s6172_s3 }
 0x459   : > { %p6174_p8 = pnand %p6173_p7, %p6486_p5 }
 0x45a   : > { %p6179_p12 = por %p6178_p11, %p6177_p10 }
 0x45b   : > { %p6175_p9 = pneg %p6174_p8 }
 0x45d   : > { %p6180_p13 = pnand %p6179_p12, %p6175_p9 }
 0x45f   : > { %6183 = shalt.err (!%p6180_p13)
}
 0x460   : > { %s6285_s9 = smov 128   ;;  %s8535_s13 = sld [smem:[#allocation27_spill]] }
 0x461   : > { %s8536_s12 = sld [smem:[#allocation17_spill]]  ;;  %s6286_s11 = smov 8  }
 0x462   : > { %5792 = dma.vmem_to_hbm [thread:$0]  (%p6486_p5), %s8187_s5, 256, %s8184_s4, %s4885_s8, %s6285_s9, %s6285_s9, %s6286_s11  }
 0x463   : > { %s8537_s3 = sshll.u32 %s8126_s23, 4  ;;  %s8538_s8 = sshll.u32 %s6469_s0, 8 }
 0x464   : > { %s1127_s6 = scalar_lea.vmem [#allocation4], %s8537_s3  ;;  %s4890_s5 = scalar_lea.sflag [#allocation5], %s8126_s23 }
 0x465   : > { %s4934_s17 = sshll.u32 %s1127_s6, 4  ;;  %s8218_s17 = int_to_ptr.vmem [resolvable:$true] %s4934_s17 }
 0x466   : > { %v5486_v41 = vld [vmem:[%s8535_s13] ss:$0 sm:$0xff]  ;;  %s6184_s4 = scalar_lea.vmem %s8218_s17, 256  ;;  %s6287_s13 = smov [#allocation4]  }
 0x467   : > { %s1225_s1 = scalar_lea.vmem %s8536_s12, %s6518_s28  ;;  %s8223_s28 = scalar_lea.hbm %s6431_s14, %s8538_s8 }
 0x468   : > { %v3798_v3 = vld [vmem:[%s1225_s1] sm:$0xff]  ;;  %v3799_v42 = vld [vmem:[%s1225_s1 + $0x8] sm:$0xff]  ;;  %p6185_p0 = scmp.ne.s32.totalorder %s8218_s17, %s6184_s4  ;;  %s6188_s12 = sshll.u32 %s6287_s13, 4  ;;  %s6189_s12 = int_to_ptr.vmem [resolvable:$false] %s6188_s12 }
 0x469   : > { %s6190_s1 = scalar_lea.vmem %s6189_s12, 512  ;;  %p6191_p3 = scmp.lt.s32.totalorder %s8218_s17, %s6189_s12 }
 0x46a   : > { %p6186_p1 = pnand %p6185_p0, %p6486_p5  ;;  %p6192_p4 = scmp.lt.s32.totalorder %s6190_s1, %s6184_s4 }
 0x46c   : > { %p6187_p2 = pneg %p6186_p1  ;;  %p6193_p7 = por %p6192_p4, %p6191_p3 }
 0x46e   : > { %p6194_p8 = pnand %p6193_p7, %p6187_p2 }
 0x514   : > { %v3789_v30 = vpop.f32.mrf.mxu0 }
 0x515   : > { %v3790_v32 = vadd.f32 %v5486_v41, %v3789_v30 }
 0x516   : > { %v5790_v0 = vpop.f32.mrf.mxu0 }
 0x517   : > { %v3796_v22 = vadd.f32 %v3790_v32, %v8148_v50 }
 0x518   : > { %v3792_v63 = vpop.f32.mrf.mxu0 }
 0x519   : > { %v3800_v7 = vadd.f32 %v3798_v3, %v3796_v22  ;;  %v3793_v19 = vadd.f32 %v5486_v41, %v3792_v63 }
 0x51a   : > { %v5791_v57 = vpop.f32.mrf.mxu0 }
 0x51b   : > { %3802 = vst [vmem:[%s1127_s6] sm:$0xff] %v3800_v7  ;;  %v3797_v60 = vadd.f32 %v3793_v19, %v8158_v37 }
 0x51d   : > { %v3801_v39 = vadd.f32 %v3799_v42, %v3797_v60 }
 0x51f   : > { %3803 = vst [vmem:[%s1127_s6 + $0x8] sm:$0xff] %v3801_v39 }
 0x520   : > { %6197 = shalt.err (!%p6194_p8)
}
 0x521   : > { %s6198_s0 = scalar_lea.hbm %s8223_s28, 256  ;;  %s6202_s23 = scalar_lea.hbm %s6431_s14, 512 }
 0x522   : > { %p6199_p9 = scmp.ne.s32.totalorder %s8223_s28, %s6198_s0  ;;  %p6203_p12 = scmp.lt.s32.totalorder %s8223_s28, %s6431_s14 }
 0x523   : > { %p6204_p13 = scmp.lt.s32.totalorder %s6202_s23, %s6198_s0 }
 0x524   : > { %p6200_p10 = pnand %p6199_p9, %p6486_p5 }
 0x525   : > { %p6205_p0 = por %p6204_p13, %p6203_p12 }
 0x526   : > { %p6201_p11 = pneg %p6200_p10 }
 0x528   : > { %p6206_p1 = pnand %p6205_p0, %p6201_p11 }
 0x52a   : > { %6209 = shalt.err (!%p6206_p1)
}
 0x52b   : > { %5793 = dma.vmem_to_hbm [thread:$0]  (%p6486_p5), %s8218_s17, 256, %s8223_s28, %s4890_s5, %s6285_s9, %s6285_s9, %s6286_s11  }
 0x52c PF: > { %p5803_p2 = scmp.ge.s32.totalorder %s6248_s22, 2  ;;  %s4961_s6 = sand.u32 1, %s6236_s15  }
 0x52d   : > { %s4962_s3 = scalar_lea.sflag [#allocation3], %s4961_s6 }
 0x52e   : > { %p5797_p3 = pnand %p5803_p2, %p6490_p6 }
 0x530   : > { %p5798_p4 = pneg %p5797_p3 }
 0x532   : > { %6227 = dma.done.wait (%p5798_p4), %s4962_s3, 256  }
 0x533   : > { %6229 = vsyncadd (%p5798_p4), %s4962_s3, 4294967040  ;;  %s4971_s8 = scalar_lea.sflag [#allocation5], %s4961_s6 }
 0x534   : > { %6231 = dma.done.wait (%p5798_p4), %s4971_s8, 256  }
 0x535   : > { %6233 = vsyncadd (%p5798_p4), %s4971_s8, 4294967040  ;;  %p75_p5 = scmp.ge.s32.totalorder %s6473_s26, 4   ;;  %s8539_s15 = smov %s6240_s16 }
 0x536   : > { %s8540_s16 = smov %s6244_s18  ;;  %s8541_s18 = smov %s6484_s2 }
 0x537   : > { %s8542_s22 = smov %s6473_s26  ;;  %77 = sbr.rel (!%p75_p5) target bundleno = 64 (0x40), region = 278 }
 0x53c   :  { %5000 = vsyncpa [#allocation3], 1 }
 0x53d   :  { %5002 = vsyncpa [#allocation3 + $0x1], 1 }
 0x53e   :  { %5003 = vsyncpa [#allocation5], 1 }
 0x53f   :  { %5005 = vsyncpa [#allocation5 + $0x1], 1 }

</bundles_post_ra>
